<compile_context>
chip_gen: v7x
topology: tpu7x:2x2x1
jax: 0.10.0
libtpu: 0.0.40
codegen_flags: <defaults>
</compile_context>

<pallas_src>
import functools

import numpy as np
import jax
import jax.numpy as jnp
from jax.experimental import pallas as pl
from jax.experimental.pallas import tpu as pltpu

# ---- stand-ins for the `c` config module used by the reference model --------
IMAGE_HEIGHT = 32
IMAGE_WIDTH = 32
SR, SC = 2, 2                 # grid cells
NUM_CLASSES = 3               # c.C
NUM_BOXES = 2                 # c.B
FC_HIDDEN = 496
FC_OUT = SR * SC * (NUM_CLASSES + NUM_BOXES * 5)   # 52
BN_EPS = 1e-5
LRELU = 0.1


# ----------------------------- fused Pallas kernel ---------------------------
def _yolo_fused_kernel(a1_ref, w1t_ref, g_ref, be_ref, w2q_ref, w1r_ref, b1_ref,
                       w2fc_ref, b2_ref, o_ref, xqa_ref, xqb_ref, *, n):
    f32 = jnp.float32
    bf16 = jnp.bfloat16

    # ---- Conv2d(1, 64, k=7, s=2, p=3) as one lane-dense MXU matmul ----------
    # a1 rows = (n, ho, w4); cols = (kh, j) zero-padded 91 -> 128.
    # w1t lanes = (w2p, wp, c)  =>  conv1 pixel wo = 4*w4 + 2*w2p + wp.
    y1 = jnp.dot(a1_ref[...], w1t_ref[...],
                 preferred_element_type=f32)               # (n*64, 256)

    # ---- MaxPool2d(2, 2)  #1 (fused) ----------------------------------------
    v = y1.reshape(n, 8, 2, 4, 256)                        # (n, h1, hp, w4, lanes)
    vh = jnp.maximum(v[:, :, 0], v[:, :, 1])               # pool over ho pairs
    p_even = jnp.maximum(vh[..., 0:64], vh[..., 64:128])   # pool over wp, w2 even
    p_odd = jnp.maximum(vh[..., 128:192], vh[..., 192:256])  # pool over wp, w2 odd
    # pool1[n, h, 2*w4 + 0, c] = p_even ; pool1[n, h, 2*w4 + 1, c] = p_odd

    # ---- assemble zero-padded, W-parity-split conv2 input in VMEM -----------
    xqa_ref[...] = jnp.zeros(xqa_ref.shape, xqa_ref.dtype)
    xqb_ref[...] = jnp.zeros(xqb_ref.shape, xqb_ref.dtype)
    xqa_ref[:, 1:9, 1:5, :] = p_even                       # (n, 8, 4, 64)
    xqb_ref[:, 1:9, 1:5, :] = p_odd

    # ---- CNNBlock conv: Conv2d(64, 64, k=3, s=1, p=1) -----------------------
    # 18 accumulated matmuls on shifted VMEM slabs; output lanes = (wpo, co),
    # output rows = (n, h, w2o)  =>  conv2 pixel wo2 = 2*w2o + wpo.
    acc = jnp.zeros((n * 32, 128), f32)
    for kh in range(3):
        for dw in range(3):
            sa = xqa_ref[:, kh:kh + 8, dw:dw + 4, :].reshape(n * 32, 64)
            sb = xqb_ref[:, kh:kh + 8, dw:dw + 4, :].reshape(n * 32, 64)
            acc = acc + jnp.dot(sa.astype(bf16), w2q_ref[0, kh, dw],
                                preferred_element_type=f32)
            acc = acc + jnp.dot(sb.astype(bf16), w2q_ref[1, kh, dw],
                                preferred_element_type=f32)

    # ---- BatchNorm2d (batch stats, biased var) + LeakyReLU(0.1) -------------
    a0 = acc[:, 0:64]                                      # wpo = 0 half
    a1v = acc[:, 64:128]                                   # wpo = 1 half
    cnt = 1.0 / (64.0 * n)                                 # N*H*W samples / channel
    mean = (jnp.sum(a0, axis=0, keepdims=True) +
            jnp.sum(a1v, axis=0, keepdims=True)) * cnt
    d0 = a0 - mean
    d1 = a1v - mean
    var = (jnp.sum(d0 * d0, axis=0, keepdims=True) +
           jnp.sum(d1 * d1, axis=0, keepdims=True)) * cnt
    scale = jax.lax.rsqrt(var + BN_EPS) * g_ref[...]
    z0 = d0 * scale + be_ref[...]
    z1 = d1 * scale + be_ref[...]
    z0 = jnp.where(z0 >= 0, z0, LRELU * z0)
    z1 = jnp.where(z1 >= 0, z1, LRELU * z1)

    # ---- MaxPool2d(2, 2)  #2 (fused) ----------------------------------------
    q = jnp.maximum(z0, z1)                                # W-pair max -> (n*32, 64)
    t = q.reshape(n, 4, 2, 4, 64)                          # (n, h2, hp, w, c)
    p2 = jnp.maximum(t[:, :, 0], t[:, :, 1])               # (n, 4, 4, 64)

    # ---- Flatten (NCHW order baked into w1r) + Linear(1024, 496) ------------
    # Dropout(0.0) is the identity.
    h = jnp.zeros((n, FC_HIDDEN), f32)
    for hh in range(4):
        for ww in range(4):
            vec = p2[:, hh, ww, :].astype(bf16)            # (n, 64)
            h = h + jnp.dot(vec, w1r_ref[hh * 4 + ww],
                            preferred_element_type=f32)
    h = h + b1_ref[...]
    h = jnp.where(h >= 0, h, LRELU * h)                    # LeakyReLU(0.1)

    # ---- Linear(496, 52) -----------------------------------------------------
    out = jnp.dot(h.astype(bf16), w2fc_ref[...], preferred_element_type=f32)
    o_ref[...] = out + b2_ref[...]


# ----------------------------- pallas_call wrapper ----------------------------
def _full_spec(shape):
    return pl.BlockSpec(tuple(shape), lambda i: (0,) * len(shape))


def yolov1_forward(packed, x_nchw):
    n = x_nchw.shape[0]
    x = x_nchw.astype(jnp.float32)[:, 0]                   # in_channels == 1
    xpad = jnp.pad(x, ((0, 0), (3, 3), (3, 3)))            # (n, 38, 38)

    # Lane-paired conv1 patch matrix: rows (n, ho, w4), cols (kh, j) where the
    # padded input column is 8*w4 + j ; K = 7*13 = 91, zero-padded to 128.
    rows = 2 * jnp.arange(16)[:, None] + jnp.arange(7)[None, :]      # (16, 7)
    cols = 8 * jnp.arange(4)[:, None] + jnp.arange(13)[None, :]      # (4, 13)
    a1 = xpad[:, rows[:, None, :, None], cols[None, :, None, :]]     # (n,16,4,7,13)
    a1 = a1.reshape(n * 64, 91)
    a1 = jnp.pad(a1, ((0, 0), (0, 128 - 91))).astype(jnp.bfloat16)   # (n*64, 128)

    kernel = functools.partial(_yolo_fused_kernel, n=n)
    args = (a1, packed["w1t"], packed["gamma"], packed["beta"], packed["w2q"],
            packed["w1r"], packed["fc1_b"], packed["w2fc"], packed["fc2_b"])
    return pl.pallas_call(
        kernel,
        grid=(1,),
        in_specs=[_full_spec(a.shape) for a in args],
        out_specs=_full_spec((n, FC_OUT)),
        out_shape=jax.ShapeDtypeStruct((n, FC_OUT), jnp.float32),
        scratch_shapes=[pltpu.VMEM((n, 10, 6, 64), jnp.float32),   # even-w2 half
                        pltpu.VMEM((n, 10, 6, 64), jnp.float32)],  # odd-w2 half
        compiler_params=pltpu.CompilerParams(
            dimension_semantics=("arbitrary",),
            vmem_limit_bytes=32 * 1024 * 1024),
    )(*args)


# ----------------------------- parameters ------------------------------------
def init_params(key):
    ks = jax.random.split(key, 8)
    fc1_in = (IMAGE_HEIGHT // 8) * (IMAGE_WIDTH // 8) * 64          # 1024
    return {
        "conv1_w": 0.05 * jax.random.normal(ks[0], (64, 1, 7, 7), jnp.float32),
        "conv2_w": 0.05 * jax.random.normal(ks[1], (64, 64, 3, 3), jnp.float32),
        "bn_gamma": 1.0 + 0.01 * jax.random.normal(ks[2], (64,), jnp.float32),
        "bn_beta": 0.01 * jax.random.normal(ks[3], (64,), jnp.float32),
        "fc1_w": 0.02 * jax.random.normal(ks[4], (fc1_in, FC_HIDDEN), jnp.float32),
        "fc1_b": 0.01 * jax.random.normal(ks[5], (FC_HIDDEN,), jnp.float32),
        "fc2_w": 0.05 * jax.random.normal(ks[6], (FC_HIDDEN, FC_OUT), jnp.float32),
        "fc2_b": 0.01 * jax.random.normal(ks[7], (FC_OUT,), jnp.float32),
    }


def pack_params(p):
    """One-time repack of PyTorch-layout weights into kernel-ready layouts."""
    w1 = np.asarray(p["conv1_w"], np.float32)                       # (64,1,7,7)
    w2 = np.asarray(p["conv2_w"], np.float32)                       # (64,64,3,3)

    # conv1 Toeplitz-style weight: rows (kh, j), lanes (w2p, wp, c).
    # output pixel wo = 4*w4 + 2*w2p + wp reads padded col 8*w4 + j, j = 4*w2p+2*wp+kw.
    w1t = np.zeros((128, 256), np.float32)
    for kh in range(7):
        for w2p in range(2):
            for wp in range(2):
                for kw in range(7):
                    j = 4 * w2p + 2 * wp + kw
                    lane0 = w2p * 128 + wp * 64
                    w1t[kh * 13 + j, lane0:lane0 + 64] = w1[:, 0, kh, kw]

    # conv2 weight split by input-column parity: [wp2, kh, dw, ci, (wpo, co)],
    # kernel tap kw = 2*dw + wp2 - wpo - 1 (zero outside 0..2).
    w2q = np.zeros((2, 3, 3, 64, 128), np.float32)
    for kh in range(3):
        for dw in range(3):
            for wp2 in range(2):
                for wpo in range(2):
                    kw = 2 * dw + wp2 - wpo - 1
                    if 0 <= kw <= 2:
                        w2q[wp2, kh, dw, :, wpo * 64:(wpo + 1) * 64] = w2[:, :, kh, kw].T

    # fc1 weight with the torch NCHW-flatten permutation baked into its rows:
    # W1r[h*4 + w, c, :] = fc1_w[c*16 + h*4 + w, :]
    w1r = np.asarray(p["fc1_w"], np.float32).reshape(64, 4, 4, FC_HIDDEN)
    w1r = w1r.transpose(1, 2, 0, 3).reshape(16, 64, FC_HIDDEN)

    return {
        "w1t": jnp.asarray(w1t, jnp.bfloat16),
        "w2q": jnp.asarray(w2q, jnp.bfloat16),
        "gamma": jnp.asarray(p["bn_gamma"], jnp.float32).reshape(1, 64),
        "beta": jnp.asarray(p["bn_beta"], jnp.float32).reshape(1, 64),
        "w1r": jnp.asarray(w1r, jnp.bfloat16),
        "fc1_b": jnp.asarray(p["fc1_b"], jnp.float32).reshape(1, FC_HIDDEN),
        "w2fc": jnp.asarray(p["fc2_w"], jnp.bfloat16),
        "fc2_b": jnp.asarray(p["fc2_b"], jnp.float32).reshape(1, FC_OUT),
    }


if __name__ == "__main__":
    key = jax.random.PRNGKey(0)
    pkey, xkey = jax.random.split(key)
    params = init_params(pkey)
    packed = pack_params(params)                       # one-time weight repack
    x = jax.random.normal(xkey, (2, 1, IMAGE_HEIGHT, IMAGE_WIDTH), jnp.float32)

    out = jax.jit(yolov1_forward)(packed, x)
    out = jax.block_until_ready(out)
    assert out.shape == (2, FC_OUT), out.shape
    print("KERNEL_OK")
</pallas_src>

<mosaic_0001>
module attributes {stable_mosaic.version = 11 : i64} {
  func.func @_yolo_fused_kernel(%arg0: i32, %arg1: memref<128x128xbf16, #tpu.memory_space<vmem>>, %arg2: memref<128x256xbf16, #tpu.memory_space<vmem>>, %arg3: memref<1x64xf32, #tpu.memory_space<vmem>>, %arg4: memref<1x64xf32, #tpu.memory_space<vmem>>, %arg5: memref<2x3x3x64x128xbf16, #tpu.memory_space<vmem>>, %arg6: memref<16x64x496xbf16, #tpu.memory_space<vmem>>, %arg7: memref<1x496xf32, #tpu.memory_space<vmem>>, %arg8: memref<496x52xbf16, #tpu.memory_space<vmem>>, %arg9: memref<1x52xf32, #tpu.memory_space<vmem>>, %arg10: memref<2x52xf32, #tpu.memory_space<vmem>>, %arg11: memref<2x10x6x64xf32, #tpu.memory_space<vmem>>, %arg12: memref<2x10x6x64xf32, #tpu.memory_space<vmem>>) attributes {dimension_semantics = [#tpu.dimension_semantics<arbitrary>], iteration_bounds = array<i64: 1>, scalar_prefetch = 0 : i64, scratch_operands = 2 : i64, tpu.core_type = #tpu.core_type<tc>, window_params = [{pipeline_mode = #tpu.pipeline_mode<synchronous>, transform_indices = @transform_0, window_bounds = array<i64: 128, 128>}, {pipeline_mode = #tpu.pipeline_mode<synchronous>, transform_indices = @transform_1, window_bounds = array<i64: 128, 256>}, {pipeline_mode = #tpu.pipeline_mode<synchronous>, transform_indices = @transform_2, window_bounds = array<i64: 1, 64>}, {pipeline_mode = #tpu.pipeline_mode<synchronous>, transform_indices = @transform_3, window_bounds = array<i64: 1, 64>}, {pipeline_mode = #tpu.pipeline_mode<synchronous>, transform_indices = @transform_4, window_bounds = array<i64: 2, 3, 3, 64, 128>}, {pipeline_mode = #tpu.pipeline_mode<synchronous>, transform_indices = @transform_5, window_bounds = array<i64: 16, 64, 496>}, {pipeline_mode = #tpu.pipeline_mode<synchronous>, transform_indices = @transform_6, window_bounds = array<i64: 1, 496>}, {pipeline_mode = #tpu.pipeline_mode<synchronous>, transform_indices = @transform_7, window_bounds = array<i64: 496, 52>}, {pipeline_mode = #tpu.pipeline_mode<synchronous>, transform_indices = @transform_8, window_bounds = array<i64: 1, 52>}, {pipeline_mode = #tpu.pipeline_mode<synchronous>, transform_indices = @transform_9, window_bounds = array<i64: 2, 52>}]} {
    %c0 = arith.constant 0 : index
    %c0_0 = arith.constant 0 : index
    %0 = vector.load %arg1[%c0, %c0_0] : memref<128x128xbf16, #tpu.memory_space<vmem>>, vector<128x128xbf16>
    %c0_1 = arith.constant 0 : index
    %c0_2 = arith.constant 0 : index
    %1 = vector.load %arg2[%c0_1, %c0_2] : memref<128x256xbf16, #tpu.memory_space<vmem>>, vector<128x256xbf16>
    %cst = arith.constant dense<0.000000e+00> : vector<128x256xf32>
    %2 = tpu.matmul %0, %1, %cst {dimension_numbers = #tpu.dot_dimension_numbers<[1], [0], [0], [1], [0, 0, 1, 1], [], []>} : vector<128x128xbf16>, vector<128x256xbf16>, vector<128x256xf32> -> vector<128x256xf32>
    %3 = vector.shape_cast %2 : vector<128x256xf32> to vector<2x8x2x4x256xf32>
    %4 = vector.extract_strided_slice %3 {offsets = [0, 0, 0, 0, 0], sizes = [2, 8, 1, 4, 256], strides = [1, 1, 1, 1, 1]} : vector<2x8x2x4x256xf32> to vector<2x8x1x4x256xf32>
    %5 = vector.shape_cast %4 : vector<2x8x1x4x256xf32> to vector<2x8x4x256xf32>
    %6 = vector.extract_strided_slice %3 {offsets = [0, 0, 1, 0, 0], sizes = [2, 8, 1, 4, 256], strides = [1, 1, 1, 1, 1]} : vector<2x8x2x4x256xf32> to vector<2x8x1x4x256xf32>
    %7 = vector.shape_cast %6 : vector<2x8x1x4x256xf32> to vector<2x8x4x256xf32>
    %8 = arith.maximumf %5, %7 : vector<2x8x4x256xf32>
    %9 = vector.extract_strided_slice %8 {offsets = [0, 0, 0, 0], sizes = [2, 8, 4, 64], strides = [1, 1, 1, 1]} : vector<2x8x4x256xf32> to vector<2x8x4x64xf32>
    %10 = vector.extract_strided_slice %8 {offsets = [0, 0, 0, 64], sizes = [2, 8, 4, 64], strides = [1, 1, 1, 1]} : vector<2x8x4x256xf32> to vector<2x8x4x64xf32>
    %11 = arith.maximumf %9, %10 : vector<2x8x4x64xf32>
    %12 = vector.extract_strided_slice %8 {offsets = [0, 0, 0, 128], sizes = [2, 8, 4, 64], strides = [1, 1, 1, 1]} : vector<2x8x4x256xf32> to vector<2x8x4x64xf32>
    %13 = vector.extract_strided_slice %8 {offsets = [0, 0, 0, 192], sizes = [2, 8, 4, 64], strides = [1, 1, 1, 1]} : vector<2x8x4x256xf32> to vector<2x8x4x64xf32>
    %14 = arith.maximumf %12, %13 : vector<2x8x4x64xf32>
    %cst_3 = arith.constant 0.000000e+00 : f32
    %15 = vector.broadcast %cst_3 : f32 to vector<2x10x6x64xf32>
    %c0_4 = arith.constant 0 : index
    %c0_5 = arith.constant 0 : index
    %c0_6 = arith.constant 0 : index
    %c0_7 = arith.constant 0 : index
    %16 = vector.load %arg11[%c0_4, %c0_5, %c0_6, %c0_7] : memref<2x10x6x64xf32, #tpu.memory_space<vmem>>, vector<2x10x6x64xf32>
    tpu.vector_store %arg11[%c0_4, %c0_5, %c0_6, %c0_7], %15 {strides = array<i32>} : memref<2x10x6x64xf32, #tpu.memory_space<vmem>>, vector<2x10x6x64xf32>,
    %cst_8 = arith.constant 0.000000e+00 : f32
    %17 = vector.broadcast %cst_8 : f32 to vector<2x10x6x64xf32>
    %c0_9 = arith.constant 0 : index
    %c0_10 = arith.constant 0 : index
    %c0_11 = arith.constant 0 : index
    %c0_12 = arith.constant 0 : index
    %18 = vector.load %arg12[%c0_9, %c0_10, %c0_11, %c0_12] : memref<2x10x6x64xf32, #tpu.memory_space<vmem>>, vector<2x10x6x64xf32>
    tpu.vector_store %arg12[%c0_9, %c0_10, %c0_11, %c0_12], %17 {strides = array<i32>} : memref<2x10x6x64xf32, #tpu.memory_space<vmem>>, vector<2x10x6x64xf32>,
    %c0_13 = arith.constant 0 : index
    %c1 = arith.constant 1 : index
    %c1_14 = arith.constant 1 : index
    %c0_15 = arith.constant 0 : index
    %19 = vector.load %arg11[%c0_13, %c1, %c1_14, %c0_15] : memref<2x10x6x64xf32, #tpu.memory_space<vmem>>, vector<2x8x4x64xf32>
    tpu.vector_store %arg11[%c0_13, %c1, %c1_14, %c0_15], %11 {strides = array<i32>} : memref<2x10x6x64xf32, #tpu.memory_space<vmem>>, vector<2x8x4x64xf32>,
    %c0_16 = arith.constant 0 : index
    %c1_17 = arith.constant 1 : index
    %c1_18 = arith.constant 1 : index
    %c0_19 = arith.constant 0 : index
    %20 = vector.load %arg12[%c0_16, %c1_17, %c1_18, %c0_19] : memref<2x10x6x64xf32, #tpu.memory_space<vmem>>, vector<2x8x4x64xf32>
    tpu.vector_store %arg12[%c0_16, %c1_17, %c1_18, %c0_19], %14 {strides = array<i32>} : memref<2x10x6x64xf32, #tpu.memory_space<vmem>>, vector<2x8x4x64xf32>,
    %cst_20 = arith.constant 0.000000e+00 : f32
    %21 = vector.broadcast %cst_20 : f32 to vector<64x128xf32>
    %c0_21 = arith.constant 0 : index
    %c0_22 = arith.constant 0 : index
    %c0_23 = arith.constant 0 : index
    %c0_24 = arith.constant 0 : index
    %22 = vector.load %arg11[%c0_21, %c0_22, %c0_23, %c0_24] : memref<2x10x6x64xf32, #tpu.memory_space<vmem>>, vector<2x8x4x64xf32>
    %23 = vector.shape_cast %22 : vector<2x8x4x64xf32> to vector<64x64xf32>
    %c0_25 = arith.constant 0 : index
    %c0_26 = arith.constant 0 : index
    %c0_27 = arith.constant 0 : index
    %c0_28 = arith.constant 0 : index
    %24 = vector.load %arg12[%c0_25, %c0_26, %c0_27, %c0_28] : memref<2x10x6x64xf32, #tpu.memory_space<vmem>>, vector<2x8x4x64xf32>
    %25 = vector.shape_cast %24 : vector<2x8x4x64xf32> to vector<64x64xf32>
    %26 = arith.truncf %23 : vector<64x64xf32> to vector<64x64xbf16>
    %c0_29 = arith.constant 0 : index
    %c0_30 = arith.constant 0 : index
    %c0_31 = arith.constant 0 : index
    %c0_32 = arith.constant 0 : index
    %c0_33 = arith.constant 0 : index
    %27 = vector.load %arg5[%c0_29, %c0_30, %c0_31, %c0_32, %c0_33] : memref<2x3x3x64x128xbf16, #tpu.memory_space<vmem>>, vector<1x1x1x64x128xbf16>
    %28 = vector.shape_cast %27 : vector<1x1x1x64x128xbf16> to vector<64x128xbf16>
    %cst_34 = arith.constant dense<0.000000e+00> : vector<64x128xf32>
    %29 = tpu.matmul %26, %28, %cst_34 {dimension_numbers = #tpu.dot_dimension_numbers<[1], [0], [0], [1], [0, 0, 1, 1], [], []>} : vector<64x64xbf16>, vector<64x128xbf16>, vector<64x128xf32> -> vector<64x128xf32>
    %30 = arith.addf %21, %29 : vector<64x128xf32>
    %31 = arith.truncf %25 : vector<64x64xf32> to vector<64x64xbf16>
    %c1_35 = arith.constant 1 : index
    %c0_36 = arith.constant 0 : index
    %c0_37 = arith.constant 0 : index
    %c0_38 = arith.constant 0 : index
    %c0_39 = arith.constant 0 : index
    %32 = vector.load %arg5[%c1_35, %c0_36, %c0_37, %c0_38, %c0_39] : memref<2x3x3x64x128xbf16, #tpu.memory_space<vmem>>, vector<1x1x1x64x128xbf16>
    %33 = vector.shape_cast %32 : vector<1x1x1x64x128xbf16> to vector<64x128xbf16>
    %cst_40 = arith.constant dense<0.000000e+00> : vector<64x128xf32>
    %34 = tpu.matmul %31, %33, %cst_40 {dimension_numbers = #tpu.dot_dimension_numbers<[1], [0], [0], [1], [0, 0, 1, 1], [], []>} : vector<64x64xbf16>, vector<64x128xbf16>, vector<64x128xf32> -> vector<64x128xf32>
    %35 = arith.addf %30, %34 : vector<64x128xf32>
    %c0_41 = arith.constant 0 : index
    %c0_42 = arith.constant 0 : index
    %c1_43 = arith.constant 1 : index
    %c0_44 = arith.constant 0 : index
    %36 = vector.load %arg11[%c0_41, %c0_42, %c1_43, %c0_44] : memref<2x10x6x64xf32, #tpu.memory_space<vmem>>, vector<2x8x4x64xf32>
    %37 = vector.shape_cast %36 : vector<2x8x4x64xf32> to vector<64x64xf32>
    %c0_45 = arith.constant 0 : index
    %c0_46 = arith.constant 0 : index
    %c1_47 = arith.constant 1 : index
    %c0_48 = arith.constant 0 : index
    %38 = vector.load %arg12[%c0_45, %c0_46, %c1_47, %c0_48] : memref<2x10x6x64xf32, #tpu.memory_space<vmem>>, vector<2x8x4x64xf32>
    %39 = vector.shape_cast %38 : vector<2x8x4x64xf32> to vector<64x64xf32>
    %40 = arith.truncf %37 : vector<64x64xf32> to vector<64x64xbf16>
    %c0_49 = arith.constant 0 : index
    %c0_50 = arith.constant 0 : index
    %c1_51 = arith.constant 1 : index
    %c0_52 = arith.constant 0 : index
    %c0_53 = arith.constant 0 : index
    %41 = vector.load %arg5[%c0_49, %c0_50, %c1_51, %c0_52, %c0_53] : memref<2x3x3x64x128xbf16, #tpu.memory_space<vmem>>, vector<1x1x1x64x128xbf16>
    %42 = vector.shape_cast %41 : vector<1x1x1x64x128xbf16> to vector<64x128xbf16>
    %cst_54 = arith.constant dense<0.000000e+00> : vector<64x128xf32>
    %43 = tpu.matmul %40, %42, %cst_54 {dimension_numbers = #tpu.dot_dimension_numbers<[1], [0], [0], [1], [0, 0, 1, 1], [], []>} : vector<64x64xbf16>, vector<64x128xbf16>, vector<64x128xf32> -> vector<64x128xf32>
    %44 = arith.addf %35, %43 : vector<64x128xf32>
    %45 = arith.truncf %39 : vector<64x64xf32> to vector<64x64xbf16>
    %c1_55 = arith.constant 1 : index
    %c0_56 = arith.constant 0 : index
    %c1_57 = arith.constant 1 : index
    %c0_58 = arith.constant 0 : index
    %c0_59 = arith.constant 0 : index
    %46 = vector.load %arg5[%c1_55, %c0_56, %c1_57, %c0_58, %c0_59] : memref<2x3x3x64x128xbf16, #tpu.memory_space<vmem>>, vector<1x1x1x64x128xbf16>
    %47 = vector.shape_cast %46 : vector<1x1x1x64x128xbf16> to vector<64x128xbf16>
    %cst_60 = arith.constant dense<0.000000e+00> : vector<64x128xf32>
    %48 = tpu.matmul %45, %47, %cst_60 {dimension_numbers = #tpu.dot_dimension_numbers<[1], [0], [0], [1], [0, 0, 1, 1], [], []>} : vector<64x64xbf16>, vector<64x128xbf16>, vector<64x128xf32> -> vector<64x128xf32>
    %49 = arith.addf %44, %48 : vector<64x128xf32>
    %c0_61 = arith.constant 0 : index
    %c0_62 = arith.constant 0 : index
    %c2 = arith.constant 2 : index
    %c0_63 = arith.constant 0 : index
    %50 = vector.load %arg11[%c0_61, %c0_62, %c2, %c0_63] : memref<2x10x6x64xf32, #tpu.memory_space<vmem>>, vector<2x8x4x64xf32>
    %51 = vector.shape_cast %50 : vector<2x8x4x64xf32> to vector<64x64xf32>
    %c0_64 = arith.constant 0 : index
    %c0_65 = arith.constant 0 : index
    %c2_66 = arith.constant 2 : index
    %c0_67 = arith.constant 0 : index
    %52 = vector.load %arg12[%c0_64, %c0_65, %c2_66, %c0_67] : memref<2x10x6x64xf32, #tpu.memory_space<vmem>>, vector<2x8x4x64xf32>
    %53 = vector.shape_cast %52 : vector<2x8x4x64xf32> to vector<64x64xf32>
    %54 = arith.truncf %51 : vector<64x64xf32> to vector<64x64xbf16>
    %c0_68 = arith.constant 0 : index
    %c0_69 = arith.constant 0 : index
    %c2_70 = arith.constant 2 : index
    %c0_71 = arith.constant 0 : index
    %c0_72 = arith.constant 0 : index
    %55 = vector.load %arg5[%c0_68, %c0_69, %c2_70, %c0_71, %c0_72] : memref<2x3x3x64x128xbf16, #tpu.memory_space<vmem>>, vector<1x1x1x64x128xbf16>
    %56 = vector.shape_cast %55 : vector<1x1x1x64x128xbf16> to vector<64x128xbf16>
    %cst_73 = arith.constant dense<0.000000e+00> : vector<64x128xf32>
    %57 = tpu.matmul %54, %56, %cst_73 {dimension_numbers = #tpu.dot_dimension_numbers<[1], [0], [0], [1], [0, 0, 1, 1], [], []>} : vector<64x64xbf16>, vector<64x128xbf16>, vector<64x128xf32> -> vector<64x128xf32>
    %58 = arith.addf %49, %57 : vector<64x128xf32>
    %59 = arith.truncf %53 : vector<64x64xf32> to vector<64x64xbf16>
    %c1_74 = arith.constant 1 : index
    %c0_75 = arith.constant 0 : index
    %c2_76 = arith.constant 2 : index
    %c0_77 = arith.constant 0 : index
    %c0_78 = arith.constant 0 : index
    %60 = vector.load %arg5[%c1_74, %c0_75, %c2_76, %c0_77, %c0_78] : memref<2x3x3x64x128xbf16, #tpu.memory_space<vmem>>, vector<1x1x1x64x128xbf16>
    %61 = vector.shape_cast %60 : vector<1x1x1x64x128xbf16> to vector<64x128xbf16>
    %cst_79 = arith.constant dense<0.000000e+00> : vector<64x128xf32>
    %62 = tpu.matmul %59, %61, %cst_79 {dimension_numbers = #tpu.dot_dimension_numbers<[1], [0], [0], [1], [0, 0, 1, 1], [], []>} : vector<64x64xbf16>, vector<64x128xbf16>, vector<64x128xf32> -> vector<64x128xf32>
    %63 = arith.addf %58, %62 : vector<64x128xf32>
    %c0_80 = arith.constant 0 : index
    %c1_81 = arith.constant 1 : index
    %c0_82 = arith.constant 0 : index
    %c0_83 = arith.constant 0 : index
    %64 = vector.load %arg11[%c0_80, %c1_81, %c0_82, %c0_83] : memref<2x10x6x64xf32, #tpu.memory_space<vmem>>, vector<2x8x4x64xf32>
    %65 = vector.shape_cast %64 : vector<2x8x4x64xf32> to vector<64x64xf32>
    %c0_84 = arith.constant 0 : index
    %c1_85 = arith.constant 1 : index
    %c0_86 = arith.constant 0 : index
    %c0_87 = arith.constant 0 : index
    %66 = vector.load %arg12[%c0_84, %c1_85, %c0_86, %c0_87] : memref<2x10x6x64xf32, #tpu.memory_space<vmem>>, vector<2x8x4x64xf32>
    %67 = vector.shape_cast %66 : vector<2x8x4x64xf32> to vector<64x64xf32>
    %68 = arith.truncf %65 : vector<64x64xf32> to vector<64x64xbf16>
    %c0_88 = arith.constant 0 : index
    %c1_89 = arith.constant 1 : index
    %c0_90 = arith.constant 0 : index
    %c0_91 = arith.constant 0 : index
    %c0_92 = arith.constant 0 : index
    %69 = vector.load %arg5[%c0_88, %c1_89, %c0_90, %c0_91, %c0_92] : memref<2x3x3x64x128xbf16, #tpu.memory_space<vmem>>, vector<1x1x1x64x128xbf16>
    %70 = vector.shape_cast %69 : vector<1x1x1x64x128xbf16> to vector<64x128xbf16>
    %cst_93 = arith.constant dense<0.000000e+00> : vector<64x128xf32>
    %71 = tpu.matmul %68, %70, %cst_93 {dimension_numbers = #tpu.dot_dimension_numbers<[1], [0], [0], [1], [0, 0, 1, 1], [], []>} : vector<64x64xbf16>, vector<64x128xbf16>, vector<64x128xf32> -> vector<64x128xf32>
    %72 = arith.addf %63, %71 : vector<64x128xf32>
    %73 = arith.truncf %67 : vector<64x64xf32> to vector<64x64xbf16>
    %c1_94 = arith.constant 1 : index
    %c1_95 = arith.constant 1 : index
    %c0_96 = arith.constant 0 : index
    %c0_97 = arith.constant 0 : index
    %c0_98 = arith.constant 0 : index
    %74 = vector.load %arg5[%c1_94, %c1_95, %c0_96, %c0_97, %c0_98] : memref<2x3x3x64x128xbf16, #tpu.memory_space<vmem>>, vector<1x1x1x64x128xbf16>
    %75 = vector.shape_cast %74 : vector<1x1x1x64x128xbf16> to vector<64x128xbf16>
    %cst_99 = arith.constant dense<0.000000e+00> : vector<64x128xf32>
    %76 = tpu.matmul %73, %75, %cst_99 {dimension_numbers = #tpu.dot_dimension_numbers<[1], [0], [0], [1], [0, 0, 1, 1], [], []>} : vector<64x64xbf16>, vector<64x128xbf16>, vector<64x128xf32> -> vector<64x128xf32>
    %77 = arith.addf %72, %76 : vector<64x128xf32>
    %c0_100 = arith.constant 0 : index
    %c1_101 = arith.constant 1 : index
    %c1_102 = arith.constant 1 : index
    %c0_103 = arith.constant 0 : index
    %78 = vector.load %arg11[%c0_100, %c1_101, %c1_102, %c0_103] : memref<2x10x6x64xf32, #tpu.memory_space<vmem>>, vector<2x8x4x64xf32>
    %79 = vector.shape_cast %78 : vector<2x8x4x64xf32> to vector<64x64xf32>
    %c0_104 = arith.constant 0 : index
    %c1_105 = arith.constant 1 : index
    %c1_106 = arith.constant 1 : index
    %c0_107 = arith.constant 0 : index
    %80 = vector.load %arg12[%c0_104, %c1_105, %c1_106, %c0_107] : memref<2x10x6x64xf32, #tpu.memory_space<vmem>>, vector<2x8x4x64xf32>
    %81 = vector.shape_cast %80 : vector<2x8x4x64xf32> to vector<64x64xf32>
    %82 = arith.truncf %79 : vector<64x64xf32> to vector<64x64xbf16>
    %c0_108 = arith.constant 0 : index
    %c1_109 = arith.constant 1 : index
    %c1_110 = arith.constant 1 : index
    %c0_111 = arith.constant 0 : index
    %c0_112 = arith.constant 0 : index
    %83 = vector.load %arg5[%c0_108, %c1_109, %c1_110, %c0_111, %c0_112] : memref<2x3x3x64x128xbf16, #tpu.memory_space<vmem>>, vector<1x1x1x64x128xbf16>
    %84 = vector.shape_cast %83 : vector<1x1x1x64x128xbf16> to vector<64x128xbf16>
    %cst_113 = arith.constant dense<0.000000e+00> : vector<64x128xf32>
    %85 = tpu.matmul %82, %84, %cst_113 {dimension_numbers = #tpu.dot_dimension_numbers<[1], [0], [0], [1], [0, 0, 1, 1], [], []>} : vector<64x64xbf16>, vector<64x128xbf16>, vector<64x128xf32> -> vector<64x128xf32>
    %86 = arith.addf %77, %85 : vector<64x128xf32>
    %87 = arith.truncf %81 : vector<64x64xf32> to vector<64x64xbf16>
    %c1_114 = arith.constant 1 : index
    %c1_115 = arith.constant 1 : index
    %c1_116 = arith.constant 1 : index
    %c0_117 = arith.constant 0 : index
    %c0_118 = arith.constant 0 : index
    %88 = vector.load %arg5[%c1_114, %c1_115, %c1_116, %c0_117, %c0_118] : memref<2x3x3x64x128xbf16, #tpu.memory_space<vmem>>, vector<1x1x1x64x128xbf16>
    %89 = vector.shape_cast %88 : vector<1x1x1x64x128xbf16> to vector<64x128xbf16>
    %cst_119 = arith.constant dense<0.000000e+00> : vector<64x128xf32>
    %90 = tpu.matmul %87, %89, %cst_119 {dimension_numbers = #tpu.dot_dimension_numbers<[1], [0], [0], [1], [0, 0, 1, 1], [], []>} : vector<64x64xbf16>, vector<64x128xbf16>, vector<64x128xf32> -> vector<64x128xf32>
    %91 = arith.addf %86, %90 : vector<64x128xf32>
    %c0_120 = arith.constant 0 : index
    %c1_121 = arith.constant 1 : index
    %c2_122 = arith.constant 2 : index
    %c0_123 = arith.constant 0 : index
    %92 = vector.load %arg11[%c0_120, %c1_121, %c2_122, %c0_123] : memref<2x10x6x64xf32, #tpu.memory_space<vmem>>, vector<2x8x4x64xf32>
    %93 = vector.shape_cast %92 : vector<2x8x4x64xf32> to vector<64x64xf32>
    %c0_124 = arith.constant 0 : index
    %c1_125 = arith.constant 1 : index
    %c2_126 = arith.constant 2 : index
    %c0_127 = arith.constant 0 : index
    %94 = vector.load %arg12[%c0_124, %c1_125, %c2_126, %c0_127] : memref<2x10x6x64xf32, #tpu.memory_space<vmem>>, vector<2x8x4x64xf32>
    %95 = vector.shape_cast %94 : vector<2x8x4x64xf32> to vector<64x64xf32>
    %96 = arith.truncf %93 : vector<64x64xf32> to vector<64x64xbf16>
    %c0_128 = arith.constant 0 : index
    %c1_129 = arith.constant 1 : index
    %c2_130 = arith.constant 2 : index
    %c0_131 = arith.constant 0 : index
    %c0_132 = arith.constant 0 : index
    %97 = vector.load %arg5[%c0_128, %c1_129, %c2_130, %c0_131, %c0_132] : memref<2x3x3x64x128xbf16, #tpu.memory_space<vmem>>, vector<1x1x1x64x128xbf16>
    %98 = vector.shape_cast %97 : vector<1x1x1x64x128xbf16> to vector<64x128xbf16>
    %cst_133 = arith.constant dense<0.000000e+00> : vector<64x128xf32>
    %99 = tpu.matmul %96, %98, %cst_133 {dimension_numbers = #tpu.dot_dimension_numbers<[1], [0], [0], [1], [0, 0, 1, 1], [], []>} : vector<64x64xbf16>, vector<64x128xbf16>, vector<64x128xf32> -> vector<64x128xf32>
    %100 = arith.addf %91, %99 : vector<64x128xf32>
    %101 = arith.truncf %95 : vector<64x64xf32> to vector<64x64xbf16>
    %c1_134 = arith.constant 1 : index
    %c1_135 = arith.constant 1 : index
    %c2_136 = arith.constant 2 : index
    %c0_137 = arith.constant 0 : index
    %c0_138 = arith.constant 0 : index
    %102 = vector.load %arg5[%c1_134, %c1_135, %c2_136, %c0_137, %c0_138] : memref<2x3x3x64x128xbf16, #tpu.memory_space<vmem>>, vector<1x1x1x64x128xbf16>
    %103 = vector.shape_cast %102 : vector<1x1x1x64x128xbf16> to vector<64x128xbf16>
    %cst_139 = arith.constant dense<0.000000e+00> : vector<64x128xf32>
    %104 = tpu.matmul %101, %103, %cst_139 {dimension_numbers = #tpu.dot_dimension_numbers<[1], [0], [0], [1], [0, 0, 1, 1], [], []>} : vector<64x64xbf16>, vector<64x128xbf16>, vector<64x128xf32> -> vector<64x128xf32>
    %105 = arith.addf %100, %104 : vector<64x128xf32>
    %c0_140 = arith.constant 0 : index
    %c2_141 = arith.constant 2 : index
    %c0_142 = arith.constant 0 : index
    %c0_143 = arith.constant 0 : index
    %106 = vector.load %arg11[%c0_140, %c2_141, %c0_142, %c0_143] : memref<2x10x6x64xf32, #tpu.memory_space<vmem>>, vector<2x8x4x64xf32>
    %107 = vector.shape_cast %106 : vector<2x8x4x64xf32> to vector<64x64xf32>
    %c0_144 = arith.constant 0 : index
    %c2_145 = arith.constant 2 : index
    %c0_146 = arith.constant 0 : index
    %c0_147 = arith.constant 0 : index
    %108 = vector.load %arg12[%c0_144, %c2_145, %c0_146, %c0_147] : memref<2x10x6x64xf32, #tpu.memory_space<vmem>>, vector<2x8x4x64xf32>
    %109 = vector.shape_cast %108 : vector<2x8x4x64xf32> to vector<64x64xf32>
    %110 = arith.truncf %107 : vector<64x64xf32> to vector<64x64xbf16>
    %c0_148 = arith.constant 0 : index
    %c2_149 = arith.constant 2 : index
    %c0_150 = arith.constant 0 : index
    %c0_151 = arith.constant 0 : index
    %c0_152 = arith.constant 0 : index
    %111 = vector.load %arg5[%c0_148, %c2_149, %c0_150, %c0_151, %c0_152] : memref<2x3x3x64x128xbf16, #tpu.memory_space<vmem>>, vector<1x1x1x64x128xbf16>
    %112 = vector.shape_cast %111 : vector<1x1x1x64x128xbf16> to vector<64x128xbf16>
    %cst_153 = arith.constant dense<0.000000e+00> : vector<64x128xf32>
    %113 = tpu.matmul %110, %112, %cst_153 {dimension_numbers = #tpu.dot_dimension_numbers<[1], [0], [0], [1], [0, 0, 1, 1], [], []>} : vector<64x64xbf16>, vector<64x128xbf16>, vector<64x128xf32> -> vector<64x128xf32>
    %114 = arith.addf %105, %113 : vector<64x128xf32>
    %115 = arith.truncf %109 : vector<64x64xf32> to vector<64x64xbf16>
    %c1_154 = arith.constant 1 : index
    %c2_155 = arith.constant 2 : index
    %c0_156 = arith.constant 0 : index
    %c0_157 = arith.constant 0 : index
    %c0_158 = arith.constant 0 : index
    %116 = vector.load %arg5[%c1_154, %c2_155, %c0_156, %c0_157, %c0_158] : memref<2x3x3x64x128xbf16, #tpu.memory_space<vmem>>, vector<1x1x1x64x128xbf16>
    %117 = vector.shape_cast %116 : vector<1x1x1x64x128xbf16> to vector<64x128xbf16>
    %cst_159 = arith.constant dense<0.000000e+00> : vector<64x128xf32>
    %118 = tpu.matmul %115, %117, %cst_159 {dimension_numbers = #tpu.dot_dimension_numbers<[1], [0], [0], [1], [0, 0, 1, 1], [], []>} : vector<64x64xbf16>, vector<64x128xbf16>, vector<64x128xf32> -> vector<64x128xf32>
    %119 = arith.addf %114, %118 : vector<64x128xf32>
    %c0_160 = arith.constant 0 : index
    %c2_161 = arith.constant 2 : index
    %c1_162 = arith.constant 1 : index
    %c0_163 = arith.constant 0 : index
    %120 = vector.load %arg11[%c0_160, %c2_161, %c1_162, %c0_163] : memref<2x10x6x64xf32, #tpu.memory_space<vmem>>, vector<2x8x4x64xf32>
    %121 = vector.shape_cast %120 : vector<2x8x4x64xf32> to vector<64x64xf32>
    %c0_164 = arith.constant 0 : index
    %c2_165 = arith.constant 2 : index
    %c1_166 = arith.constant 1 : index
    %c0_167 = arith.constant 0 : index
    %122 = vector.load %arg12[%c0_164, %c2_165, %c1_166, %c0_167] : memref<2x10x6x64xf32, #tpu.memory_space<vmem>>, vector<2x8x4x64xf32>
    %123 = vector.shape_cast %122 : vector<2x8x4x64xf32> to vector<64x64xf32>
    %124 = arith.truncf %121 : vector<64x64xf32> to vector<64x64xbf16>
    %c0_168 = arith.constant 0 : index
    %c2_169 = arith.constant 2 : index
    %c1_170 = arith.constant 1 : index
    %c0_171 = arith.constant 0 : index
    %c0_172 = arith.constant 0 : index
    %125 = vector.load %arg5[%c0_168, %c2_169, %c1_170, %c0_171, %c0_172] : memref<2x3x3x64x128xbf16, #tpu.memory_space<vmem>>, vector<1x1x1x64x128xbf16>
    %126 = vector.shape_cast %125 : vector<1x1x1x64x128xbf16> to vector<64x128xbf16>
    %cst_173 = arith.constant dense<0.000000e+00> : vector<64x128xf32>
    %127 = tpu.matmul %124, %126, %cst_173 {dimension_numbers = #tpu.dot_dimension_numbers<[1], [0], [0], [1], [0, 0, 1, 1], [], []>} : vector<64x64xbf16>, vector<64x128xbf16>, vector<64x128xf32> -> vector<64x128xf32>
    %128 = arith.addf %119, %127 : vector<64x128xf32>
    %129 = arith.truncf %123 : vector<64x64xf32> to vector<64x64xbf16>
    %c1_174 = arith.constant 1 : index
    %c2_175 = arith.constant 2 : index
    %c1_176 = arith.constant 1 : index
    %c0_177 = arith.constant 0 : index
    %c0_178 = arith.constant 0 : index
    %130 = vector.load %arg5[%c1_174, %c2_175, %c1_176, %c0_177, %c0_178] : memref<2x3x3x64x128xbf16, #tpu.memory_space<vmem>>, vector<1x1x1x64x128xbf16>
    %131 = vector.shape_cast %130 : vector<1x1x1x64x128xbf16> to vector<64x128xbf16>
    %cst_179 = arith.constant dense<0.000000e+00> : vector<64x128xf32>
    %132 = tpu.matmul %129, %131, %cst_179 {dimension_numbers = #tpu.dot_dimension_numbers<[1], [0], [0], [1], [0, 0, 1, 1], [], []>} : vector<64x64xbf16>, vector<64x128xbf16>, vector<64x128xf32> -> vector<64x128xf32>
    %133 = arith.addf %128, %132 : vector<64x128xf32>
    %c0_180 = arith.constant 0 : index
    %c2_181 = arith.constant 2 : index
    %c2_182 = arith.constant 2 : index
    %c0_183 = arith.constant 0 : index
    %134 = vector.load %arg11[%c0_180, %c2_181, %c2_182, %c0_183] : memref<2x10x6x64xf32, #tpu.memory_space<vmem>>, vector<2x8x4x64xf32>
    %135 = vector.shape_cast %134 : vector<2x8x4x64xf32> to vector<64x64xf32>
    %c0_184 = arith.constant 0 : index
    %c2_185 = arith.constant 2 : index
    %c2_186 = arith.constant 2 : index
    %c0_187 = arith.constant 0 : index
    %136 = vector.load %arg12[%c0_184, %c2_185, %c2_186, %c0_187] : memref<2x10x6x64xf32, #tpu.memory_space<vmem>>, vector<2x8x4x64xf32>
    %137 = vector.shape_cast %136 : vector<2x8x4x64xf32> to vector<64x64xf32>
    %138 = arith.truncf %135 : vector<64x64xf32> to vector<64x64xbf16>
    %c0_188 = arith.constant 0 : index
    %c2_189 = arith.constant 2 : index
    %c2_190 = arith.constant 2 : index
    %c0_191 = arith.constant 0 : index
    %c0_192 = arith.constant 0 : index
    %139 = vector.load %arg5[%c0_188, %c2_189, %c2_190, %c0_191, %c0_192] : memref<2x3x3x64x128xbf16, #tpu.memory_space<vmem>>, vector<1x1x1x64x128xbf16>
    %140 = vector.shape_cast %139 : vector<1x1x1x64x128xbf16> to vector<64x128xbf16>
    %cst_193 = arith.constant dense<0.000000e+00> : vector<64x128xf32>
    %141 = tpu.matmul %138, %140, %cst_193 {dimension_numbers = #tpu.dot_dimension_numbers<[1], [0], [0], [1], [0, 0, 1, 1], [], []>} : vector<64x64xbf16>, vector<64x128xbf16>, vector<64x128xf32> -> vector<64x128xf32>
    %142 = arith.addf %133, %141 : vector<64x128xf32>
    %143 = arith.truncf %137 : vector<64x64xf32> to vector<64x64xbf16>
    %c1_194 = arith.constant 1 : index
    %c2_195 = arith.constant 2 : index
    %c2_196 = arith.constant 2 : index
    %c0_197 = arith.constant 0 : index
    %c0_198 = arith.constant 0 : index
    %144 = vector.load %arg5[%c1_194, %c2_195, %c2_196, %c0_197, %c0_198] : memref<2x3x3x64x128xbf16, #tpu.memory_space<vmem>>, vector<1x1x1x64x128xbf16>
    %145 = vector.shape_cast %144 : vector<1x1x1x64x128xbf16> to vector<64x128xbf16>
    %cst_199 = arith.constant dense<0.000000e+00> : vector<64x128xf32>
    %146 = tpu.matmul %143, %145, %cst_199 {dimension_numbers = #tpu.dot_dimension_numbers<[1], [0], [0], [1], [0, 0, 1, 1], [], []>} : vector<64x64xbf16>, vector<64x128xbf16>, vector<64x128xf32> -> vector<64x128xf32>
    %147 = arith.addf %142, %146 : vector<64x128xf32>
    %148 = vector.extract_strided_slice %147 {offsets = [0, 0], sizes = [64, 64], strides = [1, 1]} : vector<64x128xf32> to vector<64x64xf32>
    %149 = vector.extract_strided_slice %147 {offsets = [0, 64], sizes = [64, 64], strides = [1, 1]} : vector<64x128xf32> to vector<64x64xf32>
    %cst_200 = arith.constant dense<0.000000e+00> : vector<64xf32>
    %150 = vector.multi_reduction <add>, %148, %cst_200 [0] : vector<64x64xf32> to vector<64xf32>
    %151 = vector.shape_cast %150 : vector<64xf32> to vector<1x64xf32>
    %cst_201 = arith.constant dense<0.000000e+00> : vector<64xf32>
    %152 = vector.multi_reduction <add>, %149, %cst_201 [0] : vector<64x64xf32> to vector<64xf32>
    %153 = vector.shape_cast %152 : vector<64xf32> to vector<1x64xf32>
    %154 = arith.addf %151, %153 : vector<1x64xf32>
    %cst_202 = arith.constant 7.812500e-03 : f32
    %155 = vector.broadcast %cst_202 : f32 to vector<1x64xf32>
    %156 = arith.mulf %154, %155 : vector<1x64xf32>
    %157 = vector.broadcast %156 : vector<1x64xf32> to vector<64x64xf32>
    %158 = arith.subf %148, %157 : vector<64x64xf32>
    %159 = vector.broadcast %156 : vector<1x64xf32> to vector<64x64xf32>
    %160 = arith.subf %149, %159 : vector<64x64xf32>
    %161 = arith.mulf %158, %158 : vector<64x64xf32>
    %cst_203 = arith.constant dense<0.000000e+00> : vector<64xf32>
    %162 = vector.multi_reduction <add>, %161, %cst_203 [0] : vector<64x64xf32> to vector<64xf32>
    %163 = vector.shape_cast %162 : vector<64xf32> to vector<1x64xf32>
    %164 = arith.mulf %160, %160 : vector<64x64xf32>
    %cst_204 = arith.constant dense<0.000000e+00> : vector<64xf32>
    %165 = vector.multi_reduction <add>, %164, %cst_204 [0] : vector<64x64xf32> to vector<64xf32>
    %166 = vector.shape_cast %165 : vector<64xf32> to vector<1x64xf32>
    %167 = arith.addf %163, %166 : vector<1x64xf32>
    %cst_205 = arith.constant 7.812500e-03 : f32
    %168 = vector.broadcast %cst_205 : f32 to vector<1x64xf32>
    %169 = arith.mulf %167, %168 : vector<1x64xf32>
    %cst_206 = arith.constant 9.99999974E-6 : f32
    %170 = vector.broadcast %cst_206 : f32 to vector<1x64xf32>
    %171 = arith.addf %169, %170 : vector<1x64xf32>
    %172 = math.rsqrt %171 : vector<1x64xf32>
    %c0_207 = arith.constant 0 : index
    %c0_208 = arith.constant 0 : index
    %173 = vector.load %arg3[%c0_207, %c0_208] : memref<1x64xf32, #tpu.memory_space<vmem>>, vector<1x64xf32>
    %174 = arith.mulf %172, %173 : vector<1x64xf32>
    %175 = vector.broadcast %174 : vector<1x64xf32> to vector<64x64xf32>
    %176 = arith.mulf %158, %175 : vector<64x64xf32>
    %c0_209 = arith.constant 0 : index
    %c0_210 = arith.constant 0 : index
    %177 = vector.load %arg4[%c0_209, %c0_210] : memref<1x64xf32, #tpu.memory_space<vmem>>, vector<1x64xf32>
    %178 = vector.broadcast %177 : vector<1x64xf32> to vector<64x64xf32>
    %179 = arith.addf %176, %178 : vector<64x64xf32>
    %180 = vector.broadcast %174 : vector<1x64xf32> to vector<64x64xf32>
    %181 = arith.mulf %160, %180 : vector<64x64xf32>
    %c0_211 = arith.constant 0 : index
    %c0_212 = arith.constant 0 : index
    %182 = vector.load %arg4[%c0_211, %c0_212] : memref<1x64xf32, #tpu.memory_space<vmem>>, vector<1x64xf32>
    %183 = vector.broadcast %182 : vector<1x64xf32> to vector<64x64xf32>
    %184 = arith.addf %181, %183 : vector<64x64xf32>
    %cst_213 = arith.constant 0.000000e+00 : f32
    %185 = vector.broadcast %cst_213 : f32 to vector<64x64xf32>
    %186 = arith.cmpf oge, %179, %185 : vector<64x64xf32>
    %cst_214 = arith.constant 1.000000e-01 : f32
    %187 = vector.broadcast %cst_214 : f32 to vector<64x64xf32>
    %188 = arith.mulf %187, %179 : vector<64x64xf32>
    %189 = arith.select %186, %179, %188 : vector<64x64xi1>, vector<64x64xf32>
    %cst_215 = arith.constant 0.000000e+00 : f32
    %190 = vector.broadcast %cst_215 : f32 to vector<64x64xf32>
    %191 = arith.cmpf oge, %184, %190 : vector<64x64xf32>
    %cst_216 = arith.constant 1.000000e-01 : f32
    %192 = vector.broadcast %cst_216 : f32 to vector<64x64xf32>
    %193 = arith.mulf %192, %184 : vector<64x64xf32>
    %194 = arith.select %191, %184, %193 : vector<64x64xi1>, vector<64x64xf32>
    %195 = arith.maximumf %189, %194 : vector<64x64xf32>
    %196 = vector.shape_cast %195 : vector<64x64xf32> to vector<2x4x2x4x64xf32>
    %197 = vector.extract_strided_slice %196 {offsets = [0, 0, 0, 0, 0], sizes = [2, 4, 1, 4, 64], strides = [1, 1, 1, 1, 1]} : vector<2x4x2x4x64xf32> to vector<2x4x1x4x64xf32>
    %198 = vector.shape_cast %197 : vector<2x4x1x4x64xf32> to vector<2x4x4x64xf32>
    %199 = vector.extract_strided_slice %196 {offsets = [0, 0, 1, 0, 0], sizes = [2, 4, 1, 4, 64], strides = [1, 1, 1, 1, 1]} : vector<2x4x2x4x64xf32> to vector<2x4x1x4x64xf32>
    %200 = vector.shape_cast %199 : vector<2x4x1x4x64xf32> to vector<2x4x4x64xf32>
    %201 = arith.maximumf %198, %200 : vector<2x4x4x64xf32>
    %cst_217 = arith.constant 0.000000e+00 : f32
    %202 = vector.broadcast %cst_217 : f32 to vector<2x496xf32>
    %203 = vector.extract_strided_slice %201 {offsets = [0, 0, 0, 0], sizes = [2, 1, 1, 64], strides = [1, 1, 1, 1]} : vector<2x4x4x64xf32> to vector<2x1x1x64xf32>
    %204 = vector.shape_cast %203 : vector<2x1x1x64xf32> to vector<2x64xf32>
    %205 = arith.truncf %204 : vector<2x64xf32> to vector<2x64xbf16>
    %c0_218 = arith.constant 0 : index
    %c0_219 = arith.constant 0 : index
    %c0_220 = arith.constant 0 : index
    %206 = vector.load %arg6[%c0_218, %c0_219, %c0_220] : memref<16x64x496xbf16, #tpu.memory_space<vmem>>, vector<1x64x496xbf16>
    %207 = vector.shape_cast %206 : vector<1x64x496xbf16> to vector<64x496xbf16>
    %cst_221 = arith.constant dense<0.000000e+00> : vector<2x496xf32>
    %208 = tpu.matmul %205, %207, %cst_221 {dimension_numbers = #tpu.dot_dimension_numbers<[1], [0], [0], [1], [0, 0, 1, 1], [], []>} : vector<2x64xbf16>, vector<64x496xbf16>, vector<2x496xf32> -> vector<2x496xf32>
    %209 = arith.addf %202, %208 : vector<2x496xf32>
    %210 = vector.extract_strided_slice %201 {offsets = [0, 0, 1, 0], sizes = [2, 1, 1, 64], strides = [1, 1, 1, 1]} : vector<2x4x4x64xf32> to vector<2x1x1x64xf32>
    %211 = vector.shape_cast %210 : vector<2x1x1x64xf32> to vector<2x64xf32>
    %212 = arith.truncf %211 : vector<2x64xf32> to vector<2x64xbf16>
    %c1_222 = arith.constant 1 : index
    %c0_223 = arith.constant 0 : index
    %c0_224 = arith.constant 0 : index
    %213 = vector.load %arg6[%c1_222, %c0_223, %c0_224] : memref<16x64x496xbf16, #tpu.memory_space<vmem>>, vector<1x64x496xbf16>
    %214 = vector.shape_cast %213 : vector<1x64x496xbf16> to vector<64x496xbf16>
    %cst_225 = arith.constant dense<0.000000e+00> : vector<2x496xf32>
    %215 = tpu.matmul %212, %214, %cst_225 {dimension_numbers = #tpu.dot_dimension_numbers<[1], [0], [0], [1], [0, 0, 1, 1], [], []>} : vector<2x64xbf16>, vector<64x496xbf16>, vector<2x496xf32> -> vector<2x496xf32>
    %216 = arith.addf %209, %215 : vector<2x496xf32>
    %217 = vector.extract_strided_slice %201 {offsets = [0, 0, 2, 0], sizes = [2, 1, 1, 64], strides = [1, 1, 1, 1]} : vector<2x4x4x64xf32> to vector<2x1x1x64xf32>
    %218 = vector.shape_cast %217 : vector<2x1x1x64xf32> to vector<2x64xf32>
    %219 = arith.truncf %218 : vector<2x64xf32> to vector<2x64xbf16>
    %c2_226 = arith.constant 2 : index
    %c0_227 = arith.constant 0 : index
    %c0_228 = arith.constant 0 : index
    %220 = vector.load %arg6[%c2_226, %c0_227, %c0_228] : memref<16x64x496xbf16, #tpu.memory_space<vmem>>, vector<1x64x496xbf16>
    %221 = vector.shape_cast %220 : vector<1x64x496xbf16> to vector<64x496xbf16>
    %cst_229 = arith.constant dense<0.000000e+00> : vector<2x496xf32>
    %222 = tpu.matmul %219, %221, %cst_229 {dimension_numbers = #tpu.dot_dimension_numbers<[1], [0], [0], [1], [0, 0, 1, 1], [], []>} : vector<2x64xbf16>, vector<64x496xbf16>, vector<2x496xf32> -> vector<2x496xf32>
    %223 = arith.addf %216, %222 : vector<2x496xf32>
    %224 = vector.extract_strided_slice %201 {offsets = [0, 0, 3, 0], sizes = [2, 1, 1, 64], strides = [1, 1, 1, 1]} : vector<2x4x4x64xf32> to vector<2x1x1x64xf32>
    %225 = vector.shape_cast %224 : vector<2x1x1x64xf32> to vector<2x64xf32>
    %226 = arith.truncf %225 : vector<2x64xf32> to vector<2x64xbf16>
    %c3 = arith.constant 3 : index
    %c0_230 = arith.constant 0 : index
    %c0_231 = arith.constant 0 : index
    %227 = vector.load %arg6[%c3, %c0_230, %c0_231] : memref<16x64x496xbf16, #tpu.memory_space<vmem>>, vector<1x64x496xbf16>
    %228 = vector.shape_cast %227 : vector<1x64x496xbf16> to vector<64x496xbf16>
    %cst_232 = arith.constant dense<0.000000e+00> : vector<2x496xf32>
    %229 = tpu.matmul %226, %228, %cst_232 {dimension_numbers = #tpu.dot_dimension_numbers<[1], [0], [0], [1], [0, 0, 1, 1], [], []>} : vector<2x64xbf16>, vector<64x496xbf16>, vector<2x496xf32> -> vector<2x496xf32>
    %230 = arith.addf %223, %229 : vector<2x496xf32>
    %231 = vector.extract_strided_slice %201 {offsets = [0, 1, 0, 0], sizes = [2, 1, 1, 64], strides = [1, 1, 1, 1]} : vector<2x4x4x64xf32> to vector<2x1x1x64xf32>
    %232 = vector.shape_cast %231 : vector<2x1x1x64xf32> to vector<2x64xf32>
    %233 = arith.truncf %232 : vector<2x64xf32> to vector<2x64xbf16>
    %c4 = arith.constant 4 : index
    %c0_233 = arith.constant 0 : index
    %c0_234 = arith.constant 0 : index
    %234 = vector.load %arg6[%c4, %c0_233, %c0_234] : memref<16x64x496xbf16, #tpu.memory_space<vmem>>, vector<1x64x496xbf16>
    %235 = vector.shape_cast %234 : vector<1x64x496xbf16> to vector<64x496xbf16>
    %cst_235 = arith.constant dense<0.000000e+00> : vector<2x496xf32>
    %236 = tpu.matmul %233, %235, %cst_235 {dimension_numbers = #tpu.dot_dimension_numbers<[1], [0], [0], [1], [0, 0, 1, 1], [], []>} : vector<2x64xbf16>, vector<64x496xbf16>, vector<2x496xf32> -> vector<2x496xf32>
    %237 = arith.addf %230, %236 : vector<2x496xf32>
    %238 = vector.extract_strided_slice %201 {offsets = [0, 1, 1, 0], sizes = [2, 1, 1, 64], strides = [1, 1, 1, 1]} : vector<2x4x4x64xf32> to vector<2x1x1x64xf32>
    %239 = vector.shape_cast %238 : vector<2x1x1x64xf32> to vector<2x64xf32>
    %240 = arith.truncf %239 : vector<2x64xf32> to vector<2x64xbf16>
    %c5 = arith.constant 5 : index
    %c0_236 = arith.constant 0 : index
    %c0_237 = arith.constant 0 : index
    %241 = vector.load %arg6[%c5, %c0_236, %c0_237] : memref<16x64x496xbf16, #tpu.memory_space<vmem>>, vector<1x64x496xbf16>
    %242 = vector.shape_cast %241 : vector<1x64x496xbf16> to vector<64x496xbf16>
    %cst_238 = arith.constant dense<0.000000e+00> : vector<2x496xf32>
    %243 = tpu.matmul %240, %242, %cst_238 {dimension_numbers = #tpu.dot_dimension_numbers<[1], [0], [0], [1], [0, 0, 1, 1], [], []>} : vector<2x64xbf16>, vector<64x496xbf16>, vector<2x496xf32> -> vector<2x496xf32>
    %244 = arith.addf %237, %243 : vector<2x496xf32>
    %245 = vector.extract_strided_slice %201 {offsets = [0, 1, 2, 0], sizes = [2, 1, 1, 64], strides = [1, 1, 1, 1]} : vector<2x4x4x64xf32> to vector<2x1x1x64xf32>
    %246 = vector.shape_cast %245 : vector<2x1x1x64xf32> to vector<2x64xf32>
    %247 = arith.truncf %246 : vector<2x64xf32> to vector<2x64xbf16>
    %c6 = arith.constant 6 : index
    %c0_239 = arith.constant 0 : index
    %c0_240 = arith.constant 0 : index
    %248 = vector.load %arg6[%c6, %c0_239, %c0_240] : memref<16x64x496xbf16, #tpu.memory_space<vmem>>, vector<1x64x496xbf16>
    %249 = vector.shape_cast %248 : vector<1x64x496xbf16> to vector<64x496xbf16>
    %cst_241 = arith.constant dense<0.000000e+00> : vector<2x496xf32>
    %250 = tpu.matmul %247, %249, %cst_241 {dimension_numbers = #tpu.dot_dimension_numbers<[1], [0], [0], [1], [0, 0, 1, 1], [], []>} : vector<2x64xbf16>, vector<64x496xbf16>, vector<2x496xf32> -> vector<2x496xf32>
    %251 = arith.addf %244, %250 : vector<2x496xf32>
    %252 = vector.extract_strided_slice %201 {offsets = [0, 1, 3, 0], sizes = [2, 1, 1, 64], strides = [1, 1, 1, 1]} : vector<2x4x4x64xf32> to vector<2x1x1x64xf32>
    %253 = vector.shape_cast %252 : vector<2x1x1x64xf32> to vector<2x64xf32>
    %254 = arith.truncf %253 : vector<2x64xf32> to vector<2x64xbf16>
    %c7 = arith.constant 7 : index
    %c0_242 = arith.constant 0 : index
    %c0_243 = arith.constant 0 : index
    %255 = vector.load %arg6[%c7, %c0_242, %c0_243] : memref<16x64x496xbf16, #tpu.memory_space<vmem>>, vector<1x64x496xbf16>
    %256 = vector.shape_cast %255 : vector<1x64x496xbf16> to vector<64x496xbf16>
    %cst_244 = arith.constant dense<0.000000e+00> : vector<2x496xf32>
    %257 = tpu.matmul %254, %256, %cst_244 {dimension_numbers = #tpu.dot_dimension_numbers<[1], [0], [0], [1], [0, 0, 1, 1], [], []>} : vector<2x64xbf16>, vector<64x496xbf16>, vector<2x496xf32> -> vector<2x496xf32>
    %258 = arith.addf %251, %257 : vector<2x496xf32>
    %259 = vector.extract_strided_slice %201 {offsets = [0, 2, 0, 0], sizes = [2, 1, 1, 64], strides = [1, 1, 1, 1]} : vector<2x4x4x64xf32> to vector<2x1x1x64xf32>
    %260 = vector.shape_cast %259 : vector<2x1x1x64xf32> to vector<2x64xf32>
    %261 = arith.truncf %260 : vector<2x64xf32> to vector<2x64xbf16>
    %c8 = arith.constant 8 : index
    %c0_245 = arith.constant 0 : index
    %c0_246 = arith.constant 0 : index
    %262 = vector.load %arg6[%c8, %c0_245, %c0_246] : memref<16x64x496xbf16, #tpu.memory_space<vmem>>, vector<1x64x496xbf16>
    %263 = vector.shape_cast %262 : vector<1x64x496xbf16> to vector<64x496xbf16>
    %cst_247 = arith.constant dense<0.000000e+00> : vector<2x496xf32>
    %264 = tpu.matmul %261, %263, %cst_247 {dimension_numbers = #tpu.dot_dimension_numbers<[1], [0], [0], [1], [0, 0, 1, 1], [], []>} : vector<2x64xbf16>, vector<64x496xbf16>, vector<2x496xf32> -> vector<2x496xf32>
    %265 = arith.addf %258, %264 : vector<2x496xf32>
    %266 = vector.extract_strided_slice %201 {offsets = [0, 2, 1, 0], sizes = [2, 1, 1, 64], strides = [1, 1, 1, 1]} : vector<2x4x4x64xf32> to vector<2x1x1x64xf32>
    %267 = vector.shape_cast %266 : vector<2x1x1x64xf32> to vector<2x64xf32>
    %268 = arith.truncf %267 : vector<2x64xf32> to vector<2x64xbf16>
    %c9 = arith.constant 9 : index
    %c0_248 = arith.constant 0 : index
    %c0_249 = arith.constant 0 : index
    %269 = vector.load %arg6[%c9, %c0_248, %c0_249] : memref<16x64x496xbf16, #tpu.memory_space<vmem>>, vector<1x64x496xbf16>
    %270 = vector.shape_cast %269 : vector<1x64x496xbf16> to vector<64x496xbf16>
    %cst_250 = arith.constant dense<0.000000e+00> : vector<2x496xf32>
    %271 = tpu.matmul %268, %270, %cst_250 {dimension_numbers = #tpu.dot_dimension_numbers<[1], [0], [0], [1], [0, 0, 1, 1], [], []>} : vector<2x64xbf16>, vector<64x496xbf16>, vector<2x496xf32> -> vector<2x496xf32>
    %272 = arith.addf %265, %271 : vector<2x496xf32>
    %273 = vector.extract_strided_slice %201 {offsets = [0, 2, 2, 0], sizes = [2, 1, 1, 64], strides = [1, 1, 1, 1]} : vector<2x4x4x64xf32> to vector<2x1x1x64xf32>
    %274 = vector.shape_cast %273 : vector<2x1x1x64xf32> to vector<2x64xf32>
    %275 = arith.truncf %274 : vector<2x64xf32> to vector<2x64xbf16>
    %c10 = arith.constant 10 : index
    %c0_251 = arith.constant 0 : index
    %c0_252 = arith.constant 0 : index
    %276 = vector.load %arg6[%c10, %c0_251, %c0_252] : memref<16x64x496xbf16, #tpu.memory_space<vmem>>, vector<1x64x496xbf16>
    %277 = vector.shape_cast %276 : vector<1x64x496xbf16> to vector<64x496xbf16>
    %cst_253 = arith.constant dense<0.000000e+00> : vector<2x496xf32>
    %278 = tpu.matmul %275, %277, %cst_253 {dimension_numbers = #tpu.dot_dimension_numbers<[1], [0], [0], [1], [0, 0, 1, 1], [], []>} : vector<2x64xbf16>, vector<64x496xbf16>, vector<2x496xf32> -> vector<2x496xf32>
    %279 = arith.addf %272, %278 : vector<2x496xf32>
    %280 = vector.extract_strided_slice %201 {offsets = [0, 2, 3, 0], sizes = [2, 1, 1, 64], strides = [1, 1, 1, 1]} : vector<2x4x4x64xf32> to vector<2x1x1x64xf32>
    %281 = vector.shape_cast %280 : vector<2x1x1x64xf32> to vector<2x64xf32>
    %282 = arith.truncf %281 : vector<2x64xf32> to vector<2x64xbf16>
    %c11 = arith.constant 11 : index
    %c0_254 = arith.constant 0 : index
    %c0_255 = arith.constant 0 : index
    %283 = vector.load %arg6[%c11, %c0_254, %c0_255] : memref<16x64x496xbf16, #tpu.memory_space<vmem>>, vector<1x64x496xbf16>
    %284 = vector.shape_cast %283 : vector<1x64x496xbf16> to vector<64x496xbf16>
    %cst_256 = arith.constant dense<0.000000e+00> : vector<2x496xf32>
    %285 = tpu.matmul %282, %284, %cst_256 {dimension_numbers = #tpu.dot_dimension_numbers<[1], [0], [0], [1], [0, 0, 1, 1], [], []>} : vector<2x64xbf16>, vector<64x496xbf16>, vector<2x496xf32> -> vector<2x496xf32>
    %286 = arith.addf %279, %285 : vector<2x496xf32>
    %287 = vector.extract_strided_slice %201 {offsets = [0, 3, 0, 0], sizes = [2, 1, 1, 64], strides = [1, 1, 1, 1]} : vector<2x4x4x64xf32> to vector<2x1x1x64xf32>
    %288 = vector.shape_cast %287 : vector<2x1x1x64xf32> to vector<2x64xf32>
    %289 = arith.truncf %288 : vector<2x64xf32> to vector<2x64xbf16>
    %c12 = arith.constant 12 : index
    %c0_257 = arith.constant 0 : index
    %c0_258 = arith.constant 0 : index
    %290 = vector.load %arg6[%c12, %c0_257, %c0_258] : memref<16x64x496xbf16, #tpu.memory_space<vmem>>, vector<1x64x496xbf16>
    %291 = vector.shape_cast %290 : vector<1x64x496xbf16> to vector<64x496xbf16>
    %cst_259 = arith.constant dense<0.000000e+00> : vector<2x496xf32>
    %292 = tpu.matmul %289, %291, %cst_259 {dimension_numbers = #tpu.dot_dimension_numbers<[1], [0], [0], [1], [0, 0, 1, 1], [], []>} : vector<2x64xbf16>, vector<64x496xbf16>, vector<2x496xf32> -> vector<2x496xf32>
    %293 = arith.addf %286, %292 : vector<2x496xf32>
    %294 = vector.extract_strided_slice %201 {offsets = [0, 3, 1, 0], sizes = [2, 1, 1, 64], strides = [1, 1, 1, 1]} : vector<2x4x4x64xf32> to vector<2x1x1x64xf32>
    %295 = vector.shape_cast %294 : vector<2x1x1x64xf32> to vector<2x64xf32>
    %296 = arith.truncf %295 : vector<2x64xf32> to vector<2x64xbf16>
    %c13 = arith.constant 13 : index
    %c0_260 = arith.constant 0 : index
    %c0_261 = arith.constant 0 : index
    %297 = vector.load %arg6[%c13, %c0_260, %c0_261] : memref<16x64x496xbf16, #tpu.memory_space<vmem>>, vector<1x64x496xbf16>
    %298 = vector.shape_cast %297 : vector<1x64x496xbf16> to vector<64x496xbf16>
    %cst_262 = arith.constant dense<0.000000e+00> : vector<2x496xf32>
    %299 = tpu.matmul %296, %298, %cst_262 {dimension_numbers = #tpu.dot_dimension_numbers<[1], [0], [0], [1], [0, 0, 1, 1], [], []>} : vector<2x64xbf16>, vector<64x496xbf16>, vector<2x496xf32> -> vector<2x496xf32>
    %300 = arith.addf %293, %299 : vector<2x496xf32>
    %301 = vector.extract_strided_slice %201 {offsets = [0, 3, 2, 0], sizes = [2, 1, 1, 64], strides = [1, 1, 1, 1]} : vector<2x4x4x64xf32> to vector<2x1x1x64xf32>
    %302 = vector.shape_cast %301 : vector<2x1x1x64xf32> to vector<2x64xf32>
    %303 = arith.truncf %302 : vector<2x64xf32> to vector<2x64xbf16>
    %c14 = arith.constant 14 : index
    %c0_263 = arith.constant 0 : index
    %c0_264 = arith.constant 0 : index
    %304 = vector.load %arg6[%c14, %c0_263, %c0_264] : memref<16x64x496xbf16, #tpu.memory_space<vmem>>, vector<1x64x496xbf16>
    %305 = vector.shape_cast %304 : vector<1x64x496xbf16> to vector<64x496xbf16>
    %cst_265 = arith.constant dense<0.000000e+00> : vector<2x496xf32>
    %306 = tpu.matmul %303, %305, %cst_265 {dimension_numbers = #tpu.dot_dimension_numbers<[1], [0], [0], [1], [0, 0, 1, 1], [], []>} : vector<2x64xbf16>, vector<64x496xbf16>, vector<2x496xf32> -> vector<2x496xf32>
    %307 = arith.addf %300, %306 : vector<2x496xf32>
    %308 = vector.extract_strided_slice %201 {offsets = [0, 3, 3, 0], sizes = [2, 1, 1, 64], strides = [1, 1, 1, 1]} : vector<2x4x4x64xf32> to vector<2x1x1x64xf32>
    %309 = vector.shape_cast %308 : vector<2x1x1x64xf32> to vector<2x64xf32>
    %310 = arith.truncf %309 : vector<2x64xf32> to vector<2x64xbf16>
    %c15 = arith.constant 15 : index
    %c0_266 = arith.constant 0 : index
    %c0_267 = arith.constant 0 : index
    %311 = vector.load %arg6[%c15, %c0_266, %c0_267] : memref<16x64x496xbf16, #tpu.memory_space<vmem>>, vector<1x64x496xbf16>
    %312 = vector.shape_cast %311 : vector<1x64x496xbf16> to vector<64x496xbf16>
    %cst_268 = arith.constant dense<0.000000e+00> : vector<2x496xf32>
    %313 = tpu.matmul %310, %312, %cst_268 {dimension_numbers = #tpu.dot_dimension_numbers<[1], [0], [0], [1], [0, 0, 1, 1], [], []>} : vector<2x64xbf16>, vector<64x496xbf16>, vector<2x496xf32> -> vector<2x496xf32>
    %314 = arith.addf %307, %313 : vector<2x496xf32>
    %c0_269 = arith.constant 0 : index
    %c0_270 = arith.constant 0 : index
    %315 = vector.load %arg7[%c0_269, %c0_270] : memref<1x496xf32, #tpu.memory_space<vmem>>, vector<1x496xf32>
    %316 = vector.broadcast %315 : vector<1x496xf32> to vector<2x496xf32>
    %317 = arith.addf %314, %316 : vector<2x496xf32>
    %cst_271 = arith.constant 0.000000e+00 : f32
    %318 = vector.broadcast %cst_271 : f32 to vector<2x496xf32>
    %319 = arith.cmpf oge, %317, %318 : vector<2x496xf32>
    %cst_272 = arith.constant 1.000000e-01 : f32
    %320 = vector.broadcast %cst_272 : f32 to vector<2x496xf32>
    %321 = arith.mulf %320, %317 : vector<2x496xf32>
    %322 = arith.select %319, %317, %321 : vector<2x496xi1>, vector<2x496xf32>
    %323 = arith.truncf %322 : vector<2x496xf32> to vector<2x496xbf16>
    %c0_273 = arith.constant 0 : index
    %c0_274 = arith.constant 0 : index
    %324 = vector.load %arg8[%c0_273, %c0_274] : memref<496x52xbf16, #tpu.memory_space<vmem>>, vector<496x52xbf16>
    %cst_275 = arith.constant dense<0.000000e+00> : vector<2x52xf32>
    %325 = tpu.matmul %323, %324, %cst_275 {dimension_numbers = #tpu.dot_dimension_numbers<[1], [0], [0], [1], [0, 0, 1, 1], [], []>} : vector<2x496xbf16>, vector<496x52xbf16>, vector<2x52xf32> -> vector<2x52xf32>
    %c0_276 = arith.constant 0 : index
    %c0_277 = arith.constant 0 : index
    %326 = vector.load %arg9[%c0_276, %c0_277] : memref<1x52xf32, #tpu.memory_space<vmem>>, vector<1x52xf32>
    %327 = vector.broadcast %326 : vector<1x52xf32> to vector<2x52xf32>
    %328 = arith.addf %325, %327 : vector<2x52xf32>
    %c0_278 = arith.constant 0 : index
    %c0_279 = arith.constant 0 : index
    %329 = vector.load %arg10[%c0_278, %c0_279] : memref<2x52xf32, #tpu.memory_space<vmem>>, vector<2x52xf32>
    tpu.vector_store %arg10[%c0_278, %c0_279], %328 {strides = array<i32>} : memref<2x52xf32, #tpu.memory_space<vmem>>, vector<2x52xf32>,
    return
  }
  func.func @transform_0(%arg0: i32) -> (i32, i32) {
    %c0_i32 = arith.constant 0 : i32
    %c0_i32_0 = arith.constant 0 : i32
    %c0_i32_1 = arith.constant 0 : i32
    return %c0_i32, %c0_i32_0 : i32, i32
  }
  func.func @transform_1(%arg0: i32) -> (i32, i32) {
    %c0_i32 = arith.constant 0 : i32
    %c0_i32_0 = arith.constant 0 : i32
    %c0_i32_1 = arith.constant 0 : i32
    return %c0_i32, %c0_i32_0 : i32, i32
  }
  func.func @transform_2(%arg0: i32) -> (i32, i32) {
    %c0_i32 = arith.constant 0 : i32
    %c0_i32_0 = arith.constant 0 : i32
    %c0_i32_1 = arith.constant 0 : i32
    return %c0_i32, %c0_i32_0 : i32, i32
  }
  func.func @transform_3(%arg0: i32) -> (i32, i32) {
    %c0_i32 = arith.constant 0 : i32
    %c0_i32_0 = arith.constant 0 : i32
    %c0_i32_1 = arith.constant 0 : i32
    return %c0_i32, %c0_i32_0 : i32, i32
  }
  func.func @transform_4(%arg0: i32) -> (i32, i32, i32, i32, i32) {
    %c0_i32 = arith.constant 0 : i32
    %c0_i32_0 = arith.constant 0 : i32
    %c0_i32_1 = arith.constant 0 : i32
    %c0_i32_2 = arith.constant 0 : i32
    %c0_i32_3 = arith.constant 0 : i32
    %c0_i32_4 = arith.constant 0 : i32
    return %c0_i32, %c0_i32_0, %c0_i32_1, %c0_i32_2, %c0_i32_3 : i32, i32, i32, i32, i32
  }
  func.func @transform_5(%arg0: i32) -> (i32, i32, i32) {
    %c0_i32 = arith.constant 0 : i32
    %c0_i32_0 = arith.constant 0 : i32
    %c0_i32_1 = arith.constant 0 : i32
    %c0_i32_2 = arith.constant 0 : i32
    return %c0_i32, %c0_i32_0, %c0_i32_1 : i32, i32, i32
  }
  func.func @transform_6(%arg0: i32) -> (i32, i32) {
    %c0_i32 = arith.constant 0 : i32
    %c0_i32_0 = arith.constant 0 : i32
    %c0_i32_1 = arith.constant 0 : i32
    return %c0_i32, %c0_i32_0 : i32, i32
  }
  func.func @transform_7(%arg0: i32) -> (i32, i32) {
    %c0_i32 = arith.constant 0 : i32
    %c0_i32_0 = arith.constant 0 : i32
    %c0_i32_1 = arith.constant 0 : i32
    return %c0_i32, %c0_i32_0 : i32, i32
  }
  func.func @transform_8(%arg0: i32) -> (i32, i32) {
    %c0_i32 = arith.constant 0 : i32
    %c0_i32_0 = arith.constant 0 : i32
    %c0_i32_1 = arith.constant 0 : i32
    return %c0_i32, %c0_i32_0 : i32, i32
  }
  func.func @transform_9(%arg0: i32) -> (i32, i32) {
    %c0_i32 = arith.constant 0 : i32
    %c0_i32_0 = arith.constant 0 : i32
    %c0_i32_1 = arith.constant 0 : i32
    return %c0_i32, %c0_i32_0 : i32, i32
  }
}

</mosaic_0001>

<bundles_post_ra>
// kernel: yolov1_forward.1
= control target key start
LH: loop header
LB: loop body
LE: loop exit
PB: predicated region body
PF: predicated region fallthrough
CT: control target
= control target key end

     0   :  { %v9606_v2 = vmov 0   ;;  %s11571_s0 = inlined_call_operand.vmem [shape: bf16[128,128], index: 0, kind: input, shape index: {}]   ;;  %s11572_s1 = inlined_call_operand.vmem [shape: bf16[128,256], index: 1, kind: input, shape index: {}]   ;;  %s11573_s2 = inlined_call_operand.vmem [shape: f32[1,64], index: 2, kind: input, shape index: {}]   ;;  %s11574_s3 = inlined_call_operand.vmem [shape: f32[1,64], index: 3, kind: input, shape index: {}]   ;;  %s11575_s4 = inlined_call_operand.vmem [shape: bf16[2,3,3,64,128], index: 4, kind: input, shape index: {}]   ;;  %s11576_s5 = inlined_call_operand.vmem [shape: bf16[16,64,496], index: 5, kind: input, shape index: {}]   ;;  %s11577_s6 = inlined_call_operand.vmem [shape: f32[1,496], index: 6, kind: input, shape index: {}]   ;;  %s11578_s7 = inlined_call_operand.vmem [shape: bf16[496,52], index: 7, kind: input, shape index: {}]   ;;  %s11579_s8 = inlined_call_operand.vmem [shape: f32[1,52], index: 8, kind: input, shape index: {}]   ;;  %s11580_s9 = inlined_call_operand.hbm [shape: f32[2,52], index: 9, kind: output, shape index: {}]  }
   0x1   :  { %v8917_v0 = vld [vmem:[%s11572_s1 + $0x4] ss:$8 sps:$4 sm:$0xff]   ;;  %v8919_v1 = vld [vmem:[%s11572_s1] ss:$8 sps:$4 sm:$0xff]   ;;  %226 = vmatprep.mubr.bf16.mxu0 %v9606_v2  ;;  %v8920_v3 = vld [vmem:[%s11572_s1 + $0x14] ss:$8 sps:$4 sm:$0xff]  }
   0x2   :  { %194 = vmatprep.subr.bf16.mxu0 %v8917_v0  ;;  %v8922_v4 = vld [vmem:[%s11572_s1 + $0x10] ss:$8 sps:$4 sm:$0xff]   ;;  %v8923_v5 = vld [vmem:[%s11572_s1 + $0x24] ss:$8 sps:$4 sm:$0xff]   ;;  %v8925_v6 = vld [vmem:[%s11572_s1 + $0x20] ss:$8 sps:$4 sm:$0xff]  }
   0x3   :  { %195 = vmatpush1.bf16.msra.mxu0 %v8919_v1  ;;  %v8926_v7 = vld [vmem:[%s11572_s1 + $0x34] ss:$8 sps:$4 sm:$0xff]   ;;  %v8928_v8 = vld [vmem:[%s11572_s1 + $0x30] ss:$8 sps:$4 sm:$0xff]   ;;  %v8929_v9 = vld [vmem:[%s11572_s1 + $0x44] ss:$8 sps:$4 sm:$0xff]  }
   0x4   :  { %196 = vmatprep.subr.bf16.mxu0 %v8920_v3  ;;  %v8931_v10 = vld [vmem:[%s11572_s1 + $0x40] ss:$8 sps:$4 sm:$0xff]   ;;  %v8932_v11 = vld [vmem:[%s11572_s1 + $0x54] ss:$8 sps:$4 sm:$0xff]   ;;  %v8934_v12 = vld [vmem:[%s11572_s1 + $0x50] ss:$8 sps:$4 sm:$0xff]  }
   0x5   :  { %v8935_v13 = vld [vmem:[%s11572_s1 + $0x64] ss:$8 sps:$4 sm:$0xff]   ;;  %v8937_v14 = vld [vmem:[%s11572_s1 + $0x60] ss:$8 sps:$4 sm:$0xff]   ;;  %v8938_v15 = vld [vmem:[%s11572_s1 + $0x74] ss:$8 sps:$4 sm:$0xff]  }
   0x6   :  { %v8940_v16 = vld [vmem:[%s11572_s1 + $0x70] ss:$8 sps:$4 sm:$0xff]   ;;  %v8941_v17 = vld [vmem:[%s11571_s0] sm:$0xff]   ;;  %v8942_v18 = vld [vmem:[%s11571_s0 + $0x8] sm:$0xff]  }
   0x7   :  { %197 = vmatpush1.bf16.msra.mxu0 %v8922_v4  ;;  %v8943_v19 = vld [vmem:[%s11571_s0 + $0x10] sm:$0xff]   ;;  %v8944_v20 = vld [vmem:[%s11571_s0 + $0x18] sm:$0xff]   ;;  %v8945_v21 = vld [vmem:[%s11571_s0 + $0x20] sm:$0xff]  }
   0x8   :  { %198 = vmatprep.subr.bf16.mxu0 %v8923_v5  ;;  %v8946_v22 = vld [vmem:[%s11571_s0 + $0x28] sm:$0xff]   ;;  %v8947_v23 = vld [vmem:[%s11571_s0 + $0x30] sm:$0xff]   ;;  %v8948_v24 = vld [vmem:[%s11571_s0 + $0x38] sm:$0xff]  }
   0xb   :  { %199 = vmatpush1.bf16.msra.mxu0 %v8925_v6 }
   0xc   :  { %200 = vmatprep.subr.bf16.mxu0 %v8926_v7 }
   0xf   :  { %201 = vmatpush1.bf16.msra.mxu0 %v8928_v8 }
  0x10   :  { %202 = vmatprep.subr.bf16.mxu0 %v8929_v9 }
  0x13   :  { %203 = vmatpush1.bf16.msra.mxu0 %v8931_v10 }
  0x14   :  { %204 = vmatprep.subr.bf16.mxu0 %v8932_v11 }
  0x17   :  { %205 = vmatpush1.bf16.msra.mxu0 %v8934_v12 }
  0x18   :  { %206 = vmatprep.subr.bf16.mxu0 %v8935_v13 }
  0x1b   :  { %207 = vmatpush1.bf16.msra.mxu0 %v8937_v14 }
  0x1c   :  { %208 = vmatprep.subr.bf16.mxu0 %v8938_v15 }
  0x1f   :  { %209 = vmatpush1.bf16.msra.mxu0 %v8940_v16 }
  0x22   :  { %227 = vmatmul.mubr.bf16.vlgmr.msra.gmra.mrb[0].mxu0 %v8941_v17 }
  0x23   :  { %236 = vmatprep.mubr.bf16.mxu0 %v9606_v2 }
  0x2a   :  { %237 = vmatmul.mubr.bf16.gmra.mrb[4].mxu0 %v8942_v18 }
  0x2b   :  { %246 = vmatprep.mubr.bf16.mxu0 %v9606_v2 }
  0x32   :  { %247 = vmatmul.mubr.bf16.gmra.mrb[8].mxu0 %v8943_v19 }
  0x33   :  { %256 = vmatprep.mubr.bf16.mxu0 %v9606_v2 }
  0x3a   :  { %257 = vmatmul.mubr.bf16.gmra.mrb[12].mxu0 %v8944_v20 }
  0x3b   :  { %266 = vmatprep.mubr.bf16.mxu0 %v9606_v2 }
  0x42   :  { %267 = vmatmul.mubr.bf16.gmra.mrb[16].mxu0 %v8945_v21 }
  0x43   :  { %276 = vmatprep.mubr.bf16.mxu0 %v9606_v2 }
  0x4a   :  { %277 = vmatmul.mubr.bf16.gmra.mrb[20].mxu0 %v8946_v22 }
  0x4b   :  { %286 = vmatprep.mubr.bf16.mxu0 %v9606_v2 }
  0x52   :  { %287 = vmatmul.mubr.bf16.gmra.mrb[24].mxu0 %v8947_v23 }
  0x53   :  { %296 = vmatprep.mubr.bf16.mxu0 %v9606_v2 }
  0x5a   :  { %297 = vmatmul.mubr.bf16.gmra.mrb[28].mxu0 %v8948_v24 }
  0x5b   :  { %4211 = vmatprep.mubr.bf16.mxu0 %v9606_v2 }
  0x5c   :  { %14 = vsyncpa [#allocation5], 0  ;;  %vm579_vm0 = vcmask 521216   ;;  %v9607_v25 = vmov 0.0   ;;  %s9608_s0 = smov 64   ;;  %v8949_v46 = vld [vmem:[%s11575_s4 + $0x120] sm:$0xff]  }
  0x5d   :  { %581 = vst.msk [vmem:[#allocation2 + $0x8] sm:$0x3f] %vm579_vm0, %v9607_v25  ;;  %601 = vst.msk [vmem:[#allocation3 + $0x8] sm:$0x3f] %vm579_vm0, %v9607_v25  ;;  %8489 = vmatprep.subr.bf16.mxu1 %v8949_v46  ;;  %v8952_v52 = vld [vmem:[%s11575_s4 + $0x128] sm:$0xff]   ;;  %v8953_v58 = vld [vmem:[%s11575_s4 + $0x130] sm:$0xff]  }
  0x5e   :  { %580 = vst.msk [vmem:[#allocation2] sm:$0x3f] %vm579_vm0, %v9607_v25  ;;  %582 = vst.msk [vmem:[#allocation2 + $0x10] sm:$0x3f] %vm579_vm0, %v9607_v25  ;;  %8490 = vmatpush3.bf16.msra.mxu1 %v8949_v46  ;;  %v8954_v0 = vld [vmem:[%s11575_s4 + $0x138] sm:$0xff]   ;;  %vm621_vm1 = vcmask 519168  }
  0x5f   :  { %583 = vst.msk [vmem:[#allocation2 + $0x18] sm:$0x3f] %vm579_vm0, %v9607_v25  ;;  %584 = vst.msk [vmem:[#allocation2 + $0x20] sm:$0x3f] %vm579_vm0, %v9607_v25  ;;  %8491 = vmatprep.subr.bf16.mxu1 %v8952_v52  ;;  %vm800_vm2 = vcmask 523264   ;;  %vm3722_vm3 = vcmask 1048064  }
  0x60   :  { %585 = vst.msk [vmem:[#allocation2 + $0x28] sm:$0x3f] %vm579_vm0, %v9607_v25  ;;  %586 = vst.msk [vmem:[#allocation2 + $0x30] sm:$0x3f] %vm579_vm0, %v9607_v25  ;;  %s9609_s30 = smov [#allocation4]  }
  0x61   :  { %587 = vst.msk [vmem:[#allocation2 + $0x38] sm:$0x3f] %vm579_vm0, %v9607_v25  ;;  %588 = vst.msk [vmem:[#allocation2 + $0x40] sm:$0x3f] %vm579_vm0, %v9607_v25  ;;  %s7449_s10 = sshll.u32 %s9609_s30, 4  ;;  %s7450_s10 = int_to_ptr.vmem [resolvable:$true] %s7449_s10 }
  0x62   :  { %589 = vst.msk [vmem:[#allocation2 + $0x48] sm:$0x3f] %vm579_vm0, %v9607_v25  ;;  %590 = vst.msk [vmem:[#allocation2 + $0x50] sm:$0x3f] %vm579_vm0, %v9607_v25  ;;  %8492 = vmatpush3.bf16.msra.mxu1 %v8952_v52  ;;  %s9582_s11 = scalar_lea.vmem %s7450_s10, 32  ;;  %p9587_p1 = scmp.lt.s32.totalorder %s7450_s10, %s7450_s10 }
  0x63   :  { %591 = vst.msk [vmem:[#allocation2 + $0x58] sm:$0x3f] %vm579_vm0, %v9607_v25  ;;  %592 = vst.msk [vmem:[#allocation2 + $0x60] sm:$0x3f] %vm579_vm0, %v9607_v25  ;;  %8493 = vmatprep.subr.bf16.mxu1 %v8953_v58  ;;  %p9583_p0 = scmp.ne.s32.totalorder %s7450_s10, %s9582_s11  ;;  %p9588_p2 = scmp.lt.s32.totalorder %s9582_s11, %s9582_s11 }
  0x64   :  { %593 = vst.msk [vmem:[#allocation2 + $0x68] sm:$0x3f] %vm579_vm0, %v9607_v25  ;;  %594 = vst.msk [vmem:[#allocation2 + $0x70] sm:$0x3f] %vm579_vm0, %v9607_v25 }
  0x65   :  { %595 = vst.msk [vmem:[#allocation2 + $0x78] sm:$0x3f] %vm579_vm0, %v9607_v25  ;;  %596 = vst.msk [vmem:[#allocation2 + $0x80] sm:$0x3f] %vm579_vm0, %v9607_v25  ;;  %p9589_p3 = por %p9588_p2, %p9587_p1 }
  0x66   :  { %597 = vst.msk [vmem:[#allocation2 + $0x88] sm:$0x3f] %vm579_vm0, %v9607_v25  ;;  %598 = vst.msk [vmem:[#allocation2 + $0x90] sm:$0x3f] %vm579_vm0, %v9607_v25  ;;  %8494 = vmatpush3.bf16.msra.mxu1 %v8953_v58 }
  0x67   :  { %599 = vst.msk [vmem:[#allocation2 + $0x98] sm:$0x3f] %vm579_vm0, %v9607_v25  ;;  %600 = vst.msk [vmem:[#allocation3] sm:$0x3f] %vm579_vm0, %v9607_v25  ;;  %8495 = vmatprep.subr.bf16.mxu1 %v8954_v0  ;;  %p9590_p4 = pnand %p9589_p3, %p9583_p0 }
  0x68   :  { %602 = vst.msk [vmem:[#allocation3 + $0x10] sm:$0x3f] %vm579_vm0, %v9607_v25  ;;  %603 = vst.msk [vmem:[#allocation3 + $0x18] sm:$0x3f] %vm579_vm0, %v9607_v25 }
  0x69   :  { %604 = vst.msk [vmem:[#allocation3 + $0x20] sm:$0x3f] %vm579_vm0, %v9607_v25  ;;  %605 = vst.msk [vmem:[#allocation3 + $0x28] sm:$0x3f] %vm579_vm0, %v9607_v25 }
  0x6a   :  { %606 = vst.msk [vmem:[#allocation3 + $0x30] sm:$0x3f] %vm579_vm0, %v9607_v25  ;;  %607 = vst.msk [vmem:[#allocation3 + $0x38] sm:$0x3f] %vm579_vm0, %v9607_v25  ;;  %8496 = vmatpush3.bf16.msra.mxu1 %v8954_v0 }
  0x6b   :  { %608 = vst.msk [vmem:[#allocation3 + $0x40] sm:$0x3f] %vm579_vm0, %v9607_v25  ;;  %609 = vst.msk [vmem:[#allocation3 + $0x48] sm:$0x3f] %vm579_vm0, %v9607_v25 }
  0x6c   :  { %610 = vst.msk [vmem:[#allocation3 + $0x50] sm:$0x3f] %vm579_vm0, %v9607_v25  ;;  %611 = vst.msk [vmem:[#allocation3 + $0x58] sm:$0x3f] %vm579_vm0, %v9607_v25 }
  0x6d   :  { %612 = vst.msk [vmem:[#allocation3 + $0x60] sm:$0x3f] %vm579_vm0, %v9607_v25  ;;  %613 = vst.msk [vmem:[#allocation3 + $0x68] sm:$0x3f] %vm579_vm0, %v9607_v25 }
  0x6e   :  { %614 = vst.msk [vmem:[#allocation3 + $0x70] sm:$0x3f] %vm579_vm0, %v9607_v25  ;;  %615 = vst.msk [vmem:[#allocation3 + $0x78] sm:$0x3f] %vm579_vm0, %v9607_v25 }
  0x6f   :  { %616 = vst.msk [vmem:[#allocation3 + $0x80] sm:$0x3f] %vm579_vm0, %v9607_v25  ;;  %617 = vst.msk [vmem:[#allocation3 + $0x88] sm:$0x3f] %vm579_vm0, %v9607_v25 }
  0x70   :  { %618 = vst.msk [vmem:[#allocation3 + $0x90] sm:$0x3f] %vm579_vm0, %v9607_v25  ;;  %619 = vst.msk [vmem:[#allocation3 + $0x98] sm:$0x3f] %vm579_vm0, %v9607_v25 }
  0xf5   :  { %v228_v26 = vpop.f32.mrb[0].mxu0 }
  0xf6   :  { %v230_v27 = vpop.f32.mrb[1].mxu0 }
  0xf7   :  { %v339_v28 = vcombine.low %v228_v26, %v230_v27  ;;  %v340_v29 = vcombine.high %v228_v26, %v230_v27  ;;  %v232_v30 = vpop.f32.mrb[2].mxu0 }
  0xf8   :  { %v234_v31 = vpop.f32.mrb[3].mxu0 }
  0xf9   :  { %v9781_v32 = vmax.f32 %v339_v28, %v340_v29  ;;  %v341_v33 = vcombine.low %v232_v30, %v234_v31  ;;  %v342_v34 = vcombine.high %v232_v30, %v234_v31 }
  0xfb   :  { %v9783_v35 = vmax.f32 %v341_v33, %v342_v34  ;;  %435 = vrot.lane.b32.xlu0 %v9781_v32, %s9608_s0 }
  0xfd   :  { %v238_v36 = vpop.f32.mrb[4].mxu0 }
  0xfe   :  { %v240_v37 = vpop.f32.mrb[5].mxu0 }
  0xff   :  { %v343_v38 = vcombine.low %v238_v36, %v240_v37  ;;  %v344_v39 = vcombine.high %v238_v36, %v240_v37  ;;  %437 = vrot.lane.b32.xlu0 %v9783_v35, %s9608_s0  ;;  %v242_v40 = vpop.f32.mrb[6].mxu0 }
 0x100   :  { %v244_v41 = vpop.f32.mrb[7].mxu0 }
 0x101   :  { %v9789_v42 = vmax.f32 %v343_v38, %v344_v39  ;;  %v345_v43 = vcombine.low %v242_v40, %v244_v41  ;;  %v346_v44 = vcombine.high %v242_v40, %v244_v41  ;;  %v9848_v39 = vld [vmem:[%s11575_s4] sm:$0xff]  }
 0x102   :  { %8505 = vmatprep.subr.bf16.mxu1 %v9848_v39 }
 0x103   :  { %v9791_v45 = vmax.f32 %v345_v43, %v346_v44  ;;  %439 = vrot.lane.b32.xlu1 %v9789_v42, %s9608_s0 }
 0x105   :  { %v248_v47 = vpop.f32.mrb[8].mxu0 }
 0x106   :  { %v250_v48 = vpop.f32.mrb[9].mxu0 }
 0x107   :  { %v347_v49 = vcombine.low %v248_v47, %v250_v48  ;;  %v348_v50 = vcombine.high %v248_v47, %v250_v48  ;;  %441 = vrot.lane.b32.xlu1 %v9791_v45, %s9608_s0  ;;  %v252_v51 = vpop.f32.mrb[10].mxu0 }
 0x108   :  { %v254_v53 = vpop.f32.mrb[11].mxu0 }
 0x109   :  { %v9803_v54 = vmax.f32 %v347_v49, %v348_v50  ;;  %v349_v55 = vcombine.low %v252_v51, %v254_v53  ;;  %v350_v56 = vcombine.high %v252_v51, %v254_v53 }
 0x10b   :  { %v9805_v57 = vmax.f32 %v349_v55, %v350_v56  ;;  %443 = vrot.lane.b32.xlu0 %v9803_v54, %s9608_s0  ;;  %v499_v55 = vrot.slane %v9781_v32, 4 }
 0x10d   :  { %445 = vrot.lane.b32.xlu1 %v9805_v57, %s9608_s0  ;;  %v258_v59 = vpop.f32.mrb[12].mxu0 }
 0x10e   :  { %v260_v60 = vpop.f32.mrb[13].mxu0 }
 0x10f   :  { %v351_v61 = vcombine.low %v258_v59, %v260_v60  ;;  %v352_v62 = vcombine.high %v258_v59, %v260_v60  ;;  %v262_v63 = vpop.f32.mrb[14].mxu0 }
 0x110   :  { %v264_v1 = vpop.f32.mrb[15].mxu0 }
 0x111   :  { %v9817_v3 = vmax.f32 %v351_v61, %v352_v62  ;;  %v353_v4 = vcombine.low %v262_v63, %v264_v1  ;;  %v354_v5 = vcombine.high %v262_v63, %v264_v1  ;;  %v500_v61 = vrot.slane %v9783_v35, 4 }
 0x112   :  { %v501_v1 = vrot.slane %v9789_v42, 4 }
 0x113   :  { %v9819_v6 = vmax.f32 %v353_v4, %v354_v5  ;;  %447 = vrot.lane.b32.xlu0 %v9817_v3, %s9608_s0 }
 0x115   :  { %v268_v7 = vpop.f32.mrb[16].mxu0 }
 0x116   :  { %v270_v8 = vpop.f32.mrb[17].mxu0 }
 0x117   :  { %v355_v9 = vcombine.low %v268_v7, %v270_v8  ;;  %v356_v10 = vcombine.high %v268_v7, %v270_v8  ;;  %v272_v11 = vpop.f32.mrb[18].mxu0  ;;  %v502_v8 = vrot.slane %v9791_v45, 4 }
 0x118   :  { %v274_v12 = vpop.f32.mrb[19].mxu0 }
 0x119   :  { %v9823_v13 = vmax.f32 %v355_v9, %v356_v10  ;;  %v357_v14 = vcombine.low %v272_v11, %v274_v12  ;;  %v358_v15 = vcombine.high %v272_v11, %v274_v12  ;;  %v503_v12 = vrot.slane %v9803_v54, 4 }
 0x11b   :  { %v9825_v16 = vmax.f32 %v357_v14, %v358_v15  ;;  %451 = vrot.lane.b32.xlu1 %v9823_v13, %s9608_s0 }
 0x11d   :  { %453 = vrot.lane.b32.xlu0 %v9825_v16, %s9608_s0  ;;  %v278_v17 = vpop.f32.mrb[20].mxu0 }
 0x11e   :  { %v280_v18 = vpop.f32.mrb[21].mxu0 }
 0x11f   :  { %v359_v19 = vcombine.low %v278_v17, %v280_v18  ;;  %v360_v20 = vcombine.high %v278_v17, %v280_v18  ;;  %v282_v21 = vpop.f32.mrb[22].mxu0 }
 0x120   :  { %v284_v22 = vpop.f32.mrb[23].mxu0 }
 0x121   :  { %v9831_v23 = vmax.f32 %v359_v19, %v360_v20  ;;  %v361_v24 = vcombine.low %v282_v21, %v284_v22  ;;  %v362_v25 = vcombine.high %v282_v21, %v284_v22 }
 0x123   :  { %v9833_v26 = vmax.f32 %v361_v24, %v362_v25  ;;  %455 = vrot.lane.b32.xlu1 %v9831_v23, %s9608_s0 }
 0x125   :  { %457 = vrot.lane.b32.xlu0 %v9833_v26, %s9608_s0  ;;  %v288_v27 = vpop.f32.mrb[24].mxu0 }
 0x126   :  { %v290_v28 = vpop.f32.mrb[25].mxu0 }
 0x127   :  { %v363_v29 = vcombine.low %v288_v27, %v290_v28  ;;  %v364_v30 = vcombine.high %v288_v27, %v290_v28  ;;  %v292_v31 = vpop.f32.mrb[26].mxu0  ;;  %v505_v27 = vrot.slane %v9817_v3, 4 }
 0x128   :  { %v294_v33 = vpop.f32.mrb[27].mxu0 }
 0x129   :  { %v9839_v34 = vmax.f32 %v363_v29, %v364_v30  ;;  %v365_v36 = vcombine.low %v292_v31, %v294_v33  ;;  %v366_v37 = vcombine.high %v292_v31, %v294_v33  ;;  %v507_v31 = vrot.slane %v9823_v13, 4 }
 0x12b   :  { %v9841_v38 = vmax.f32 %v365_v36, %v366_v37  ;;  %459 = vrot.lane.b32.xlu1 %v9839_v34, %s9608_s0 }
 0x12d   :  { %461 = vrot.lane.b32.xlu0 %v9841_v38, %s9608_s0  ;;  %v298_v40 = vpop.f32.mrb[28].mxu0 }
 0x12e   :  { %v300_v41 = vpop.f32.mrb[29].mxu0 }
 0x12f   :  { %v367_v43 = vcombine.low %v298_v40, %v300_v41  ;;  %v368_v44 = vcombine.high %v298_v40, %v300_v41  ;;  %v302_v46 = vpop.f32.mrb[30].mxu0 }
 0x130   :  { %v304_v47 = vpop.f32.mrb[31].mxu0 }
 0x131   :  { %v9853_v48 = vmax.f32 %v367_v43, %v368_v44  ;;  %v369_v49 = vcombine.low %v302_v46, %v304_v47  ;;  %v370_v50 = vcombine.high %v302_v46, %v304_v47  ;;  %449 = vrot.lane.b32.xlu0 %v9819_v6, %s9608_s0 }
 0x133   :  { %v9857_v51 = vmax.f32 %v369_v49, %v370_v50  ;;  %463 = vrot.lane.b32.xlu1 %v9853_v48, %s9608_s0  ;;  %v509_v50 = vrot.slane %v9831_v23, 4 }
 0x137   :  { %465 = vrot.lane.b32.xlu1 %v9857_v51, %s9608_s0 }
 0x16d   :  { %v436_v52 = vpop.permute.xlu0 %435 }
 0x16e   :  { %v483_v53 = vmax.f32 %v9781_v32, %v436_v52  ;;  %v531_v56 = vrot.slane %v436_v52, 4 }
 0x170   :  { %v563_v58 = vmax.f32 %v499_v55, %v531_v56  ;;  %622 = vst.msk [vmem:[#allocation2 + $0x9] sm:$0xf] %vm621_vm1, %v483_v53  ;;  %v8961_v55 = vld [vmem:[%s11575_s4 + $0x10] sm:$0xff]  }
 0x171   :  { %v438_v59 = vpop.permute.xlu0 %437 }
 0x172   :  { %639 = vst.msk [vmem:[#allocation3 + $0x9] sm:$0xf] %vm621_vm1, %v563_v58  ;;  %v484_v60 = vmax.f32 %v9783_v35, %v438_v59  ;;  %v532_v62 = vrot.slane %v438_v59, 4  ;;  %v510_v59 = vrot.slane %v9833_v26, 4 }
 0x174   :  { %v564_v63 = vmax.f32 %v500_v61, %v532_v62  ;;  %623 = vst.msk [vmem:[#allocation2 + $0x11] sm:$0xf] %vm621_vm1, %v484_v60 }
 0x175   :  { %v440_v0 = vpop.permute.xlu1 %439 }
 0x176   :  { %640 = vst.msk [vmem:[#allocation3 + $0x11] sm:$0xf] %vm621_vm1, %v564_v63  ;;  %v485_v32 = vmax.f32 %v9789_v42, %v440_v0  ;;  %v533_v4 = vrot.slane %v440_v0, 4  ;;  %v511_v63 = vrot.slane %v9839_v34, 4 }
 0x178   :  { %v565_v5 = vmax.f32 %v501_v1, %v533_v4  ;;  %624 = vst.msk [vmem:[#allocation2 + $0x19] sm:$0xf] %vm621_vm1, %v485_v32  ;;  %v8967_v32 = vld [vmem:[%s11575_s4 + $0x20] sm:$0xff]  }
 0x179   :  { %v442_v7 = vpop.permute.xlu1 %441  ;;  %v8950_v20 = vld [vmem:[#allocation3] ss:$8 sps:$4 sm:$0xff]  }
 0x17a   :  { %641 = vst.msk [vmem:[#allocation3 + $0x19] sm:$0xf] %vm621_vm1, %v565_v5  ;;  %v486_v35 = vmax.f32 %v9791_v45, %v442_v7  ;;  %v534_v9 = vrot.slane %v442_v7, 4  ;;  %v504_v45 = vrot.slane %v9805_v57, 4  ;;  %v512_v5 = vrot.slane %v9841_v38, 4 }
 0x17c   :  { %v566_v10 = vmax.f32 %v502_v8, %v534_v9  ;;  %625 = vst.msk [vmem:[#allocation2 + $0x21] sm:$0xf] %vm621_vm1, %v486_v35 }
 0x17d   :  { %v444_v11 = vpop.permute.xlu0 %443 }
 0x17e   :  { %642 = vst.msk [vmem:[#allocation3 + $0x21] sm:$0xf] %vm621_vm1, %v566_v10  ;;  %v487_v42 = vmax.f32 %v9803_v54, %v444_v11  ;;  %v535_v14 = vrot.slane %v444_v11, 4  ;;  %v506_v11 = vrot.slane %v9819_v6, 4 }
 0x17f   :  { %v446_v15 = vpop.permute.xlu1 %445 }
 0x180   :  { %v567_v17 = vmax.f32 %v503_v12, %v535_v14  ;;  %626 = vst.msk [vmem:[#allocation2 + $0x29] sm:$0xf] %vm621_vm1, %v487_v42  ;;  %v488_v18 = vmax.f32 %v9805_v57, %v446_v15  ;;  %v536_v19 = vrot.slane %v446_v15, 4 }
 0x181   :  { %v8951_v21 = vld [vmem:[#allocation3 + $0x10] ss:$8 sps:$4 sm:$0xff]  }
 0x182   :  { %643 = vst.msk [vmem:[#allocation3 + $0x29] sm:$0xf] %vm621_vm1, %v567_v17  ;;  %v568_v22 = vmax.f32 %v504_v45, %v536_v19  ;;  %627 = vst.msk [vmem:[#allocation2 + $0x31] sm:$0xf] %vm621_vm1, %v488_v18  ;;  %v763_v24 = vpack.c.bf16 %v8951_v21, %v8950_v20  ;;  %v513_v17 = vrot.slane %v9853_v48, 4  ;;  %v514_v20 = vrot.slane %v9857_v51, 4 }
 0x184   :  { %644 = vst.msk [vmem:[#allocation3 + $0x31] sm:$0xf] %vm621_vm1, %v568_v22  ;;  %8497 = vmatprep.mubr.msk.bf16.mxu1 %vm800_vm2, %v763_v24  ;;  %v8965_v24 = vld [vmem:[#allocation2 + $0x10] ss:$8 sps:$4 sm:$0xff]  }
 0x185   :  { %v448_v54 = vpop.permute.xlu0 %447 }
 0x186   :  { %v489_v25 = vmax.f32 %v9817_v3, %v448_v54  ;;  %v537_v57 = vrot.slane %v448_v54, 4  ;;  %v508_v3 = vrot.slane %v9825_v16, 4 }
 0x188   :  { %v569_v28 = vmax.f32 %v505_v27, %v537_v57  ;;  %628 = vst.msk [vmem:[#allocation2 + $0x39] sm:$0xf] %vm621_vm1, %v489_v25  ;;  %v8964_v25 = vld [vmem:[#allocation2] ss:$8 sps:$4 sm:$0xff]  }
 0x189   :  { %v8955_v43 = vld [vmem:[#allocation3 + $0x20] ss:$8 sps:$4 sm:$0xff]   ;;  %v719_v57 = vpack.c.bf16 %v8965_v24, %v8964_v25 }
 0x18a   :  { %645 = vst.msk [vmem:[#allocation3 + $0x39] sm:$0xf] %vm621_vm1, %v569_v28 }
 0x18d   :  { %v452_v29 = vpop.permute.xlu1 %451 }
 0x18e   :  { %v491_v30 = vmax.f32 %v9823_v13, %v452_v29  ;;  %v539_v33 = vrot.slane %v452_v29, 4  ;;  %v8960_v13 = vld [vmem:[%s11575_s4 + $0x8] sm:$0xff]  }
 0x18f   :  { %v454_v36 = vpop.permute.xlu0 %453  ;;  %v8969_v28 = vld [vmem:[#allocation2 + $0x30] ss:$8 sps:$4 sm:$0xff]  }
 0x190   :  { %v571_v37 = vmax.f32 %v507_v31, %v539_v33  ;;  %630 = vst.msk [vmem:[#allocation2 + $0x59] sm:$0xf] %vm621_vm1, %v491_v30  ;;  %v492_v40 = vmax.f32 %v9825_v16, %v454_v36  ;;  %v540_v41 = vrot.slane %v454_v36, 4  ;;  %v8968_v30 = vld [vmem:[#allocation2 + $0x20] ss:$8 sps:$4 sm:$0xff]  }
 0x191   :  { %v8956_v44 = vld [vmem:[#allocation3 + $0x30] ss:$8 sps:$4 sm:$0xff]   ;;  %v720_v31 = vpack.c.bf16 %v8969_v28, %v8968_v30  ;;  %v8972_v33 = vld [vmem:[%s11575_s4 + $0x28] sm:$0xff]   ;;  %v9015_v28 = vld [vmem:[%s11575_s4 + $0x60] sm:$0xff]  }
 0x192   :  { %647 = vst.msk [vmem:[#allocation3 + $0x59] sm:$0xf] %vm621_vm1, %v571_v37  ;;  %v572_v46 = vmax.f32 %v508_v3, %v540_v41  ;;  %631 = vst.msk [vmem:[#allocation2 + $0x61] sm:$0xf] %vm621_vm1, %v492_v40  ;;  %v764_v47 = vpack.c.bf16 %v8956_v44, %v8955_v43  ;;  %v8973_v37 = vld [vmem:[%s11575_s4 + $0x30] sm:$0xff]  }
 0x193   :  { %v8977_v41 = vld [vmem:[#allocation2 + $0x11] ss:$8 sps:$4 sm:$0xff]   ;;  %v8976_v43 = vld [vmem:[#allocation2 + $0x1] ss:$8 sps:$4 sm:$0xff]  }
 0x194   :  { %648 = vst.msk [vmem:[#allocation3 + $0x61] sm:$0xf] %vm621_vm1, %v572_v46  ;;  %8498 = vmatmul.mubr.msk.bf16.vlgmr.msra.gmra.mrb[0].mxu1 %vm800_vm2, %v764_v47  ;;  %v8978_v46 = vld [vmem:[%s11575_s4 + $0x38] sm:$0xff]   ;;  %v1043_v47 = vpack.c.bf16 %v8977_v41, %v8976_v43 }
 0x195   :  { %v456_v49 = vpop.permute.xlu1 %455  ;;  %8506 = vmatpush3.bf16.msra.mxu1 %v9848_v39  ;;  %v8966_v39 = vld [vmem:[%s11575_s4 + $0x18] sm:$0xff]  }
 0x196   :  { %v493_v16 = vmax.f32 %v9831_v23, %v456_v49  ;;  %v541_v52 = vrot.slane %v456_v49, 4  ;;  %8507 = vmatprep.subr.bf16.mxu1 %v8960_v13  ;;  %v8981_v49 = vld [vmem:[#allocation2 + $0x31] ss:$8 sps:$4 sm:$0xff]  }
 0x197   :  { %v458_v53 = vpop.permute.xlu0 %457  ;;  %v9025_v41 = vld [vmem:[#allocation2 + $0x18] ss:$8 sps:$4 sm:$0xff]  }
 0x198   :  { %v573_v56 = vmax.f32 %v509_v50, %v541_v52  ;;  %632 = vst.msk [vmem:[#allocation2 + $0x69] sm:$0xf] %vm621_vm1, %v493_v16  ;;  %v494_v58 = vmax.f32 %v9833_v26, %v458_v53  ;;  %v542_v60 = vrot.slane %v458_v53, 4  ;;  %v8980_v50 = vld [vmem:[#allocation2 + $0x21] ss:$8 sps:$4 sm:$0xff]  }
 0x199   :  { %8508 = vmatpush3.bf16.msra.mxu1 %v8960_v13  ;;  %v8957_v35 = vld [vmem:[#allocation3 + $0x50] ss:$8 sps:$4 sm:$0xff]   ;;  %v8979_v13 = vld [vmem:[%s11575_s4 + $0x140] sm:$0xff]   ;;  %v1044_v53 = vpack.c.bf16 %v8981_v49, %v8980_v50 }
 0x19a   :  { %649 = vst.msk [vmem:[#allocation3 + $0x69] sm:$0xf] %vm621_vm1, %v573_v56  ;;  %v574_v23 = vmax.f32 %v510_v59, %v542_v60  ;;  %633 = vst.msk [vmem:[#allocation2 + $0x71] sm:$0xf] %vm621_vm1, %v494_v58  ;;  %8509 = vmatprep.subr.bf16.mxu1 %v8961_v55  ;;  %v8982_v52 = vld [vmem:[#allocation2 + $0x51] ss:$8 sps:$4 sm:$0xff]  }
 0x19b   :  { %v8985_v58 = vld [vmem:[%s11575_s4 + $0x150] sm:$0xff]   ;;  %v9027_v49 = vld [vmem:[%s11575_s4 + $0x180] sm:$0xff]  }
 0x19c   :  { %650 = vst.msk [vmem:[#allocation3 + $0x71] sm:$0xf] %vm621_vm1, %v574_v23  ;;  %v8989_v60 = vld [vmem:[#allocation3 + $0x11] ss:$8 sps:$4 sm:$0xff]  }
 0x19d   :  { %v460_v61 = vpop.permute.xlu1 %459  ;;  %8510 = vmatpush3.bf16.msra.mxu1 %v8961_v55  ;;  %v8984_v55 = vld [vmem:[%s11575_s4 + $0x148] sm:$0xff]  }
 0x19e   :  { %v495_v62 = vmax.f32 %v9839_v34, %v460_v61  ;;  %v543_v26 = vrot.slane %v460_v61, 4  ;;  %8511 = vmatprep.subr.bf16.mxu1 %v8966_v39 }
 0x19f   :  { %v462_v0 = vpop.permute.xlu0 %461  ;;  %v8971_v29 = vld [vmem:[#allocation2 + $0x60] ss:$8 sps:$4 sm:$0xff]  }
 0x1a0   :  { %v575_v1 = vmax.f32 %v511_v63, %v543_v26  ;;  %634 = vst.msk [vmem:[#allocation2 + $0x79] sm:$0xf] %vm621_vm1, %v495_v62  ;;  %v496_v4 = vmax.f32 %v9841_v38, %v462_v0  ;;  %v544_v7 = vrot.slane %v462_v0, 4  ;;  %v8983_v16 = vld [vmem:[#allocation2 + $0x61] ss:$8 sps:$4 sm:$0xff]   ;;  %v8990_v62 = vld [vmem:[%s11575_s4 + $0x158] sm:$0xff]  }
 0x1a1   :  { %v8958_v8 = vld [vmem:[#allocation3 + $0x60] ss:$8 sps:$4 sm:$0xff]   ;;  %8512 = vmatpush3.bf16.msra.mxu1 %v8966_v39  ;;  %v1045_v56 = vpack.c.bf16 %v8983_v16, %v8982_v52  ;;  %v8993_v0 = vld [vmem:[#allocation3 + $0x31] ss:$8 sps:$4 sm:$0xff]  }
 0x1a2   :  { %651 = vst.msk [vmem:[#allocation3 + $0x79] sm:$0xf] %vm621_vm1, %v575_v1  ;;  %v576_v34 = vmax.f32 %v512_v5, %v544_v7  ;;  %635 = vst.msk [vmem:[#allocation2 + $0x81] sm:$0xf] %vm621_vm1, %v496_v4  ;;  %v765_v10 = vpack.c.bf16 %v8958_v8, %v8957_v35  ;;  %8521 = vmatprep.subr.bf16.mxu1 %v8967_v32  ;;  %v8988_v39 = vld [vmem:[#allocation3 + $0x1] ss:$8 sps:$4 sm:$0xff]  }
 0x1a3   :  { %v450_v9 = vpop.permute.xlu0 %449  ;;  %v1197_v63 = vpack.c.bf16 %v8989_v60, %v8988_v39  ;;  %v8991_v26 = vld [vmem:[%s11575_s4 + $0x40] sm:$0xff]   ;;  %v8994_v4 = vld [vmem:[#allocation3 + $0x51] ss:$8 sps:$4 sm:$0xff]   ;;  %v8996_v7 = vld [vmem:[%s11575_s4 + $0x48] sm:$0xff]  }
 0x1a4   :  { %652 = vst.msk [vmem:[#allocation3 + $0x81] sm:$0xf] %vm621_vm1, %v576_v34  ;;  %v490_v42 = vmax.f32 %v9819_v6, %v450_v9  ;;  %v538_v12 = vrot.slane %v450_v9, 4  ;;  %8501 = vmatprep.mubr.msk.bf16.mxu1 %vm800_vm2, %v765_v10  ;;  %v8992_v1 = vld [vmem:[#allocation3 + $0x21] ss:$8 sps:$4 sm:$0xff]   ;;  %v8997_v8 = vld [vmem:[%s11575_s4 + $0x50] sm:$0xff]  }
 0x1a5   :  { %v464_v38 = vpop.permute.xlu1 %463  ;;  %v1198_v5 = vpack.c.bf16 %v8993_v0, %v8992_v1  ;;  %v9001_v9 = vld [vmem:[#allocation2 + $0x12] ss:$8 sps:$4 sm:$0xff]   ;;  %v9019_v30 = vld [vmem:[#allocation3 + $0x62] ss:$8 sps:$4 sm:$0xff]  }
 0x1a6   :  { %v570_v14 = vmax.f32 %v506_v11, %v538_v12  ;;  %629 = vst.msk [vmem:[#allocation2 + $0x41] sm:$0xf] %vm621_vm1, %v490_v42  ;;  %v497_v15 = vmax.f32 %v9853_v48, %v464_v38  ;;  %v545_v18 = vrot.slane %v464_v38, 4  ;;  %v9000_v11 = vld [vmem:[#allocation2 + $0x2] ss:$8 sps:$4 sm:$0xff]   ;;  %v9002_v12 = vld [vmem:[%s11575_s4 + $0x58] sm:$0xff]  }
 0x1a7   :  { %v8974_v3 = vld [vmem:[#allocation2 + $0x70] ss:$8 sps:$4 sm:$0xff]   ;;  %v1383_v38 = vpack.c.bf16 %v9001_v9, %v9000_v11  ;;  %v9039_v0 = vld [vmem:[%s11575_s4 + $0x80] sm:$0xff]  }
 0x1a8   :  { %646 = vst.msk [vmem:[#allocation3 + $0x41] sm:$0xf] %vm621_vm1, %v570_v14  ;;  %v577_v45 = vmax.f32 %v513_v17, %v545_v18  ;;  %636 = vst.msk [vmem:[#allocation2 + $0x89] sm:$0xf] %vm621_vm1, %v497_v15  ;;  %v8986_v23 = vld [vmem:[#allocation2 + $0x71] ss:$8 sps:$4 sm:$0xff]  }
 0x1a9   :  { %v466_v19 = vpop.permute.xlu1 %465  ;;  %v8962_v48 = vld [vmem:[#allocation3 + $0x70] ss:$8 sps:$4 sm:$0xff]   ;;  %v9003_v14 = vld [vmem:[%s11575_s4 + $0x160] sm:$0xff]  }
 0x1aa   :  { %653 = vst.msk [vmem:[#allocation3 + $0x89] sm:$0xf] %vm621_vm1, %v577_v45  ;;  %v498_v6 = vmax.f32 %v9857_v51, %v466_v19  ;;  %v546_v21 = vrot.slane %v466_v19, 4  ;;  %v8970_v51 = vld [vmem:[#allocation2 + $0x50] ss:$8 sps:$4 sm:$0xff]  }
 0x1ab   :  { %v721_v36 = vpack.c.bf16 %v8971_v29, %v8970_v51  ;;  %v8998_v10 = vld [vmem:[#allocation3 + $0x71] ss:$8 sps:$4 sm:$0xff]   ;;  %v9007_v17 = vld [vmem:[#allocation2 + $0x62] ss:$8 sps:$4 sm:$0xff]  }
 0x1ac   :  { %v578_v22 = vmax.f32 %v514_v20, %v546_v21  ;;  %637 = vst.msk [vmem:[#allocation2 + $0x91] sm:$0xf] %vm621_vm1, %v498_v6  ;;  %v9005_v15 = vld [vmem:[#allocation2 + $0x32] ss:$8 sps:$4 sm:$0xff]   ;;  %v9004_v18 = vld [vmem:[#allocation2 + $0x22] ss:$8 sps:$4 sm:$0xff]  }
 0x1ad   :  { %v9006_v45 = vld [vmem:[#allocation2 + $0x52] ss:$8 sps:$4 sm:$0xff]   ;;  %v1384_v19 = vpack.c.bf16 %v9005_v15, %v9004_v18  ;;  %v9008_v6 = vld [vmem:[%s11575_s4 + $0x168] sm:$0xff]   ;;  %v9051_v15 = vld [vmem:[%s11575_s4 + $0x1a0] sm:$0xff]  }
 0x1ae   :  { %654 = vst.msk [vmem:[#allocation3 + $0x91] sm:$0xf] %vm621_vm1, %v578_v22  ;;  %v1385_v20 = vpack.c.bf16 %v9007_v17, %v9006_v45  ;;  %v9009_v21 = vld [vmem:[%s11575_s4 + $0x170] sm:$0xff]   ;;  %v9016_v51 = vld [vmem:[#allocation3 + $0x22] ss:$8 sps:$4 sm:$0xff]  }
 0x1af   :  { %v8975_v40 = vld [vmem:[#allocation2 + $0x80] ss:$8 sps:$4 sm:$0xff]   ;;  %v9010_v24 = vld [vmem:[#allocation2 + $0x72] ss:$8 sps:$4 sm:$0xff]  }
 0x1b0   :  { %v722_v44 = vpack.c.bf16 %v8975_v40, %v8974_v3  ;;  %v8987_v59 = vld [vmem:[#allocation2 + $0x81] ss:$8 sps:$4 sm:$0xff]   ;;  %v9017_v29 = vld [vmem:[#allocation3 + $0x32] ss:$8 sps:$4 sm:$0xff]  }
 0x1b1   :  { %v8963_v54 = vld [vmem:[#allocation3 + $0x80] ss:$8 sps:$4 sm:$0xff]   ;;  %v1046_v61 = vpack.c.bf16 %v8987_v59, %v8986_v23  ;;  %v9021_v40 = vld [vmem:[%s11575_s4 + $0x70] sm:$0xff]  }
 0x1b2   :  { %v766_v27 = vpack.c.bf16 %v8963_v54, %v8962_v48  ;;  %v8999_v34 = vld [vmem:[#allocation3 + $0x81] ss:$8 sps:$4 sm:$0xff]   ;;  %v9013_v48 = vld [vmem:[#allocation3 + $0x12] ss:$8 sps:$4 sm:$0xff]  }
 0x1b3   :  { %v1200_v42 = vpack.c.bf16 %v8999_v34, %v8998_v10  ;;  %v9011_v22 = vld [vmem:[#allocation2 + $0x82] ss:$8 sps:$4 sm:$0xff]   ;;  %v9022_v43 = vld [vmem:[#allocation3 + $0x72] ss:$8 sps:$4 sm:$0xff]  }
 0x1b4   :  { %8502 = vmatmul.mubr.msk.bf16.gmra.mrb[4].mxu1 %vm800_vm2, %v766_v27  ;;  %v9012_v54 = vld [vmem:[#allocation3 + $0x2] ss:$8 sps:$4 sm:$0xff]   ;;  %v1386_v25 = vpack.c.bf16 %v9011_v22, %v9010_v24  ;;  %v9014_v27 = vld [vmem:[%s11575_s4 + $0x178] sm:$0xff]   ;;  %v9033_v59 = vld [vmem:[%s11575_s4 + $0x190] sm:$0xff]  }
 0x1b5   :  { %8513 = vmatprep.mubr.msk.bf16.mxu1 %vm800_vm2, %v719_v57  ;;  %v1537_v57 = vpack.c.bf16 %v9013_v48, %v9012_v54  ;;  %v9023_v3 = vld [vmem:[#allocation3 + $0x82] ss:$8 sps:$4 sm:$0xff]   ;;  %v9045_v34 = vld [vmem:[%s11575_s4 + $0x90] sm:$0xff]  }
 0x1b6   :  { %v9029_v16 = vld [vmem:[#allocation2 + $0x38] ss:$8 sps:$4 sm:$0xff]   ;;  %v9031_v50 = vld [vmem:[#allocation2 + $0x68] ss:$8 sps:$4 sm:$0xff]  }
 0x1b7   :  { %v9028_v52 = vld [vmem:[#allocation2 + $0x28] ss:$8 sps:$4 sm:$0xff]   ;;  %v9037_v23 = vld [vmem:[#allocation3 + $0x18] ss:$8 sps:$4 sm:$0xff]  }
 0x1b8   :  { %v9035_v60 = vld [vmem:[#allocation2 + $0x88] ss:$8 sps:$4 sm:$0xff]   ;;  %v9034_v39 = vld [vmem:[#allocation2 + $0x78] ss:$8 sps:$4 sm:$0xff]  }
 0x1b9   :  { %v9043_v1 = vld [vmem:[#allocation3 + $0x68] ss:$8 sps:$4 sm:$0xff]   ;;  %v9049_v10 = vld [vmem:[#allocation2 + $0x19] ss:$8 sps:$4 sm:$0xff]  }
 0x1ba   :  { %v9047_v9 = vld [vmem:[#allocation3 + $0x88] ss:$8 sps:$4 sm:$0xff]   ;;  %v9046_v11 = vld [vmem:[#allocation3 + $0x78] ss:$8 sps:$4 sm:$0xff]  }
 0x1bb   :  { %v9053_v17 = vld [vmem:[#allocation2 + $0x39] ss:$8 sps:$4 sm:$0xff]   ;;  %v9055_v18 = vld [vmem:[#allocation2 + $0x69] ss:$8 sps:$4 sm:$0xff]  }
 0x1bc   :  { %8514 = vmatmul.mubr.msk.bf16.vlgmr.msra.gmra.mrb[0].mxu1 %vm800_vm2, %v720_v31  ;;  %v9018_v31 = vld [vmem:[#allocation3 + $0x52] ss:$8 sps:$4 sm:$0xff]  }
 0x1bd   :  { %8522 = vmatpush3.bf16.msra.mxu1 %v8967_v32  ;;  %8517 = vmatprep.mubr.msk.bf16.mxu1 %vm800_vm2, %v721_v36  ;;  %v8995_v32 = vld [vmem:[#allocation3 + $0x61] ss:$8 sps:$4 sm:$0xff]   ;;  %v9057_v22 = vld [vmem:[%s11575_s4 + $0x1b0] sm:$0xff]  }
 0x1be   :  { %8523 = vmatprep.subr.bf16.mxu1 %v8972_v33  ;;  %v1199_v35 = vpack.c.bf16 %v8995_v32, %v8994_v4  ;;  %v9020_v36 = vld [vmem:[%s11575_s4 + $0x68] sm:$0xff]   ;;  %v9041_v32 = vld [vmem:[#allocation3 + $0x38] ss:$8 sps:$4 sm:$0xff]  }
 0x1bf   :  { %v9040_v4 = vld [vmem:[#allocation3 + $0x28] ss:$8 sps:$4 sm:$0xff]   ;;  %v9061_v24 = vld [vmem:[#allocation3 + $0x19] ss:$8 sps:$4 sm:$0xff]  }
 0x1c0   :  { %v9052_v45 = vld [vmem:[#allocation2 + $0x29] ss:$8 sps:$4 sm:$0xff]   ;;  %v9058_v54 = vld [vmem:[#allocation2 + $0x79] ss:$8 sps:$4 sm:$0xff]  }
 0x1c1   :  { %8524 = vmatpush3.bf16.msra.mxu1 %v8972_v33  ;;  %v1538_v33 = vpack.c.bf16 %v9017_v29, %v9016_v51  ;;  %v9059_v48 = vld [vmem:[#allocation2 + $0x89] ss:$8 sps:$4 sm:$0xff]   ;;  %v9063_v29 = vld [vmem:[%s11575_s4 + $0xa0] sm:$0xff]  }
 0x1c2   :  { %8525 = vmatprep.subr.bf16.mxu1 %v8973_v37  ;;  %v9067_v51 = vld [vmem:[#allocation3 + $0x69] ss:$8 sps:$4 sm:$0xff]  }
 0x1c4   :  { %8518 = vmatmul.mubr.msk.bf16.gmra.mrb[4].mxu1 %vm800_vm2, %v722_v44  ;;  %v9024_v44 = vld [vmem:[#allocation2 + $0x8] ss:$8 sps:$4 sm:$0xff]  }
 0x1c5   :  { %8526 = vmatpush3.bf16.msra.mxu1 %v8973_v37  ;;  %8529 = vmatprep.mubr.msk.bf16.mxu1 %vm800_vm2, %v1043_v47  ;;  %v1539_v37 = vpack.c.bf16 %v9019_v30, %v9018_v31  ;;  %v9026_v47 = vld [vmem:[%s11575_s4 + $0x78] sm:$0xff]   ;;  %v9064_v31 = vld [vmem:[#allocation3 + $0x29] ss:$8 sps:$4 sm:$0xff]  }
 0x1c6   :  { %8527 = vmatprep.subr.bf16.mxu1 %v8978_v46  ;;  %v9065_v30 = vld [vmem:[#allocation3 + $0x39] ss:$8 sps:$4 sm:$0xff]  }
 0x1c9   :  { %8528 = vmatpush3.bf16.msra.mxu1 %v8978_v46  ;;  %v1540_v46 = vpack.c.bf16 %v9023_v3, %v9022_v43  ;;  %v9069_v3 = vld [vmem:[%s11575_s4 + $0xb0] sm:$0xff]   ;;  %v9073_v43 = vld [vmem:[#allocation2 + $0x1a] ss:$8 sps:$4 sm:$0xff]  }
 0x1ca   :  { %8537 = vmatprep.subr.bf16.mxu1 %v8979_v13 }
 0x1cc   :  { %8530 = vmatmul.mubr.msk.bf16.vlgmr.msra.gmra.mrb[0].mxu1 %vm800_vm2, %v1044_v53  ;;  %v9030_v53 = vld [vmem:[#allocation2 + $0x58] ss:$8 sps:$4 sm:$0xff]  }
 0x1cd   :  { %8538 = vmatpush3.bf16.msra.mxu1 %v8979_v13  ;;  %8533 = vmatprep.mubr.msk.bf16.mxu1 %vm800_vm2, %v1045_v56  ;;  %v1723_v13 = vpack.c.bf16 %v9025_v41, %v9024_v44  ;;  %v9032_v56 = vld [vmem:[%s11575_s4 + $0x188] sm:$0xff]   ;;  %v9070_v44 = vld [vmem:[#allocation3 + $0x79] ss:$8 sps:$4 sm:$0xff]  }
 0x1ce   :  { %8539 = vmatprep.subr.bf16.mxu1 %v8984_v55  ;;  %v9071_v41 = vld [vmem:[#allocation3 + $0x89] ss:$8 sps:$4 sm:$0xff]  }
 0x1d1   :  { %8540 = vmatpush3.bf16.msra.mxu1 %v8984_v55  ;;  %v1724_v55 = vpack.c.bf16 %v9029_v16, %v9028_v52  ;;  %v9075_v16 = vld [vmem:[%s11575_s4 + $0x1c0] sm:$0xff]   ;;  %v9079_v52 = vld [vmem:[#allocation2 + $0x6a] ss:$8 sps:$4 sm:$0xff]  }
 0x1d2   :  { %8541 = vmatprep.subr.bf16.mxu1 %v8985_v58 }
 0x1d4   :  { %8534 = vmatmul.mubr.msk.bf16.gmra.mrb[4].mxu1 %vm800_vm2, %v1046_v61  ;;  %v9036_v61 = vld [vmem:[#allocation3 + $0x8] ss:$8 sps:$4 sm:$0xff]  }
 0x1d5   :  { %8542 = vmatpush3.bf16.msra.mxu1 %v8985_v58  ;;  %8545 = vmatprep.mubr.msk.bf16.mxu1 %vm800_vm2, %v1197_v63  ;;  %v1725_v58 = vpack.c.bf16 %v9031_v50, %v9030_v53  ;;  %v9038_v63 = vld [vmem:[%s11575_s4 + $0x198] sm:$0xff]   ;;  %v9076_v53 = vld [vmem:[#allocation2 + $0x2a] ss:$8 sps:$4 sm:$0xff]  }
 0x1d6   :  { %8543 = vmatprep.subr.bf16.mxu1 %v8990_v62  ;;  %v9077_v50 = vld [vmem:[#allocation2 + $0x3a] ss:$8 sps:$4 sm:$0xff]  }
 0x1d9   :  { %8544 = vmatpush3.bf16.msra.mxu1 %v8990_v62  ;;  %v1726_v62 = vpack.c.bf16 %v9035_v60, %v9034_v39  ;;  %v9081_v60 = vld [vmem:[%s11575_s4 + $0x1d0] sm:$0xff]   ;;  %v9085_v39 = vld [vmem:[#allocation3 + $0x1a] ss:$8 sps:$4 sm:$0xff]  }
 0x1da   :  { %8553 = vmatprep.subr.bf16.mxu1 %v8991_v26 }
 0x1dc   :  { %8546 = vmatmul.mubr.msk.bf16.vlgmr.msra.gmra.mrb[0].mxu1 %vm800_vm2, %v1198_v5  ;;  %v9042_v5 = vld [vmem:[#allocation3 + $0x58] ss:$8 sps:$4 sm:$0xff]  }
 0x1dd   :  { %8554 = vmatpush3.bf16.msra.mxu1 %v8991_v26  ;;  %8549 = vmatprep.mubr.msk.bf16.mxu1 %vm800_vm2, %v1199_v35  ;;  %v1877_v26 = vpack.c.bf16 %v9037_v23, %v9036_v61  ;;  %v9044_v35 = vld [vmem:[%s11575_s4 + $0x88] sm:$0xff]   ;;  %v9082_v61 = vld [vmem:[#allocation2 + $0x7a] ss:$8 sps:$4 sm:$0xff]  }
 0x1de   :  { %8555 = vmatprep.subr.bf16.mxu1 %v8996_v7  ;;  %v9083_v23 = vld [vmem:[#allocation2 + $0x8a] ss:$8 sps:$4 sm:$0xff]  }
 0x1e1   :  { %8556 = vmatpush3.bf16.msra.mxu1 %v8996_v7  ;;  %v1878_v7 = vpack.c.bf16 %v9041_v32, %v9040_v4  ;;  %v9087_v32 = vld [vmem:[%s11575_s4 + $0xc0] sm:$0xff]   ;;  %v9091_v4 = vld [vmem:[#allocation3 + $0x6a] ss:$8 sps:$4 sm:$0xff]  }
 0x1e2   :  { %8557 = vmatprep.subr.bf16.mxu1 %v8997_v8 }
 0x1e4   :  { %8550 = vmatmul.mubr.msk.bf16.gmra.mrb[4].mxu1 %vm800_vm2, %v1200_v42  ;;  %v9048_v42 = vld [vmem:[#allocation2 + $0x9] ss:$8 sps:$4 sm:$0xff]  }
 0x1e5   :  { %8558 = vmatpush3.bf16.msra.mxu1 %v8997_v8  ;;  %8561 = vmatprep.mubr.msk.bf16.mxu1 %vm800_vm2, %v1383_v38  ;;  %v1879_v8 = vpack.c.bf16 %v9043_v1, %v9042_v5  ;;  %v9050_v38 = vld [vmem:[%s11575_s4 + $0x98] sm:$0xff]   ;;  %v9088_v5 = vld [vmem:[#allocation3 + $0x2a] ss:$8 sps:$4 sm:$0xff]  }
 0x1e6   :  { %8559 = vmatprep.subr.bf16.mxu1 %v9002_v12  ;;  %v9089_v1 = vld [vmem:[#allocation3 + $0x3a] ss:$8 sps:$4 sm:$0xff]  }
 0x1e9   :  { %8560 = vmatpush3.bf16.msra.mxu1 %v9002_v12  ;;  %v1880_v12 = vpack.c.bf16 %v9047_v9, %v9046_v11  ;;  %v9093_v9 = vld [vmem:[%s11575_s4 + $0xd0] sm:$0xff]   ;;  %v9097_v11 = vld [vmem:[#allocation2 + $0x20] ss:$8 sps:$4 sm:$0xff]  }
 0x1ea   :  { %8569 = vmatprep.subr.bf16.mxu1 %v9003_v14 }
 0x1ec   :  { %8562 = vmatmul.mubr.msk.bf16.vlgmr.msra.gmra.mrb[0].mxu1 %vm800_vm2, %v1384_v19  ;;  %v9054_v19 = vld [vmem:[#allocation2 + $0x59] ss:$8 sps:$4 sm:$0xff]  }
 0x1ed   :  { %8570 = vmatpush3.bf16.msra.mxu1 %v9003_v14  ;;  %8565 = vmatprep.mubr.msk.bf16.mxu1 %vm800_vm2, %v1385_v20  ;;  %v2063_v14 = vpack.c.bf16 %v9049_v10, %v9048_v42  ;;  %v9056_v20 = vld [vmem:[%s11575_s4 + $0x1a8] sm:$0xff]   ;;  %v9094_v42 = vld [vmem:[#allocation3 + $0x7a] ss:$8 sps:$4 sm:$0xff]  }
 0x1ee   :  { %8571 = vmatprep.subr.bf16.mxu1 %v9008_v6  ;;  %v9095_v10 = vld [vmem:[#allocation3 + $0x8a] ss:$8 sps:$4 sm:$0xff]  }
 0x1f1   :  { %8572 = vmatpush3.bf16.msra.mxu1 %v9008_v6  ;;  %v2064_v6 = vpack.c.bf16 %v9053_v17, %v9052_v45  ;;  %v9099_v17 = vld [vmem:[%s11575_s4 + $0x1e0] sm:$0xff]   ;;  %v9103_v45 = vld [vmem:[#allocation2 + $0x70] ss:$8 sps:$4 sm:$0xff]  }
 0x1f2   :  { %8573 = vmatprep.subr.bf16.mxu1 %v9009_v21 }
 0x1f4   :  { %8566 = vmatmul.mubr.msk.bf16.gmra.mrb[4].mxu1 %vm800_vm2, %v1386_v25  ;;  %v9060_v25 = vld [vmem:[#allocation3 + $0x9] ss:$8 sps:$4 sm:$0xff]  }
 0x1f5   :  { %8574 = vmatpush3.bf16.msra.mxu1 %v9009_v21  ;;  %8577 = vmatprep.mubr.msk.bf16.mxu1 %vm800_vm2, %v1537_v57  ;;  %v2065_v21 = vpack.c.bf16 %v9055_v18, %v9054_v19  ;;  %v9062_v57 = vld [vmem:[%s11575_s4 + $0x1b8] sm:$0xff]   ;;  %v9101_v18 = vld [vmem:[#allocation2 + $0x40] ss:$8 sps:$4 sm:$0xff]  }
 0x1f6   :  { %8575 = vmatprep.subr.bf16.mxu1 %v9014_v27  ;;  %v9100_v19 = vld [vmem:[#allocation2 + $0x30] ss:$8 sps:$4 sm:$0xff]  }
 0x1f9   :  { %8576 = vmatpush3.bf16.msra.mxu1 %v9014_v27  ;;  %v2066_v27 = vpack.c.bf16 %v9059_v48, %v9058_v54  ;;  %v9105_v48 = vld [vmem:[%s11575_s4 + $0x1f0] sm:$0xff]   ;;  %v9109_v54 = vld [vmem:[#allocation3 + $0x20] ss:$8 sps:$4 sm:$0xff]  }
 0x1fa   :  { %8585 = vmatprep.subr.bf16.mxu1 %v9015_v28 }
 0x1fc   :  { %8578 = vmatmul.mubr.msk.bf16.vlgmr.msra.gmra.mrb[0].mxu1 %vm800_vm2, %v1538_v33  ;;  %v9066_v33 = vld [vmem:[#allocation3 + $0x59] ss:$8 sps:$4 sm:$0xff]  }
 0x1fd   :  { %8586 = vmatpush3.bf16.msra.mxu1 %v9015_v28  ;;  %8581 = vmatprep.mubr.msk.bf16.mxu1 %vm800_vm2, %v1539_v37  ;;  %v2217_v28 = vpack.c.bf16 %v9061_v24, %v9060_v25  ;;  %v9068_v37 = vld [vmem:[%s11575_s4 + $0xa8] sm:$0xff]   ;;  %v9107_v24 = vld [vmem:[#allocation2 + $0x90] ss:$8 sps:$4 sm:$0xff]  }
 0x1fe   :  { %8587 = vmatprep.subr.bf16.mxu1 %v9020_v36  ;;  %v9106_v25 = vld [vmem:[#allocation2 + $0x80] ss:$8 sps:$4 sm:$0xff]  }
 0x201   :  { %8588 = vmatpush3.bf16.msra.mxu1 %v9020_v36  ;;  %v2218_v36 = vpack.c.bf16 %v9065_v30, %v9064_v31  ;;  %v9111_v30 = vld [vmem:[%s11575_s4 + $0xe0] sm:$0xff]   ;;  %v9115_v31 = vld [vmem:[#allocation3 + $0x70] ss:$8 sps:$4 sm:$0xff]  }
 0x202   :  { %8589 = vmatprep.subr.bf16.mxu1 %v9021_v40 }
 0x204   :  { %8582 = vmatmul.mubr.msk.bf16.gmra.mrb[4].mxu1 %vm800_vm2, %v1540_v46  ;;  %v9072_v46 = vld [vmem:[#allocation2 + $0xa] ss:$8 sps:$4 sm:$0xff]  }
 0x205   :  { %8590 = vmatpush3.bf16.msra.mxu1 %v9021_v40  ;;  %8593 = vmatprep.mubr.msk.bf16.mxu1 %vm800_vm2, %v1723_v13  ;;  %v2219_v40 = vpack.c.bf16 %v9067_v51, %v9066_v33  ;;  %v9074_v13 = vld [vmem:[%s11575_s4 + $0xb8] sm:$0xff]   ;;  %v9113_v51 = vld [vmem:[#allocation3 + $0x40] ss:$8 sps:$4 sm:$0xff]  }
 0x206   :  { %8591 = vmatprep.subr.bf16.mxu1 %v9026_v47  ;;  %v9112_v33 = vld [vmem:[#allocation3 + $0x30] ss:$8 sps:$4 sm:$0xff]  }
 0x209   :  { %8592 = vmatpush3.bf16.msra.mxu1 %v9026_v47  ;;  %v2220_v47 = vpack.c.bf16 %v9071_v41, %v9070_v44  ;;  %v9117_v41 = vld [vmem:[%s11575_s4 + $0xf0] sm:$0xff]   ;;  %v9121_v44 = vld [vmem:[#allocation2 + $0x21] ss:$8 sps:$4 sm:$0xff]  }
 0x20a   :  { %8601 = vmatprep.subr.bf16.mxu1 %v9027_v49 }
 0x20c   :  { %8594 = vmatmul.mubr.msk.bf16.vlgmr.msra.gmra.mrb[0].mxu1 %vm800_vm2, %v1724_v55  ;;  %v9078_v55 = vld [vmem:[#allocation2 + $0x5a] ss:$8 sps:$4 sm:$0xff]  }
 0x20d   :  { %8602 = vmatpush3.bf16.msra.mxu1 %v9027_v49  ;;  %8597 = vmatprep.mubr.msk.bf16.mxu1 %vm800_vm2, %v1725_v58  ;;  %v2403_v49 = vpack.c.bf16 %v9073_v43, %v9072_v46  ;;  %v9080_v58 = vld [vmem:[%s11575_s4 + $0x1c8] sm:$0xff]   ;;  %v9119_v43 = vld [vmem:[#allocation3 + $0x90] ss:$8 sps:$4 sm:$0xff]  }
 0x20e   :  { %8603 = vmatprep.subr.bf16.mxu1 %v9032_v56  ;;  %v9118_v46 = vld [vmem:[#allocation3 + $0x80] ss:$8 sps:$4 sm:$0xff]  }
 0x211   :  { %8604 = vmatpush3.bf16.msra.mxu1 %v9032_v56  ;;  %v2404_v56 = vpack.c.bf16 %v9077_v50, %v9076_v53  ;;  %v9123_v50 = vld [vmem:[%s11575_s4 + $0x200] sm:$0xff]   ;;  %v9127_v53 = vld [vmem:[#allocation2 + $0x71] ss:$8 sps:$4 sm:$0xff]  }
 0x212   :  { %8605 = vmatprep.subr.bf16.mxu1 %v9033_v59 }
 0x214   :  { %8598 = vmatmul.mubr.msk.bf16.gmra.mrb[4].mxu1 %vm800_vm2, %v1726_v62  ;;  %v9084_v62 = vld [vmem:[#allocation3 + $0xa] ss:$8 sps:$4 sm:$0xff]  }
 0x215   :  { %8606 = vmatpush3.bf16.msra.mxu1 %v9033_v59  ;;  %8609 = vmatprep.mubr.msk.bf16.mxu1 %vm800_vm2, %v1877_v26  ;;  %v2405_v59 = vpack.c.bf16 %v9079_v52, %v9078_v55  ;;  %v9086_v26 = vld [vmem:[%s11575_s4 + $0x1d8] sm:$0xff]   ;;  %v9125_v52 = vld [vmem:[#allocation2 + $0x41] ss:$8 sps:$4 sm:$0xff]  }
 0x216   :  { %8607 = vmatprep.subr.bf16.mxu1 %v9038_v63  ;;  %v9124_v55 = vld [vmem:[#allocation2 + $0x31] ss:$8 sps:$4 sm:$0xff]  }
 0x219   :  { %8608 = vmatpush3.bf16.msra.mxu1 %v9038_v63  ;;  %v2406_v63 = vpack.c.bf16 %v9083_v23, %v9082_v61  ;;  %v9129_v23 = vld [vmem:[%s11575_s4 + $0x210] sm:$0xff]   ;;  %v9133_v61 = vld [vmem:[#allocation3 + $0x21] ss:$8 sps:$4 sm:$0xff]  }
 0x21a   :  { %8617 = vmatprep.subr.bf16.mxu1 %v9039_v0 }
 0x21c   :  { %8610 = vmatmul.mubr.msk.bf16.vlgmr.msra.gmra.mrb[0].mxu1 %vm800_vm2, %v1878_v7  ;;  %v9090_v7 = vld [vmem:[#allocation3 + $0x5a] ss:$8 sps:$4 sm:$0xff]  }
 0x21d   :  { %8618 = vmatpush3.bf16.msra.mxu1 %v9039_v0  ;;  %8613 = vmatprep.mubr.msk.bf16.mxu1 %vm800_vm2, %v1879_v8  ;;  %v2557_v0 = vpack.c.bf16 %v9085_v39, %v9084_v62  ;;  %v9092_v8 = vld [vmem:[%s11575_s4 + $0xc8] sm:$0xff]   ;;  %v9131_v39 = vld [vmem:[#allocation2 + $0x91] ss:$8 sps:$4 sm:$0xff]  }
 0x21e   :  { %8619 = vmatprep.subr.bf16.mxu1 %v9044_v35  ;;  %v9130_v62 = vld [vmem:[#allocation2 + $0x81] ss:$8 sps:$4 sm:$0xff]  }
 0x221   :  { %8620 = vmatpush3.bf16.msra.mxu1 %v9044_v35  ;;  %v2558_v35 = vpack.c.bf16 %v9089_v1, %v9088_v5  ;;  %v9135_v1 = vld [vmem:[%s11575_s4 + $0x100] sm:$0xff]   ;;  %v9139_v5 = vld [vmem:[#allocation3 + $0x71] ss:$8 sps:$4 sm:$0xff]  }
 0x222   :  { %8621 = vmatprep.subr.bf16.mxu1 %v9045_v34 }
 0x224   :  { %8614 = vmatmul.mubr.msk.bf16.gmra.mrb[4].mxu1 %vm800_vm2, %v1880_v12  ;;  %v9096_v12 = vld [vmem:[#allocation2 + $0x10] ss:$8 sps:$4 sm:$0xff]  }
 0x225   :  { %8622 = vmatpush3.bf16.msra.mxu1 %v9045_v34  ;;  %8625 = vmatprep.mubr.msk.bf16.mxu1 %vm800_vm2, %v2063_v14  ;;  %v2559_v34 = vpack.c.bf16 %v9091_v4, %v9090_v7  ;;  %v9098_v14 = vld [vmem:[%s11575_s4 + $0xd8] sm:$0xff]   ;;  %v9137_v4 = vld [vmem:[#allocation3 + $0x41] ss:$8 sps:$4 sm:$0xff]  }
 0x226   :  { %8623 = vmatprep.subr.bf16.mxu1 %v9050_v38  ;;  %v9136_v7 = vld [vmem:[#allocation3 + $0x31] ss:$8 sps:$4 sm:$0xff]  }
 0x229   :  { %8624 = vmatpush3.bf16.msra.mxu1 %v9050_v38  ;;  %v2560_v38 = vpack.c.bf16 %v9095_v10, %v9094_v42  ;;  %v9141_v10 = vld [vmem:[%s11575_s4 + $0x110] sm:$0xff]   ;;  %v9145_v42 = vld [vmem:[#allocation2 + $0x22] ss:$8 sps:$4 sm:$0xff]  }
 0x22a   :  { %8633 = vmatprep.subr.bf16.mxu1 %v9051_v15 }
 0x22c   :  { %8626 = vmatmul.mubr.msk.bf16.vlgmr.msra.gmra.mrb[0].mxu1 %vm800_vm2, %v2064_v6  ;;  %v9102_v6 = vld [vmem:[#allocation2 + $0x60] ss:$8 sps:$4 sm:$0xff]  }
 0x22d   :  { %8634 = vmatpush3.bf16.msra.mxu1 %v9051_v15  ;;  %8629 = vmatprep.mubr.msk.bf16.mxu1 %vm800_vm2, %v2065_v21  ;;  %v2745_v15 = vpack.c.bf16 %v9097_v11, %v9096_v12  ;;  %v9104_v21 = vld [vmem:[%s11575_s4 + $0x1e8] sm:$0xff]   ;;  %v9143_v11 = vld [vmem:[#allocation3 + $0x91] ss:$8 sps:$4 sm:$0xff]  }
 0x22e   :  { %8635 = vmatprep.subr.bf16.mxu1 %v9056_v20  ;;  %v9142_v12 = vld [vmem:[#allocation3 + $0x81] ss:$8 sps:$4 sm:$0xff]  }
 0x231   :  { %8636 = vmatpush3.bf16.msra.mxu1 %v9056_v20  ;;  %v2746_v20 = vpack.c.bf16 %v9101_v18, %v9100_v19  ;;  %v9147_v18 = vld [vmem:[%s11575_s4 + $0x220] sm:$0xff]   ;;  %v9151_v19 = vld [vmem:[#allocation2 + $0x72] ss:$8 sps:$4 sm:$0xff]  }
 0x232   :  { %8637 = vmatprep.subr.bf16.mxu1 %v9057_v22 }
 0x234   :  { %8630 = vmatmul.mubr.msk.bf16.gmra.mrb[4].mxu1 %vm800_vm2, %v2066_v27  ;;  %v9108_v27 = vld [vmem:[#allocation3 + $0x10] ss:$8 sps:$4 sm:$0xff]  }
 0x235   :  { %8638 = vmatpush3.bf16.msra.mxu1 %v9057_v22  ;;  %8641 = vmatprep.mubr.msk.bf16.mxu1 %vm800_vm2, %v2217_v28  ;;  %v2747_v22 = vpack.c.bf16 %v9103_v45, %v9102_v6  ;;  %v9110_v28 = vld [vmem:[%s11575_s4 + $0x1f8] sm:$0xff]   ;;  %v9149_v45 = vld [vmem:[#allocation2 + $0x42] ss:$8 sps:$4 sm:$0xff]  }
 0x236   :  { %8639 = vmatprep.subr.bf16.mxu1 %v9062_v57  ;;  %v9148_v6 = vld [vmem:[#allocation2 + $0x32] ss:$8 sps:$4 sm:$0xff]  }
 0x239   :  { %8640 = vmatpush3.bf16.msra.mxu1 %v9062_v57  ;;  %v2748_v57 = vpack.c.bf16 %v9107_v24, %v9106_v25  ;;  %v9153_v24 = vld [vmem:[%s11575_s4 + $0x230] sm:$0xff]   ;;  %v9157_v25 = vld [vmem:[#allocation3 + $0x22] ss:$8 sps:$4 sm:$0xff]  }
 0x23a   :  { %8649 = vmatprep.subr.bf16.mxu1 %v9063_v29 }
 0x23c   :  { %8642 = vmatmul.mubr.msk.bf16.vlgmr.msra.gmra.mrb[0].mxu1 %vm800_vm2, %v2218_v36  ;;  %v9114_v36 = vld [vmem:[#allocation3 + $0x60] ss:$8 sps:$4 sm:$0xff]  }
 0x23d   :  { %8650 = vmatpush3.bf16.msra.mxu1 %v9063_v29  ;;  %8645 = vmatprep.mubr.msk.bf16.mxu1 %vm800_vm2, %v2219_v40  ;;  %v2899_v29 = vpack.c.bf16 %v9109_v54, %v9108_v27  ;;  %v9116_v40 = vld [vmem:[%s11575_s4 + $0xe8] sm:$0xff]   ;;  %v9155_v54 = vld [vmem:[#allocation2 + $0x92] ss:$8 sps:$4 sm:$0xff]  }
 0x23e   :  { %8651 = vmatprep.subr.bf16.mxu1 %v9068_v37  ;;  %v9154_v27 = vld [vmem:[#allocation2 + $0x82] ss:$8 sps:$4 sm:$0xff]  }
 0x241   :  { %8652 = vmatpush3.bf16.msra.mxu1 %v9068_v37  ;;  %v2900_v37 = vpack.c.bf16 %v9113_v51, %v9112_v33  ;;  %v9160_v51 = vld [vmem:[#allocation3 + $0x42] ss:$8 sps:$4 sm:$0xff]   ;;  %v9159_v33 = vld [vmem:[#allocation3 + $0x32] ss:$8 sps:$4 sm:$0xff]  }
 0x242   :  { %8653 = vmatprep.subr.bf16.mxu1 %v9069_v3 }
 0x244   :  { %8646 = vmatmul.mubr.msk.bf16.gmra.mrb[4].mxu1 %vm800_vm2, %v2220_v47  ;;  %v9120_v47 = vld [vmem:[#allocation2 + $0x11] ss:$8 sps:$4 sm:$0xff]  }
 0x245   :  { %8654 = vmatpush3.bf16.msra.mxu1 %v9069_v3  ;;  %8657 = vmatprep.mubr.msk.bf16.mxu1 %vm800_vm2, %v2403_v49  ;;  %v2901_v3 = vpack.c.bf16 %v9115_v31, %v9114_v36  ;;  %v9122_v49 = vld [vmem:[%s11575_s4 + $0xf8] sm:$0xff]   ;;  %v9161_v36 = vld [vmem:[#allocation3 + $0x62] ss:$8 sps:$4 sm:$0xff]  }
 0x246   :  { %8655 = vmatprep.subr.bf16.mxu1 %v9074_v13  ;;  %v9162_v31 = vld [vmem:[#allocation3 + $0x72] ss:$8 sps:$4 sm:$0xff]  }
 0x249   :  { %8656 = vmatpush3.bf16.msra.mxu1 %v9074_v13  ;;  %v2902_v13 = vpack.c.bf16 %v9119_v43, %v9118_v46 }
 0x24a   :  { %8665 = vmatprep.subr.bf16.mxu1 %v9075_v16 }
 0x24c   :  { %8658 = vmatmul.mubr.msk.bf16.vlgmr.msra.gmra.mrb[0].mxu1 %vm800_vm2, %v2404_v56  ;;  %v9126_v56 = vld [vmem:[#allocation2 + $0x61] ss:$8 sps:$4 sm:$0xff]  }
 0x24d   :  { %8666 = vmatpush3.bf16.msra.mxu1 %v9075_v16  ;;  %8661 = vmatprep.mubr.msk.bf16.mxu1 %vm800_vm2, %v2405_v59  ;;  %v3085_v16 = vpack.c.bf16 %v9121_v44, %v9120_v47  ;;  %v9128_v59 = vld [vmem:[%s11575_s4 + $0x208] sm:$0xff]  }
 0x24e   :  { %8667 = vmatprep.subr.bf16.mxu1 %v9080_v58 }
 0x251   :  { %8668 = vmatpush3.bf16.msra.mxu1 %v9080_v58  ;;  %v3086_v58 = vpack.c.bf16 %v9125_v52, %v9124_v55 }
 0x252   :  { %8669 = vmatprep.subr.bf16.mxu1 %v9081_v60 }
 0x254   :  { %8662 = vmatmul.mubr.msk.bf16.gmra.mrb[4].mxu1 %vm800_vm2, %v2406_v63  ;;  %v9132_v63 = vld [vmem:[#allocation3 + $0x11] ss:$8 sps:$4 sm:$0xff]  }
 0x255   :  { %8670 = vmatpush3.bf16.msra.mxu1 %v9081_v60  ;;  %8673 = vmatprep.mubr.msk.bf16.mxu1 %vm800_vm2, %v2557_v0  ;;  %v3087_v60 = vpack.c.bf16 %v9127_v53, %v9126_v56  ;;  %v9134_v0 = vld [vmem:[%s11575_s4 + $0x218] sm:$0xff]  }
 0x256   :  { %8671 = vmatprep.subr.bf16.mxu1 %v9086_v26 }
 0x259   :  { %8672 = vmatpush3.bf16.msra.mxu1 %v9086_v26  ;;  %v3088_v26 = vpack.c.bf16 %v9131_v39, %v9130_v62 }
 0x25a   :  { %8681 = vmatprep.subr.bf16.mxu1 %v9087_v32 }
 0x25c   :  { %8674 = vmatmul.mubr.msk.bf16.vlgmr.msra.gmra.mrb[0].mxu1 %vm800_vm2, %v2558_v35  ;;  %v9138_v35 = vld [vmem:[#allocation3 + $0x61] ss:$8 sps:$4 sm:$0xff]  }
 0x25d   :  { %8682 = vmatpush3.bf16.msra.mxu1 %v9087_v32  ;;  %8677 = vmatprep.mubr.msk.bf16.mxu1 %vm800_vm2, %v2559_v34  ;;  %v3239_v32 = vpack.c.bf16 %v9133_v61, %v9132_v63  ;;  %v9140_v34 = vld [vmem:[%s11575_s4 + $0x108] sm:$0xff]  }
 0x25e   :  { %8683 = vmatprep.subr.bf16.mxu1 %v9092_v8 }
 0x261   :  { %8684 = vmatpush3.bf16.msra.mxu1 %v9092_v8  ;;  %v3240_v8 = vpack.c.bf16 %v9137_v4, %v9136_v7 }
 0x262   :  { %8685 = vmatprep.subr.bf16.mxu1 %v9093_v9 }
 0x264   :  { %8678 = vmatmul.mubr.msk.bf16.gmra.mrb[4].mxu1 %vm800_vm2, %v2560_v38  ;;  %v9144_v38 = vld [vmem:[#allocation2 + $0x12] ss:$8 sps:$4 sm:$0xff]  }
 0x265   :  { %8686 = vmatpush3.bf16.msra.mxu1 %v9093_v9  ;;  %8689 = vmatprep.mubr.msk.bf16.mxu1 %vm800_vm2, %v2745_v15  ;;  %v3241_v9 = vpack.c.bf16 %v9139_v5, %v9138_v35  ;;  %v9146_v15 = vld [vmem:[%s11575_s4 + $0x118] sm:$0xff]  }
 0x266   :  { %8687 = vmatprep.subr.bf16.mxu1 %v9098_v14 }
 0x269   :  { %8688 = vmatpush3.bf16.msra.mxu1 %v9098_v14  ;;  %v3242_v14 = vpack.c.bf16 %v9143_v11, %v9142_v12 }
 0x26a   :  { %8697 = vmatprep.subr.bf16.mxu1 %v9099_v17 }
 0x26c   :  { %8690 = vmatmul.mubr.msk.bf16.vlgmr.msra.gmra.mrb[0].mxu1 %vm800_vm2, %v2746_v20  ;;  %v9150_v20 = vld [vmem:[#allocation2 + $0x62] ss:$8 sps:$4 sm:$0xff]  }
 0x26d   :  { %8698 = vmatpush3.bf16.msra.mxu1 %v9099_v17  ;;  %8693 = vmatprep.mubr.msk.bf16.mxu1 %vm800_vm2, %v2747_v22  ;;  %v3425_v17 = vpack.c.bf16 %v9145_v42, %v9144_v38  ;;  %v9152_v22 = vld [vmem:[%s11575_s4 + $0x228] sm:$0xff]  }
 0x26e   :  { %8699 = vmatprep.subr.bf16.mxu1 %v9104_v21 }
 0x271   :  { %8700 = vmatpush3.bf16.msra.mxu1 %v9104_v21  ;;  %v3426_v21 = vpack.c.bf16 %v9149_v45, %v9148_v6 }
 0x272   :  { %8701 = vmatprep.subr.bf16.mxu1 %v9105_v48 }
 0x274   :  { %8694 = vmatmul.mubr.msk.bf16.gmra.mrb[4].mxu1 %vm800_vm2, %v2748_v57  ;;  %v9156_v57 = vld [vmem:[#allocation3 + $0x12] ss:$8 sps:$4 sm:$0xff]  }
 0x275   :  { %8702 = vmatpush3.bf16.msra.mxu1 %v9105_v48  ;;  %8705 = vmatprep.mubr.msk.bf16.mxu1 %vm800_vm2, %v2899_v29  ;;  %v3427_v48 = vpack.c.bf16 %v9151_v19, %v9150_v20  ;;  %v9158_v29 = vld [vmem:[%s11575_s4 + $0x238] sm:$0xff]  }
 0x276   :  { %8703 = vmatprep.subr.bf16.mxu1 %v9110_v28 }
 0x279   :  { %8704 = vmatpush3.bf16.msra.mxu1 %v9110_v28  ;;  %v3428_v28 = vpack.c.bf16 %v9155_v54, %v9154_v27 }
 0x27a   :  { %8713 = vmatprep.subr.bf16.mxu1 %v9111_v30 }
 0x27c   :  { %8706 = vmatmul.mubr.msk.bf16.vlgmr.msra.gmra.mrb[0].mxu1 %vm800_vm2, %v2900_v37  ;;  %v3580_v37 = vpack.c.bf16 %v9160_v51, %v9159_v33 }
 0x27d   :  { %8714 = vmatpush3.bf16.msra.mxu1 %v9111_v30  ;;  %8709 = vmatprep.mubr.msk.bf16.mxu1 %vm800_vm2, %v2901_v3  ;;  %v3579_v30 = vpack.c.bf16 %v9157_v25, %v9156_v57  ;;  %v9164_v3 = vld [vmem:[#allocation3 + $0x92] ss:$8 sps:$4 sm:$0xff]   ;;  %v3750_v25 = vlaneseq }
 0x27e   :  { %8715 = vmatprep.subr.bf16.mxu1 %v9116_v40 }
 0x27f   :  { %v10243_v57 = vshrl.u32 %v3750_v25, 7 }
 0x281   :  { %8716 = vmatpush3.bf16.msra.mxu1 %v9116_v40  ;;  %v3581_v40 = vpack.c.bf16 %v9162_v31, %v9161_v36 }
 0x282   :  { %8717 = vmatprep.subr.bf16.mxu1 %v9117_v41 }
 0x284   :  { %8710 = vmatmul.mubr.msk.bf16.gmra.mrb[4].mxu1 %vm800_vm2, %v2902_v13 }
 0x285   :  { %8718 = vmatpush3.bf16.msra.mxu1 %v9117_v41  ;;  %8721 = vmatprep.mubr.msk.bf16.mxu1 %vm800_vm2, %v3085_v16  ;;  %v9163_v41 = vld [vmem:[#allocation3 + $0x82] ss:$8 sps:$4 sm:$0xff]  }
 0x286   :  { %8719 = vmatprep.subr.bf16.mxu1 %v9122_v49  ;;  %v3582_v43 = vpack.c.bf16 %v9164_v3, %v9163_v41 }
 0x289   :  { %8720 = vmatpush3.bf16.msra.mxu1 %v9122_v49 }
 0x28a   :  { %8729 = vmatprep.subr.bf16.mxu1 %v9123_v50 }
 0x28c   :  { %8722 = vmatmul.mubr.msk.bf16.vlgmr.msra.gmra.mrb[0].mxu1 %vm800_vm2, %v3086_v58 }
 0x28d   :  { %8730 = vmatpush3.bf16.msra.mxu1 %v9123_v50  ;;  %8725 = vmatprep.mubr.msk.bf16.mxu1 %vm800_vm2, %v3087_v60 }
 0x28e   :  { %8731 = vmatprep.subr.bf16.mxu1 %v9128_v59 }
 0x291   :  { %8732 = vmatpush3.bf16.msra.mxu1 %v9128_v59 }
 0x292   :  { %8733 = vmatprep.subr.bf16.mxu1 %v9129_v23 }
 0x294   :  { %8726 = vmatmul.mubr.msk.bf16.gmra.mrb[4].mxu1 %vm800_vm2, %v3088_v26 }
 0x295   :  { %8734 = vmatpush3.bf16.msra.mxu1 %v9129_v23  ;;  %8737 = vmatprep.mubr.msk.bf16.mxu1 %vm800_vm2, %v3239_v32 }
 0x296   :  { %8735 = vmatprep.subr.bf16.mxu1 %v9134_v0 }
 0x299   :  { %8736 = vmatpush3.bf16.msra.mxu1 %v9134_v0 }
 0x29a   :  { %8745 = vmatprep.subr.bf16.mxu1 %v9135_v1 }
 0x29c   :  { %8738 = vmatmul.mubr.msk.bf16.vlgmr.msra.gmra.mrb[0].mxu1 %vm800_vm2, %v3240_v8 }
 0x29d   :  { %8746 = vmatpush3.bf16.msra.mxu1 %v9135_v1  ;;  %8741 = vmatprep.mubr.msk.bf16.mxu1 %vm800_vm2, %v3241_v9 }
 0x29e   :  { %8747 = vmatprep.subr.bf16.mxu1 %v9140_v34 }
 0x2a1   :  { %8748 = vmatpush3.bf16.msra.mxu1 %v9140_v34 }
 0x2a2   :  { %8749 = vmatprep.subr.bf16.mxu1 %v9141_v10 }
 0x2a4   :  { %8742 = vmatmul.mubr.msk.bf16.gmra.mrb[4].mxu1 %vm800_vm2, %v3242_v14 }
 0x2a5   :  { %8750 = vmatpush3.bf16.msra.mxu1 %v9141_v10  ;;  %8753 = vmatprep.mubr.msk.bf16.mxu1 %vm800_vm2, %v3425_v17 }
 0x2a6   :  { %8751 = vmatprep.subr.bf16.mxu1 %v9146_v15 }
 0x2a9   :  { %8752 = vmatpush3.bf16.msra.mxu1 %v9146_v15 }
 0x2aa   :  { %8761 = vmatprep.subr.bf16.mxu1 %v9147_v18 }
 0x2ac   :  { %8754 = vmatmul.mubr.msk.bf16.vlgmr.msra.gmra.mrb[0].mxu1 %vm800_vm2, %v3426_v21 }
 0x2ad   :  { %8762 = vmatpush3.bf16.msra.mxu1 %v9147_v18  ;;  %8757 = vmatprep.mubr.msk.bf16.mxu1 %vm800_vm2, %v3427_v48 }
 0x2ae   :  { %8763 = vmatprep.subr.bf16.mxu1 %v9152_v22 }
 0x2b1   :  { %8764 = vmatpush3.bf16.msra.mxu1 %v9152_v22 }
 0x2b2   :  { %8765 = vmatprep.subr.bf16.mxu1 %v9153_v24 }
 0x2b4   :  { %8758 = vmatmul.mubr.msk.bf16.gmra.mrb[4].mxu1 %vm800_vm2, %v3428_v28 }
 0x2b5   :  { %8766 = vmatpush3.bf16.msra.mxu1 %v9153_v24  ;;  %8769 = vmatprep.mubr.msk.bf16.mxu1 %vm800_vm2, %v3579_v30  ;;  %v10246_v30 = vsub.s32 0, %v10243_v57 }
 0x2b6   :  { %8767 = vmatprep.subr.bf16.mxu1 %v9158_v29 }
 0x2b9   :  { %8768 = vmatpush3.bf16.msra.mxu1 %v9158_v29 }
 0x2bc   :  { %8770 = vmatmul.mubr.msk.bf16.vlgmr.msra.gmra.mrb[0].mxu1 %vm800_vm2, %v3580_v37 }
 0x2bd   :  { %8773 = vmatprep.mubr.msk.bf16.mxu1 %vm800_vm2, %v3581_v40 }
 0x2c4   :  { %8774 = vmatmul.mubr.msk.bf16.gmra.mrb[4].mxu1 %vm800_vm2, %v3582_v43 }
 0x2c5   :  { %4170 = vmatprep.mubr.bf16.mxu1 %v9606_v2 }
 0x38f   :  { %v10202_v44 = vpop.f32.mrb[0].mxu1 }
 0x390   :  { %v10204_v46 = vpop.f32.mrb[1].mxu1  ;;  %v3704_v56 = vsel %vm800_vm2, %v10202_v44, 0.0  ;;  %v3726_v58 = vsel %vm3722_vm3, %v10202_v44, 0.0 }
 0x391   :  { %v10206_v47 = vpop.f32.mrb[2].mxu1  ;;  %v3701_v49 = vsel %vm800_vm2, %v10204_v46, 0.0  ;;  %v3723_v16 = vsel %vm3722_vm3, %v10204_v46, 0.0 }
 0x392   :  { %v10208_v13 = vpop.f32.mrb[3].mxu1  ;;  %v3706_v23 = vsel %vm800_vm2, %v10206_v47, 0.0  ;;  %v3728_v39 = vsel %vm3722_vm3, %v10206_v47, 0.0 }
 0x393   :  { %v3702_v50 = vsel %vm800_vm2, %v10208_v13, 0.0  ;;  %v3724_v52 = vsel %vm3722_vm3, %v10208_v13, 0.0 }
 0x394   :  { %v3703_v53 = vadd.f32 %v3702_v50, %v3701_v49  ;;  %v3725_v55 = vadd.f32 %v3724_v52, %v3723_v16 }
 0x396   :  { %v3705_v59 = vadd.f32 %v3704_v56, %v3703_v53  ;;  %v3727_v60 = vadd.f32 %v3726_v58, %v3725_v55 }
 0x397   :  { %v10226_v61 = vpop.f32.mrb[4].mxu1 }
 0x398   :  { %v3678_v62 = vpop.f32.mrb[5].mxu1  ;;  %v3707_v63 = vadd.f32 %v3706_v23, %v3705_v59  ;;  %v3729_v26 = vadd.f32 %v3728_v39, %v3727_v60  ;;  %v3712_v10 = vsel %vm800_vm2, %v10226_v61, 0.0  ;;  %v3734_v11 = vsel %vm3722_vm3, %v10226_v61, 0.0 }
 0x399   :  { %v3708_v0 = vsel %vm800_vm2, %v3678_v62, 0.0  ;;  %v3730_v32 = vsel %vm3722_vm3, %v3678_v62, 0.0  ;;  %v10230_v1 = vpop.f32.mrb[6].mxu1 }
 0x39a   :  { %v3709_v4 = vadd.f32 %v3708_v0, %v3707_v63  ;;  %v3731_v5 = vadd.f32 %v3730_v32, %v3729_v26  ;;  %v3681_v7 = vpop.f32.mrb[7].mxu1  ;;  %v3714_v38 = vsel %vm800_vm2, %v10230_v1, 0.0  ;;  %v3736_v14 = vsel %vm3722_vm3, %v10230_v1, 0.0 }
 0x39b   :  { %v3710_v35 = vsel %vm800_vm2, %v3681_v7, 0.0  ;;  %v3732_v8 = vsel %vm3722_vm3, %v3681_v7, 0.0 }
 0x39c   :  { %v3711_v34 = vadd.f32 %v3710_v35, %v3709_v4  ;;  %v3733_v9 = vadd.f32 %v3732_v8, %v3731_v5 }
 0x39e   :  { %v3713_v42 = vadd.f32 %v3712_v10, %v3711_v34  ;;  %v3735_v12 = vadd.f32 %v3734_v11, %v3733_v9 }
 0x3a0   :  { %v3737_v15 = vadd.f32 %v3736_v14, %v3735_v12  ;;  %v3715_v17 = vadd.f32 %v3714_v38, %v3713_v42 }
 0x3a2   :  { %v3738_v18 = vrot.slane %v3737_v15, 4  ;;  %v3716_v22 = vrot.slane %v3715_v17, 4 }
 0x3a4   :  { %v3739_v45 = vadd.f32 %v3738_v18, %v3737_v15  ;;  %v3717_v48 = vadd.f32 %v3716_v22, %v3715_v17 }
 0x3a6   :  { %v3740_v19 = vrot.slane %v3739_v45, 2  ;;  %v3718_v24 = vrot.slane %v3717_v48, 2 }
 0x3a8   :  { %v3741_v6 = vadd.f32 %v3740_v19, %v3739_v45  ;;  %v3719_v54 = vadd.f32 %v3718_v24, %v3717_v48  ;;  %v10322_v19 = vld [vmem:[%s11574_s3] ss:$0 sm:$0xff] }
 0x3aa   :  { %v3742_v20 = vrot.slane %v3741_v6, 1  ;;  %v3720_v27 = vrot.slane %v3719_v54, 1 }
 0x3ac   :  { %v3743_v21 = vadd.f32 %v3742_v20, %v3741_v6  ;;  %v3721_v28 = vadd.f32 %v3720_v27, %v3719_v54 }
 0x3ae   :  { %3745 = vrot.lane.b32.xlu0 %v3743_v21, %s9608_s0 }
 0x420   :  { %v3746_v29 = vpop.permute.xlu0 %3745 }
 0x421   :  { %v3748_v51 = vadd.f32 %v3746_v29, %v3721_v28 }
 0x423   :  { %v3749_v31 = vmul.f32 0.0078125, %v3748_v51 }
 0x425   :  { %v3753_v33 = vrot.slane %v3749_v31, %v10246_v30 }
 0x427   :  { %3763 = vrot.lane.b32.xlu1 %v3753_v33, %s9608_s0  ;;  %v10251_v36 = vsub.f32 %v10204_v46, %v3753_v33  ;;  %v10254_v37 = vsub.f32 %v10208_v13, %v3753_v33  ;;  %v10257_v40 = vsub.f32 %v10202_v44, %v3753_v33  ;;  %v10260_v3 = vsub.f32 %v10206_v47, %v3753_v33 }
 0x428   :  { %v10262_v41 = vsub.f32 %v3678_v62, %v3753_v33  ;;  %v10264_v43 = vsub.f32 %v3681_v7, %v3753_v33  ;;  %v10267_v49 = vsub.f32 %v10226_v61, %v3753_v33  ;;  %v10270_v16 = vsub.f32 %v10230_v1, %v3753_v33 }
 0x429   :  { %v3774_v6 = vmul.f32 %v10251_v36, %v10251_v36  ;;  %v3775_v20 = vmul.f32 %v10254_v37, %v10254_v37  ;;  %v3776_v48 = vmul.f32 %v10257_v40, %v10257_v40  ;;  %v3777_v54 = vmul.f32 %v10260_v3, %v10260_v3 }
 0x42a   :  { %v3778_v28 = vmul.f32 %v10262_v41, %v10262_v41  ;;  %v3779_v31 = vmul.f32 %v10264_v43, %v10264_v43 }
 0x42b   :  { %v3782_v21 = vsel %vm800_vm2, %v3774_v6, 0.0  ;;  %v3783_v22 = vsel %vm800_vm2, %v3775_v20, 0.0  ;;  %v3785_v25 = vsel %vm800_vm2, %v3776_v48, 0.0  ;;  %v3787_v29 = vsel %vm800_vm2, %v3777_v54, 0.0  ;;  %v9171_v6 = vld [vmem:[%s11576_s5 + $0xc8] ss:$16 sps:$4 sm:$0xff]  }
 0x42c   :  { %v3784_v24 = vadd.f32 %v3783_v22, %v3782_v21  ;;  %v3789_v33 = vsel %vm800_vm2, %v3778_v28, 0.0  ;;  %v9179_v20 = vld [vmem:[%s11576_s5 + $0xec] ss:$16 sps:$4 sm:$0xff]   ;;  %v9177_v21 = vld [vmem:[%s11576_s5 + $0xe8] ss:$16 sps:$4 sm:$0xff]  }
 0x42e   :  { %v3786_v27 = vadd.f32 %v3785_v25, %v3784_v24 }
 0x430   :  { %v3788_v51 = vadd.f32 %v3787_v29, %v3786_v27 }
 0x499   :  { %v3764_v50 = vpop.permute.xlu1 %3763 }
 0x49a   :  { %v10273_v52 = vsub.f32 %v10204_v46, %v3764_v50  ;;  %v10276_v53 = vsub.f32 %v10208_v13, %v3764_v50  ;;  %v10279_v55 = vsub.f32 %v10202_v44, %v3764_v50  ;;  %v10282_v56 = vsub.f32 %v10206_v47, %v3764_v50 }
 0x49b   :  { %v10284_v58 = vsub.f32 %v3678_v62, %v3764_v50  ;;  %v10292_v23 = vsub.f32 %v3681_v7, %v3764_v50  ;;  %v10299_v62 = vsub.f32 %v10226_v61, %v3764_v50  ;;  %v10305_v32 = vsub.f32 %v10230_v1, %v3764_v50 }
 0x49c   :  { %v3803_v59 = vmul.f32 %v10273_v52, %v10273_v52  ;;  %v3804_v60 = vmul.f32 %v10276_v53, %v10276_v53  ;;  %v3805_v46 = vmul.f32 %v10279_v55, %v10279_v55  ;;  %v3806_v44 = vmul.f32 %v10282_v56, %v10282_v56 }
 0x49d   :  { %v3807_v63 = vmul.f32 %v10284_v58, %v10284_v58  ;;  %v3808_v4 = vmul.f32 %v10292_v23, %v10292_v23  ;;  %v3809_v35 = vmul.f32 %v10299_v62, %v10299_v62  ;;  %v3810_v34 = vmul.f32 %v10305_v32, %v10305_v32 }
 0x49e   :  { %v3811_v13 = vsel %vm3722_vm3, %v3803_v59, 0.0  ;;  %v3812_v47 = vsel %vm3722_vm3, %v3804_v60, 0.0  ;;  %v3814_v26 = vsel %vm3722_vm3, %v3805_v46, 0.0  ;;  %v3816_v5 = vsel %vm3722_vm3, %v3806_v44, 0.0 }
 0x49f   :  { %v3813_v39 = vadd.f32 %v3812_v47, %v3811_v13  ;;  %v3818_v61 = vsel %vm3722_vm3, %v3807_v63, 0.0  ;;  %v3820_v9 = vsel %vm3722_vm3, %v3808_v4, 0.0  ;;  %v3822_v1 = vsel %vm3722_vm3, %v3809_v35, 0.0 }
 0x4a0   :  { %v3824_v42 = vsel %vm3722_vm3, %v3810_v34, 0.0  ;;  %v3790_v50 = vadd.f32 %v3789_v33, %v3788_v51  ;;  %v3780_v59 = vmul.f32 %v10267_v49, %v10267_v49  ;;  %v3791_v60 = vsel %vm800_vm2, %v3779_v31, 0.0 }
 0x4a1   :  { %v3815_v0 = vadd.f32 %v3814_v26, %v3813_v39  ;;  %v3781_v44 = vmul.f32 %v10270_v16, %v10270_v16  ;;  %vm4052_vm3 = vcmask 1041409  }
 0x4a2   :  { %v3792_v46 = vadd.f32 %v3791_v60, %v3790_v50  ;;  %v3793_v13 = vsel %vm800_vm2, %v3780_v59, 0.0 }
 0x4a3   :  { %v3817_v7 = vadd.f32 %v3816_v5, %v3815_v0  ;;  %v3795_v39 = vsel %vm800_vm2, %v3781_v44, 0.0 }
 0x4a4   :  { %v3794_v47 = vadd.f32 %v3793_v13, %v3792_v46 }
 0x4a5   :  { %v3819_v8 = vadd.f32 %v3818_v61, %v3817_v7 }
 0x4a6   :  { %v3796_v63 = vadd.f32 %v3795_v39, %v3794_v47 }
 0x4a7   :  { %v3821_v10 = vadd.f32 %v3820_v9, %v3819_v8 }
 0x4a8   :  { %v3797_v26 = vrot.slane %v3796_v63, 4 }
 0x4a9   :  { %v3823_v11 = vadd.f32 %v3822_v1, %v3821_v10  ;;  %v3840_v10 = vld [vmem:[%s11573_s2] sm:$0x1] }
 0x4aa   :  { %v3798_v0 = vadd.f32 %v3797_v26, %v3796_v63 }
 0x4ab   :  { %v3825_v12 = vadd.f32 %v3824_v42, %v3823_v11 }
 0x4ac   :  { %v3799_v4 = vrot.slane %v3798_v0, 2 }
 0x4ad   :  { %v3826_v38 = vrot.slane %v3825_v12, 4 }
 0x4ae   :  { %v3800_v5 = vadd.f32 %v3799_v4, %v3798_v0  ;;  %v9183_v4 = vld [vmem:[%s11576_s5 + $0xc0] ss:$16 sps:$4 sm:$0xff]  }
 0x4af   :  { %v3827_v14 = vadd.f32 %v3826_v38, %v3825_v12  ;;  %v9165_v12 = vld [vmem:[%s11576_s5 + $0x88] ss:$16 sps:$4 sm:$0xff]   ;;  %v9167_v38 = vld [vmem:[%s11576_s5 + $0x8c] ss:$16 sps:$4 sm:$0xff]  }
 0x4b0   :  { %v3801_v7 = vrot.slane %v3800_v5, 1  ;;  %4179 = vmatprep.subr.bf16.mxu0 %v9167_v38 }
 0x4b1   :  { %v3828_v15 = vrot.slane %v3827_v14, 2  ;;  %4180 = vmatpush1.bf16.msra.mxu0 %v9165_v12  ;;  %v9194_v12 = vld [vmem:[%s11576_s5 + $0x384] ss:$16 sps:$4 sm:$0xff]  }
 0x4b2   :  { %v3802_v35 = vadd.f32 %v3801_v7, %v3800_v5  ;;  %v9185_v5 = vld [vmem:[%s11576_s5 + $0xc4] ss:$16 sps:$4 sm:$0xff]  }
 0x4b3   :  { %v3829_v17 = vadd.f32 %v3828_v15, %v3827_v14  ;;  %v9170_v14 = vld [vmem:[%s11576_s5 + $0xac] ss:$16 sps:$4 sm:$0xff]   ;;  %v9174_v15 = vld [vmem:[%s11576_s5 + $0x80] ss:$16 sps:$4 sm:$0xff]  }
 0x4b4   :  { %4181 = vmatprep.subr.bf16.mxu0 %v9170_v14 }
 0x4b5   :  { %v3830_v18 = vrot.slane %v3829_v17, 1 }
 0x4b7   :  { %v3831_v45 = vadd.f32 %v3830_v18, %v3829_v17  ;;  %v9176_v17 = vld [vmem:[%s11576_s5 + $0x84] ss:$16 sps:$4 sm:$0xff]   ;;  %v9168_v18 = vld [vmem:[%s11576_s5 + $0xa8] ss:$16 sps:$4 sm:$0xff]  }
 0x4b8   :  { %4138 = vmatprep.subr.bf16.mxu1 %v9176_v17  ;;  %4182 = vmatpush1.bf16.msra.mxu0 %v9168_v18 }
 0x4b9   :  { %3833 = vrot.lane.b32.xlu0 %v3831_v45, %s9608_s0  ;;  %v9173_v45 = vld [vmem:[%s11576_s5 + $0xcc] ss:$16 sps:$4 sm:$0xff]   ;;  %4139 = vmatpush1.bf16.msra.mxu1 %v9174_v15 }
 0x4ba   :  { %4183 = vmatprep.subr.bf16.mxu0 %v9173_v45 }
 0x4bc   :  { %4184 = vmatpush1.bf16.msra.mxu0 %v9171_v6 }
 0x4bd   :  { %3881 = vrot.lane.b32.xlu0 %v10322_v19, %s9608_s0  ;;  %4185 = vmatprep.subr.bf16.mxu0 %v9179_v20 }
 0x4c0   :  { %4186 = vmatpush1.bf16.msra.mxu0 %v9177_v21 }
 0x52b   :  { %v3834_v61 = vpop.permute.xlu0 %3833 }
 0x52c   :  { %v3836_v8 = vadd.f32 %v3834_v61, %v3802_v35 }
 0x52e   :  { %v3837_v34 = vmul.f32 0.0078125, %v3836_v8 }
 0x52f   :  { %v3882_v48 = vpop.permute.xlu0 %3881 }
 0x530   :  { %v3838_v9 = vadd.f32 1e-05, %v3837_v34  ;;  %v9186_v34 = vld [vmem:[%s11576_s5 + $0xe0] ss:$16 sps:$4 sm:$0xff]  }
 0x532   :  { %9580 = vrsqrt.f32 %v3838_v9  ;;  %v9188_v9 = vld [vmem:[%s11576_s5 + $0xe4] ss:$16 sps:$4 sm:$0xff]  }
 0x53c   :  { %v9581_v1 = vpop.eup %9580 }
 0x53d   :  { %v3841_v11 = vmul.f32 %v9581_v1, %v3840_v10 }
 0x53f   :  { %v10354_v42 = vrot.slane %v3841_v11, %v10246_v30  ;;  %v9191_v11 = vld [vmem:[%s11576_s5 + $0x4] ss:$16 sps:$4 sm:$0xff]  }
 0x540   :  { %4306 = vmatprep.subr.bf16.mxu0 %v9191_v11 }
 0x541   :  { %3870 = vrot.lane.b32.xlu1 %v10354_v42, %s9608_s0  ;;  %v3850_v38 = vmul.f32 %v10354_v42, %v10262_v41  ;;  %v3846_v14 = vmul.f32 %v10354_v42, %v10251_v36  ;;  %v3847_v18 = vmul.f32 %v10354_v42, %v10254_v37  ;;  %v3851_v45 = vmul.f32 %v10354_v42, %v10264_v43 }
 0x542   :  { %v3848_v6 = vmul.f32 %v10354_v42, %v10257_v40  ;;  %v3852_v20 = vmul.f32 %v10354_v42, %v10267_v49  ;;  %v3849_v43 = vmul.f32 %v10354_v42, %v10260_v3 }
 0x543   :  { %v3865_v15 = vadd.f32 %v10322_v19, %v3850_v38  ;;  %v3861_v17 = vadd.f32 %v10322_v19, %v3846_v14  ;;  %v3862_v36 = vadd.f32 %v10322_v19, %v3847_v18  ;;  %v9189_v14 = vld [vmem:[%s11576_s5] ss:$16 sps:$4 sm:$0xff]  }
 0x544   :  { %v3867_v37 = vadd.f32 %v10322_v19, %v3852_v20  ;;  %v9197_v20 = vld [vmem:[%s11576_s5 + $0x24] ss:$16 sps:$4 sm:$0xff]  }
 0x545   :  { %v3904_v41 = vmul.f32 0.1, %v3865_v15  ;;  %v3900_v21 = vmul.f32 0.1, %v3861_v17  ;;  %vm3896_vm12 = vcmp.ge.f32.partialorder %v3865_v15, 0.0  ;;  %vm3892_vm13 = vcmp.ge.f32.partialorder %v3861_v17, 0.0 }
 0x546   :  { %v3901_v49 = vmul.f32 0.1, %v3862_v36  ;;  %vm3893_vm14 = vcmp.ge.f32.partialorder %v3862_v36, 0.0  ;;  %vm3898_vm1 = vcmp.ge.f32.partialorder %v3867_v37, 0.0 }
 0x547   :  { %v3912_v40 = vsel %vm3896_vm12, %v3865_v15, %v3904_v41  ;;  %v9192_v15 = vld [vmem:[%s11576_s5 + $0x380] ss:$16 sps:$4 sm:$0xff]   ;;  %v9200_v41 = vld [vmem:[%s11576_s5 + $0x3a4] ss:$16 sps:$4 sm:$0xff]  }
 0x548   :  { %v3909_v3 = vsel %vm3893_vm14, %v3862_v36, %v3901_v49 }
 0x5b3   :  { %v3871_v22 = vpop.permute.xlu1 %3870 }
 0x5b4   :  { %v3877_v24 = vmul.f32 %v3871_v22, %v10284_v58  ;;  %v3873_v54 = vmul.f32 %v3871_v22, %v10273_v52  ;;  %v3874_v25 = vmul.f32 %v3871_v22, %v10276_v53  ;;  %v3878_v27 = vmul.f32 %v3871_v22, %v10292_v23 }
 0x5b5   :  { %v3875_v28 = vmul.f32 %v3871_v22, %v10279_v55  ;;  %v3879_v29 = vmul.f32 %v3871_v22, %v10299_v62  ;;  %v3876_v52 = vmul.f32 %v3871_v22, %v10282_v56  ;;  %v3880_v53 = vmul.f32 %v3871_v22, %v10305_v32  ;;  %v9180_v62 = vld [vmem:[%s11576_s5 + $0xa0] ss:$16 sps:$4 sm:$0xff]   ;;  %v9182_v56 = vld [vmem:[%s11576_s5 + $0xa4] ss:$16 sps:$4 sm:$0xff]  }
 0x5b6   :  { %v3888_v51 = vadd.f32 %v3882_v48, %v3877_v24  ;;  %v3884_v31 = vadd.f32 %v3882_v48, %v3873_v54  ;;  %v3885_v33 = vadd.f32 %v3882_v48, %v3874_v25  ;;  %v3889_v50 = vadd.f32 %v3882_v48, %v3878_v27  ;;  %4140 = vmatprep.subr.bf16.mxu1 %v9182_v56 }
 0x5b7   :  { %v3886_v46 = vadd.f32 %v3882_v48, %v3875_v28  ;;  %v3890_v58 = vadd.f32 %v3882_v48, %v3879_v29  ;;  %v3887_v47 = vadd.f32 %v3882_v48, %v3876_v52  ;;  %v3891_v32 = vadd.f32 %v3882_v48, %v3880_v53  ;;  %4141 = vmatpush1.bf16.msra.mxu1 %v9180_v62 }
 0x5b8   :  { %vm3920_vm4 = vcmp.ge.f32.partialorder %v3888_v51, 0.0  ;;  %v3928_v59 = vmul.f32 0.1, %v3888_v51  ;;  %vm3916_vm5 = vcmp.ge.f32.partialorder %v3884_v31, 0.0  ;;  %v3924_v60 = vmul.f32 0.1, %v3884_v31  ;;  %4142 = vmatprep.subr.bf16.mxu1 %v9185_v5 }
 0x5b9   :  { %v3925_v13 = vmul.f32 0.1, %v3885_v33  ;;  %v3929_v55 = vmul.f32 0.1, %v3889_v50  ;;  %vm3917_vm6 = vcmp.ge.f32.partialorder %v3885_v33, 0.0  ;;  %vm3921_vm7 = vcmp.ge.f32.partialorder %v3889_v50, 0.0 }
 0x5ba   :  { %v3936_v44 = vsel %vm3920_vm4, %v3888_v51, %v3928_v59  ;;  %v3932_v23 = vsel %vm3916_vm5, %v3884_v31, %v3924_v60  ;;  %v3926_v26 = vmul.f32 0.1, %v3886_v46  ;;  %v3930_v0 = vmul.f32 0.1, %v3890_v58 }
 0x5bb   :  { %3956 = vrot.lane.b32.xlu0 %v3936_v44, %s9608_s0  ;;  %3948 = vrot.lane.b32.xlu1 %v3932_v23, %s9608_s0  ;;  %v3933_v39 = vsel %vm3917_vm6, %v3885_v33, %v3925_v13  ;;  %v3937_v63 = vsel %vm3921_vm7, %v3889_v50, %v3929_v55  ;;  %vm3918_vm8 = vcmp.ge.f32.partialorder %v3886_v46, 0.0  ;;  %vm3922_vm9 = vcmp.ge.f32.partialorder %v3890_v58, 0.0 }
 0x5bc   :  { %v3934_v7 = vsel %vm3918_vm8, %v3886_v46, %v3926_v26  ;;  %v3938_v35 = vsel %vm3922_vm9, %v3890_v58, %v3930_v0  ;;  %v3927_v61 = vmul.f32 0.1, %v3887_v47  ;;  %v3931_v8 = vmul.f32 0.1, %v3891_v32  ;;  %4143 = vmatpush1.bf16.msra.mxu1 %v9183_v4 }
 0x5bd   :  { %vm3919_vm10 = vcmp.ge.f32.partialorder %v3887_v47, 0.0  ;;  %vm3923_vm11 = vcmp.ge.f32.partialorder %v3891_v32, 0.0  ;;  %4144 = vmatprep.subr.bf16.mxu1 %v9188_v9  ;;  %v3866_v22 = vadd.f32 %v10322_v19, %v3851_v45  ;;  %v3863_v48 = vadd.f32 %v10322_v19, %v3848_v6 }
 0x5be   :  { %v3935_v10 = vsel %vm3919_vm10, %v3887_v47, %v3927_v61  ;;  %v3939_v1 = vsel %vm3923_vm11, %v3891_v32, %v3931_v8  ;;  %v3908_v25 = vsel %vm3892_vm13, %v3861_v17, %v3900_v21  ;;  %v3853_v51 = vmul.f32 %v10354_v42, %v10270_v16 }
 0x5bf   :  { %3950 = vrot.lane.b32.xlu0 %v3933_v39, %s9608_s0  ;;  %3958 = vrot.lane.b32.xlu1 %v3937_v63, %s9608_s0  ;;  %v3905_v27 = vmul.f32 0.1, %v3866_v22  ;;  %vm3897_vm15 = vcmp.ge.f32.partialorder %v3866_v22, 0.0  ;;  %vm3894_vm0 = vcmp.ge.f32.partialorder %v3863_v48, 0.0  ;;  %v3864_v50 = vadd.f32 %v10322_v19, %v3849_v43 }
 0x5c0   :  { %4145 = vmatpush1.bf16.msra.mxu1 %v9186_v34  ;;  %v3902_v58 = vmul.f32 0.1, %v3863_v48  ;;  %v3906_v52 = vmul.f32 0.1, %v3867_v37  ;;  %v3868_v55 = vadd.f32 %v10322_v19, %v3853_v51  ;;  %v9206_v51 = vld [vmem:[%s11576_s5 + $0x3c4] ss:$16 sps:$4 sm:$0xff]  }
 0x5c1   :  { %5446 = vmatprep.subr.bf16.mxu1 %v9194_v12  ;;  %v3913_v46 = vsel %vm3897_vm15, %v3866_v22, %v3905_v27  ;;  %v3903_v63 = vmul.f32 0.1, %v3864_v50  ;;  %vm3895_vm4 = vcmp.ge.f32.partialorder %v3864_v50, 0.0  ;;  %vm7357_vm9 = vcmask 916480  }
 0x5c2   :  { %v3910_v32 = vsel %vm3894_vm0, %v3863_v48, %v3902_v58  ;;  %v3914_v5 = vsel %vm3898_vm1, %v3867_v37, %v3906_v52  ;;  %v3907_v61 = vmul.f32 0.1, %v3868_v55  ;;  %vm3899_vm5 = vcmp.ge.f32.partialorder %v3868_v55, 0.0 }
 0x5c3   :  { %3952 = vrot.lane.b32.xlu0 %v3934_v7, %s9608_s0  ;;  %3960 = vrot.lane.b32.xlu1 %v3938_v35, %s9608_s0  ;;  %v3911_v45 = vsel %vm3895_vm4, %v3864_v50, %v3903_v63  ;;  %vm7441_vm10 = vcmask 418816  }
 0x5c4   :  { %v3915_v6 = vsel %vm3899_vm5, %v3868_v55, %v3907_v61  ;;  %v9215_v61 = vld [vmem:[%s11576_s5 + $0xc] ss:$16 sps:$4 sm:$0xff]  }
 0x5c7   :  { %3954 = vrot.lane.b32.xlu0 %v3935_v10, %s9608_s0  ;;  %3962 = vrot.lane.b32.xlu1 %v3939_v1, %s9608_s0 }
 0x62d   :  { %v3957_v24 = vpop.permute.xlu0 %3956  ;;  %v3949_v54 = vpop.permute.xlu1 %3948 }
 0x62e   :  { %v3976_v28 = vmax.f32 %v3912_v40, %v3957_v24  ;;  %v3972_v29 = vmax.f32 %v3908_v25, %v3949_v54  ;;  %v9195_v54 = vld [vmem:[%s11576_s5 + $0x20] ss:$16 sps:$4 sm:$0xff]  }
 0x62f   :  { %v9198_v25 = vld [vmem:[%s11576_s5 + $0x3a0] ss:$16 sps:$4 sm:$0xff]  }
 0x630   :  { %v3992_v31 = vcombine.high %v3976_v28, %v3976_v28  ;;  %v3988_v33 = vcombine.high %v3972_v29, %v3972_v29 }
 0x631   :  { %v3951_v59 = vpop.permute.xlu0 %3950  ;;  %v3959_v60 = vpop.permute.xlu1 %3958 }
 0x632   :  { %v4008_v53 = vmax.f32 %v3976_v28, %v3992_v31  ;;  %v4004_v44 = vmax.f32 %v3972_v29, %v3988_v33  ;;  %v3973_v23 = vmax.f32 %v3909_v3, %v3951_v59  ;;  %v3977_v13 = vmax.f32 %v3913_v46, %v3959_v60  ;;  %v9203_v29 = vld [vmem:[%s11576_s5 + $0x44] ss:$16 sps:$4 sm:$0xff]   ;;  %v9201_v46 = vld [vmem:[%s11576_s5 + $0x40] ss:$16 sps:$4 sm:$0xff]  }
 0x634   :  { %v4013_v62 = vpack.c.bf16 %v4008_v53, %v4008_v53  ;;  %v4012_v16 = vpack.c.bf16 %v4004_v44, %v4004_v44  ;;  %v3989_v42 = vcombine.high %v3973_v23, %v3973_v23  ;;  %v3993_v56 = vcombine.high %v3977_v13, %v3977_v13  ;;  %v9204_v44 = vld [vmem:[%s11576_s5 + $0x3c0] ss:$16 sps:$4 sm:$0xff]  }
 0x635   :  { %v3953_v47 = vpop.permute.xlu0 %3952  ;;  %v3961_v39 = vpop.permute.xlu1 %3960 }
 0x636   :  { %v10453_v26 = vunpack.c.l.b16 %v4012_v16  ;;  %v4005_v0 = vmax.f32 %v3973_v23, %v3989_v42  ;;  %v4009_v4 = vmax.f32 %v3977_v13, %v3993_v56  ;;  %v3974_v7 = vmax.f32 %v3910_v32, %v3953_v47  ;;  %v9209_v16 = vld [vmem:[%s11576_s5 + $0x64] ss:$16 sps:$4 sm:$0xff]  }
 0x637   :  { %v3978_v35 = vmax.f32 %v3914_v5, %v3961_v39  ;;  %v10455_v8 = vunpack.c.l.b16 %v4013_v62  ;;  %v9212_v42 = vld [vmem:[%s11576_s5 + $0x3e4] ss:$16 sps:$4 sm:$0xff]  }
 0x638   :  { %v4051_v19 = vrot.slane %v10453_v26, 1  ;;  %v4768_v34 = vpack.c.bf16 %v4005_v0, %v4005_v0  ;;  %v4769_v9 = vpack.c.bf16 %v4009_v4, %v4009_v4  ;;  %v3990_v12 = vcombine.high %v3974_v7, %v3974_v7 }
 0x639   :  { %v3955_v10 = vpop.permute.xlu0 %3954  ;;  %v3963_v1 = vpop.permute.xlu1 %3962  ;;  %v3994_v38 = vcombine.high %v3978_v35, %v3978_v35  ;;  %v4596_v31 = vrot.slane %v10455_v8, 2  ;;  %v4595_v33 = vrot.slane %v10453_v26, 3  ;;  %v4220_v58 = vrot.slane %v10455_v8, 7 }
 0x63a   :  { %v4053_v11 = vsel %vm4052_vm3, %v10455_v8, %v4051_v19  ;;  %v10466_v18 = vunpack.c.l.b16 %v4768_v34  ;;  %v4006_v21 = vmax.f32 %v3974_v7, %v3990_v12  ;;  %v3975_v22 = vmax.f32 %v3911_v45, %v3955_v10  ;;  %v9207_v7 = vld [vmem:[%s11576_s5 + $0x60] ss:$16 sps:$4 sm:$0xff]   ;;  %v9218_v12 = vld [vmem:[%s11576_s5 + $0x404] ss:$16 sps:$4 sm:$0xff]  }
 0x63b   :  { %v4054_v17 = vpack.c.b16 %v4053_v11, %v4053_v11  ;;  %v4010_v36 = vmax.f32 %v3978_v35, %v3994_v38  ;;  %v3979_v48 = vmax.f32 %v3915_v6, %v3963_v1  ;;  %v10475_v43 = vunpack.c.l.b16 %v4769_v9  ;;  %v9210_v35 = vld [vmem:[%s11576_s5 + $0x3e0] ss:$16 sps:$4 sm:$0xff]  }
 0x63c   :  { %v4980_v37 = vrot.slane %v10466_v18, 1  ;;  %v5532_v24 = vpack.c.bf16 %v4006_v21, %v4006_v21  ;;  %v3991_v27 = vcombine.high %v3975_v22, %v3975_v22  ;;  %v5169_v56 = vrot.slane %v10466_v18, 2  ;;  %v9213_v21 = vld [vmem:[%s11576_s5 + $0x8] ss:$16 sps:$4 sm:$0xff]  }
 0x63d   :  { %7794 = vmatmul.mubr.msk.bf16.vlgmr.msra.gmra.mrb[8].mxu1 %vm800_vm2, %v4054_v17  ;;  %7795 = vmatmul.mubr.msk.bf16.vlgmr.msra.gmra.mrb[32].mxu0 %vm800_vm2, %v4054_v17  ;;  %v5533_v40 = vpack.c.bf16 %v4010_v36, %v4010_v36  ;;  %v3995_v28 = vcombine.high %v3979_v48, %v3979_v48  ;;  %v5359_v47 = vrot.slane %v10466_v18, 3  ;;  %v5360_v32 = vrot.slane %v10475_v43, 2  ;;  %v9216_v36 = vld [vmem:[%s11576_s5 + $0x400] ss:$16 sps:$4 sm:$0xff]  }
 0x63e   :  { %4307 = vmatpush1.bf16.msra.mxu0 %v9189_v14  ;;  %5447 = vmatpush1.bf16.msra.mxu1 %v9192_v15  ;;  %v10487_v49 = vsel %vm4052_vm3, %v10475_v43, %v4980_v37  ;;  %v10497_v50 = vunpack.c.l.b16 %v5532_v24  ;;  %v4007_v3 = vmax.f32 %v3975_v22, %v3991_v27  ;;  %v10524_v39 = vsel %vm4052_vm3, %v4596_v31, %v4595_v33  ;;  %v9224_v37 = vld [vmem:[%s11576_s5 + $0x424] ss:$16 sps:$4 sm:$0xff]  }
 0x63f   :  { %4308 = vmatprep.subr.bf16.mxu0 %v9197_v20  ;;  %5448 = vmatprep.subr.bf16.mxu1 %v9200_v41  ;;  %v10499_v59 = vunpack.c.l.b16 %v5533_v40  ;;  %v4011_v60 = vmax.f32 %v3979_v48, %v3995_v28  ;;  %v4791_v63 = vrot.slane %v10475_v43, 7  ;;  %v5170_v0 = vrot.slane %v10475_v43, 1  ;;  %v9219_v40 = vld [vmem:[%s11576_s5 + $0x28] ss:$16 sps:$4 sm:$0xff]   ;;  %v9230_v27 = vld [vmem:[%s11576_s5 + $0x444] ss:$16 sps:$4 sm:$0xff]  }
 0x640   :  { %4338 = vmatprep.mubr.bf16.mxu0 %v9606_v2  ;;  %5478 = vmatprep.mubr.bf16.mxu1 %v9606_v2  ;;  %v5933_v52 = vrot.slane %v10497_v50, 2  ;;  %v6123_v53 = vrot.slane %v10497_v50, 3  ;;  %v6296_v55 = vpack.c.bf16 %v4007_v3, %v4007_v3  ;;  %v4221_v9 = vsel %vm4052_vm3, %v4220_v58, %v10453_v26  ;;  %v9225_v28 = vld [vmem:[%s11576_s5 + $0x48] ss:$16 sps:$4 sm:$0xff]   ;;  %v9236_v31 = vld [vmem:[%s11576_s5 + $0x464] ss:$16 sps:$4 sm:$0xff]  }
 0x641   :  { %v5934_v23 = vrot.slane %v10499_v59, 1  ;;  %v6124_v13 = vrot.slane %v10499_v59, 2  ;;  %v6297_v62 = vpack.c.bf16 %v4011_v60, %v4011_v60  ;;  %v5361_v17 = vsel %vm4052_vm3, %v5360_v32, %v5359_v47  ;;  %v9231_v3 = vld [vmem:[%s11576_s5 + $0x68] ss:$16 sps:$4 sm:$0xff]   ;;  %v9234_v60 = vld [vmem:[%s11576_s5 + $0x460] ss:$16 sps:$4 sm:$0xff]  }
 0x642   :  { %4309 = vmatpush1.bf16.msra.mxu0 %v9195_v54  ;;  %5449 = vmatpush1.bf16.msra.mxu1 %v9198_v25  ;;  %v6317_v4 = vunpack.c.l.b16 %v6296_v55  ;;  %v10557_v20 = vsel %vm4052_vm3, %v4791_v63, %v10466_v18  ;;  %v10560_v41 = vsel %vm4052_vm3, %v5170_v0, %v5169_v56  ;;  %v4222_v22 = vpack.c.b16 %v4221_v9, %v4221_v9  ;;  %v9221_v18 = vld [vmem:[%s11576_s5 + $0x2c] ss:$16 sps:$4 sm:$0xff]   ;;  %v9222_v54 = vld [vmem:[%s11576_s5 + $0x420] ss:$16 sps:$4 sm:$0xff]   ;;  %v9242_v58 = vld [vmem:[%s11576_s5 + $0x484] ss:$16 sps:$4 sm:$0xff]  }
 0x643   :  { %4310 = vmatprep.subr.bf16.mxu0 %v9203_v29  ;;  %5450 = vmatprep.subr.bf16.mxu1 %v9206_v51  ;;  %v6318_v5 = vunpack.c.l.b16 %v6297_v62  ;;  %v10538_v19 = vsel %vm4052_vm3, %v5934_v23, %v5933_v52  ;;  %v10541_v34 = vsel %vm4052_vm3, %v6124_v13, %v6123_v53  ;;  %v10568_v48 = vpack.c.b16 %v5361_v17, %v5361_v17  ;;  %v9227_v25 = vld [vmem:[%s11576_s5 + $0x4c] ss:$16 sps:$4 sm:$0xff]   ;;  %v9228_v29 = vld [vmem:[%s11576_s5 + $0x440] ss:$16 sps:$4 sm:$0xff]   ;;  %v9245_v13 = vld [vmem:[%s11576_s5 + $0x124] ss:$16 sps:$4 sm:$0xff]  }
 0x644   :  { %v6508_v10 = vrot.slane %v6317_v4, 1  ;;  %v6697_v1 = vrot.slane %v6317_v4, 2  ;;  %v6887_v38 = vrot.slane %v6317_v4, 3  ;;  %v9233_v51 = vld [vmem:[%s11576_s5 + $0x6c] ss:$16 sps:$4 sm:$0xff]   ;;  %v5555_v33 = vrot.slane %v10499_v59, 7 }
 0x645   :  { %v6319_v11 = vrot.slane %v6318_v5, 7  ;;  %v6698_v14 = vrot.slane %v6318_v5, 1  ;;  %v6888_v15 = vrot.slane %v6318_v5, 2  ;;  %v9237_v53 = vld [vmem:[%s11576_s5 + $0x100] ss:$16 sps:$4 sm:$0xff]  }
 0x646   :  { %4311 = vmatpush1.bf16.msra.mxu0 %v9201_v46  ;;  %5451 = vmatpush1.bf16.msra.mxu1 %v9204_v44  ;;  %v10550_v45 = vsel %vm4052_vm3, %v6318_v5, %v6508_v10  ;;  %v9239_v46 = vld [vmem:[%s11576_s5 + $0x104] ss:$16 sps:$4 sm:$0xff]   ;;  %v5556_v52 = vsel %vm4052_vm3, %v5555_v33, %v10497_v50  ;;  %v9240_v44 = vld [vmem:[%s11576_s5 + $0x480] ss:$16 sps:$4 sm:$0xff]   ;;  %v4405_v5 = vrot.slane %v10453_v26, 2 }
 0x647   :  { %4312 = vmatprep.subr.bf16.mxu0 %v9209_v16  ;;  %5452 = vmatprep.subr.bf16.mxu1 %v9212_v42  ;;  %v10553_v6 = vsel %vm4052_vm3, %v6319_v11, %v6317_v4  ;;  %v10577_v43 = vsel %vm4052_vm3, %v6698_v14, %v6697_v1  ;;  %v10583_v24 = vsel %vm4052_vm3, %v6888_v15, %v6887_v38  ;;  %v9248_v55 = vld [vmem:[%s11576_s5 + $0x4a4] ss:$16 sps:$4 sm:$0xff]   ;;  %v9243_v62 = vld [vmem:[%s11576_s5 + $0x120] ss:$16 sps:$4 sm:$0xff]   ;;  %v4406_v4 = vrot.slane %v10455_v8, 1 }
 0x648   :  { %v10632_v23 = vpack.c.b16 %v5556_v52, %v5556_v52  ;;  %v9246_v16 = vld [vmem:[%s11576_s5 + $0x4a0] ss:$16 sps:$4 sm:$0xff]   ;;  %v9251_v42 = vld [vmem:[%s11576_s5 + $0x144] ss:$16 sps:$4 sm:$0xff]   ;;  %v9263_v8 = vld [vmem:[%s11576_s5 + $0x10c] ss:$16 sps:$4 sm:$0xff]  }
 0x649   :  { %v9254_v56 = vld [vmem:[%s11576_s5 + $0x4c4] ss:$16 sps:$4 sm:$0xff]   ;;  %v9249_v47 = vld [vmem:[%s11576_s5 + $0x140] ss:$16 sps:$4 sm:$0xff]   ;;  %v4407_v9 = vsel %vm4052_vm3, %v4406_v4, %v4405_v5  ;;  %v9261_v10 = vld [vmem:[%s11576_s5 + $0x108] ss:$16 sps:$4 sm:$0xff]  }
 0x64a   :  { %4313 = vmatpush1.bf16.msra.mxu0 %v9207_v7  ;;  %5453 = vmatpush1.bf16.msra.mxu1 %v9210_v35  ;;  %v9252_v32 = vld [vmem:[%s11576_s5 + $0x4c0] ss:$16 sps:$4 sm:$0xff]   ;;  %v9257_v63 = vld [vmem:[%s11576_s5 + $0x164] ss:$16 sps:$4 sm:$0xff]   ;;  %v5744_v7 = vrot.slane %v10497_v50, 1 }
 0x64b   :  { %4347 = vmatprep.subr.bf16.mxu0 %v9215_v61  ;;  %5641 = vmatprep.subr.bf16.mxu1 %v9218_v12  ;;  %v9260_v0 = vld [vmem:[%s11576_s5 + $0x4e4] ss:$16 sps:$4 sm:$0xff]   ;;  %v9255_v35 = vld [vmem:[%s11576_s5 + $0x160] ss:$16 sps:$4 sm:$0xff]   ;;  %v4408_v12 = vpack.c.b16 %v4407_v9, %v4407_v9  ;;  %v9267_v14 = vld [vmem:[%s11576_s5 + $0x128] ss:$16 sps:$4 sm:$0xff]  }
 0x64c   :  { %v9258_v61 = vld [vmem:[%s11576_s5 + $0x4e0] ss:$16 sps:$4 sm:$0xff]   ;;  %v9266_v26 = vld [vmem:[%s11576_s5 + $0x504] ss:$16 sps:$4 sm:$0xff]   ;;  %v5745_v50 = vsel %vm4052_vm3, %v10499_v59, %v5744_v7  ;;  %v9269_v59 = vld [vmem:[%s11576_s5 + $0x12c] ss:$16 sps:$4 sm:$0xff]  }
 0x64d   :  { %7812 = vmatmul.mubr.msk.bf16.vlgmr.msra.gmra.mrb[36].mxu0 %vm800_vm2, %v4222_v22  ;;  %8016 = vmatmul.mubr.msk.bf16.vlgmr.msra.gmra.mrb[12].mxu1 %vm800_vm2, %v10568_v48  ;;  %v9264_v1 = vld [vmem:[%s11576_s5 + $0x500] ss:$16 sps:$4 sm:$0xff]   ;;  %v10693_v11 = vpack.c.b16 %v5745_v50, %v5745_v50  ;;  %v9272_v38 = vld [vmem:[%s11576_s5 + $0x524] ss:$16 sps:$4 sm:$0xff]   ;;  %v9275_v17 = vld [vmem:[%s11576_s5 + $0x14c] ss:$16 sps:$4 sm:$0xff]  }
 0x64e   :  { %4348 = vmatpush1.bf16.msra.mxu0 %v9213_v21  ;;  %5642 = vmatpush1.bf16.msra.mxu1 %v9216_v36  ;;  %v9270_v15 = vld [vmem:[%s11576_s5 + $0x520] ss:$16 sps:$4 sm:$0xff]   ;;  %v9278_v21 = vld [vmem:[%s11576_s5 + $0x544] ss:$16 sps:$4 sm:$0xff]   ;;  %v9273_v36 = vld [vmem:[%s11576_s5 + $0x148] ss:$16 sps:$4 sm:$0xff]  }
 0x64f   :  { %4349 = vmatprep.subr.bf16.mxu0 %v9221_v18  ;;  %5643 = vmatprep.subr.bf16.mxu1 %v9224_v37  ;;  %v9281_v18 = vld [vmem:[%s11576_s5 + $0x16c] ss:$16 sps:$4 sm:$0xff]   ;;  %v9284_v37 = vld [vmem:[%s11576_s5 + $0x564] ss:$16 sps:$4 sm:$0xff]   ;;  %v9300_v52 = vld [vmem:[%s11576_s5 + $0x5c0] ss:$16 sps:$4 sm:$0xff]  }
 0x650   :  { %4379 = vmatprep.mubr.bf16.mxu0 %v9606_v2  ;;  %5673 = vmatprep.mubr.bf16.mxu1 %v9606_v2  ;;  %v9296_v33 = vld [vmem:[%s11576_s5 + $0x5a4] ss:$16 sps:$4 sm:$0xff]   ;;  %v9323_v4 = vld [vmem:[%s11576_s5 + $0x1cc] ss:$16 sps:$4 sm:$0xff]   ;;  %v9321_v7 = vld [vmem:[%s11576_s5 + $0x1c8] ss:$16 sps:$4 sm:$0xff]  }
 0x651   :  { %v9326_v5 = vld [vmem:[%s11576_s5 + $0x644] ss:$16 sps:$4 sm:$0xff]   ;;  %v9330_v50 = vld [vmem:[%s11576_s5 + $0x660] ss:$16 sps:$4 sm:$0xff]  }
 0x652   :  { %4350 = vmatpush1.bf16.msra.mxu0 %v9219_v40  ;;  %5644 = vmatpush1.bf16.msra.mxu1 %v9222_v54  ;;  %v9279_v40 = vld [vmem:[%s11576_s5 + $0x168] ss:$16 sps:$4 sm:$0xff]   ;;  %v9282_v54 = vld [vmem:[%s11576_s5 + $0x560] ss:$16 sps:$4 sm:$0xff]   ;;  %v9335_v9 = vld [vmem:[%s11576_s5 + $0x204] ss:$16 sps:$4 sm:$0xff]  }
 0x653   :  { %4351 = vmatprep.subr.bf16.mxu0 %v9227_v25  ;;  %5645 = vmatprep.subr.bf16.mxu1 %v9230_v27  ;;  %v9287_v25 = vld [vmem:[%s11576_s5 + $0x184] ss:$16 sps:$4 sm:$0xff]  }
 0x654   :  { %v9290_v27 = vld [vmem:[%s11576_s5 + $0x584] ss:$16 sps:$4 sm:$0xff]  }
 0x656   :  { %4352 = vmatpush1.bf16.msra.mxu0 %v9225_v28  ;;  %5646 = vmatpush1.bf16.msra.mxu1 %v9228_v29  ;;  %v9285_v28 = vld [vmem:[%s11576_s5 + $0x180] ss:$16 sps:$4 sm:$0xff]  }
 0x657   :  { %4353 = vmatprep.subr.bf16.mxu0 %v9233_v51  ;;  %5647 = vmatprep.subr.bf16.mxu1 %v9236_v31  ;;  %v9288_v29 = vld [vmem:[%s11576_s5 + $0x580] ss:$16 sps:$4 sm:$0xff]   ;;  %v10750_v51 = vpack.c.b16 %v10538_v19, %v10538_v19  ;;  %v9293_v31 = vld [vmem:[%s11576_s5 + $0x1a4] ss:$16 sps:$4 sm:$0xff]  }
 0x658   :  { %v9291_v19 = vld [vmem:[%s11576_s5 + $0x1a0] ss:$16 sps:$4 sm:$0xff]  }
 0x65a   :  { %4354 = vmatpush1.bf16.msra.mxu0 %v9231_v3  ;;  %5648 = vmatpush1.bf16.msra.mxu1 %v9234_v60  ;;  %v9294_v3 = vld [vmem:[%s11576_s5 + $0x5a0] ss:$16 sps:$4 sm:$0xff]   ;;  %v9299_v60 = vld [vmem:[%s11576_s5 + $0x1c4] ss:$16 sps:$4 sm:$0xff]  }
 0x65b   :  { %4492 = vmatprep.subr.bf16.mxu0 %v9239_v46  ;;  %5830 = vmatprep.subr.bf16.mxu1 %v9242_v58  ;;  %v9302_v46 = vld [vmem:[%s11576_s5 + $0x5c4] ss:$16 sps:$4 sm:$0xff]   ;;  %v9297_v58 = vld [vmem:[%s11576_s5 + $0x1c0] ss:$16 sps:$4 sm:$0xff]  }
 0x65d   :  { %7813 = vmatmul.mubr.msk.bf16.vlgmr.msra.gmra.mrb[40].mxu0 %vm800_vm2, %v4222_v22  ;;  %8050 = vmatmul.mubr.msk.bf16.vlgmr.msra.gmra.mrb[16].mxu1 %vm800_vm2, %v10632_v23  ;;  %v9276_v22 = vld [vmem:[%s11576_s5 + $0x540] ss:$16 sps:$4 sm:$0xff]  }
 0x65e   :  { %4493 = vmatpush1.bf16.msra.mxu0 %v9237_v53  ;;  %5831 = vmatpush1.bf16.msra.mxu1 %v9240_v44  ;;  %v9305_v53 = vld [vmem:[%s11576_s5 + $0x1e4] ss:$16 sps:$4 sm:$0xff]  }
 0x65f   :  { %4494 = vmatprep.subr.bf16.mxu0 %v9245_v13  ;;  %5832 = vmatprep.subr.bf16.mxu1 %v9248_v55  ;;  %v9308_v44 = vld [vmem:[%s11576_s5 + $0x5e4] ss:$16 sps:$4 sm:$0xff]   ;;  %v9303_v13 = vld [vmem:[%s11576_s5 + $0x1e0] ss:$16 sps:$4 sm:$0xff]  }
 0x660   :  { %4524 = vmatprep.mubr.bf16.mxu0 %v9606_v2  ;;  %5862 = vmatprep.mubr.bf16.mxu1 %v9606_v2  ;;  %v9306_v55 = vld [vmem:[%s11576_s5 + $0x5e0] ss:$16 sps:$4 sm:$0xff]  }
 0x662   :  { %4495 = vmatpush1.bf16.msra.mxu0 %v9243_v62  ;;  %5833 = vmatpush1.bf16.msra.mxu1 %v9246_v16  ;;  %v9311_v62 = vld [vmem:[%s11576_s5 + $0x18c] ss:$16 sps:$4 sm:$0xff]   ;;  %v9314_v16 = vld [vmem:[%s11576_s5 + $0x604] ss:$16 sps:$4 sm:$0xff]  }
 0x663   :  { %4496 = vmatprep.subr.bf16.mxu0 %v9251_v42  ;;  %5834 = vmatprep.subr.bf16.mxu1 %v9254_v56  ;;  %v9309_v42 = vld [vmem:[%s11576_s5 + $0x188] ss:$16 sps:$4 sm:$0xff]   ;;  %v9312_v56 = vld [vmem:[%s11576_s5 + $0x600] ss:$16 sps:$4 sm:$0xff]  }
 0x666   :  { %4497 = vmatpush1.bf16.msra.mxu0 %v9249_v47  ;;  %5835 = vmatpush1.bf16.msra.mxu1 %v9252_v32  ;;  %v4598_v47 = vpack.c.b16 %v10524_v39, %v10524_v39  ;;  %v10809_v32 = vpack.c.b16 %v10541_v34, %v10541_v34  ;;  %v9315_v39 = vld [vmem:[%s11576_s5 + $0x1a8] ss:$16 sps:$4 sm:$0xff]   ;;  %v9318_v34 = vld [vmem:[%s11576_s5 + $0x620] ss:$16 sps:$4 sm:$0xff]  }
 0x667   :  { %4498 = vmatprep.subr.bf16.mxu0 %v9257_v63  ;;  %5836 = vmatprep.subr.bf16.mxu1 %v9260_v0  ;;  %v9317_v63 = vld [vmem:[%s11576_s5 + $0x1ac] ss:$16 sps:$4 sm:$0xff]   ;;  %v9320_v0 = vld [vmem:[%s11576_s5 + $0x624] ss:$16 sps:$4 sm:$0xff]  }
 0x66a   :  { %4499 = vmatpush1.bf16.msra.mxu0 %v9255_v35  ;;  %5837 = vmatpush1.bf16.msra.mxu1 %v9258_v61  ;;  %v9324_v35 = vld [vmem:[%s11576_s5 + $0x640] ss:$16 sps:$4 sm:$0xff]   ;;  %v9329_v61 = vld [vmem:[%s11576_s5 + $0x1ec] ss:$16 sps:$4 sm:$0xff]  }
 0x66b   :  { %4533 = vmatprep.subr.bf16.mxu0 %v9263_v8  ;;  %6020 = vmatprep.subr.bf16.mxu1 %v9266_v26  ;;  %v9332_v8 = vld [vmem:[%s11576_s5 + $0x664] ss:$16 sps:$4 sm:$0xff]   ;;  %v9327_v26 = vld [vmem:[%s11576_s5 + $0x1e8] ss:$16 sps:$4 sm:$0xff]  }
 0x66d   :  { %7846 = vmatmul.mubr.msk.bf16.vlgmr.msra.gmra.mrb[44].mxu0 %vm800_vm2, %v4408_v12  ;;  %8084 = vmatmul.mubr.msk.bf16.vlgmr.msra.gmra.mrb[20].mxu1 %vm800_vm2, %v10693_v11 }
 0x66e   :  { %4534 = vmatpush1.bf16.msra.mxu0 %v9261_v10  ;;  %6021 = vmatpush1.bf16.msra.mxu1 %v9264_v1  ;;  %v9338_v10 = vld [vmem:[%s11576_s5 + $0x684] ss:$16 sps:$4 sm:$0xff]   ;;  %v9333_v1 = vld [vmem:[%s11576_s5 + $0x200] ss:$16 sps:$4 sm:$0xff]  }
 0x66f   :  { %4535 = vmatprep.subr.bf16.mxu0 %v9269_v59  ;;  %6022 = vmatprep.subr.bf16.mxu1 %v9272_v38  ;;  %v10866_v59 = vpack.c.b16 %v10553_v6, %v10553_v6  ;;  %v9341_v38 = vld [vmem:[%s11576_s5 + $0x224] ss:$16 sps:$4 sm:$0xff]   ;;  %v9339_v6 = vld [vmem:[%s11576_s5 + $0x220] ss:$16 sps:$4 sm:$0xff]  }
 0x670   :  { %4565 = vmatprep.mubr.bf16.mxu0 %v9606_v2  ;;  %6052 = vmatprep.mubr.bf16.mxu1 %v9606_v2 }
 0x672   :  { %4536 = vmatpush1.bf16.msra.mxu0 %v9267_v14  ;;  %6023 = vmatpush1.bf16.msra.mxu1 %v9270_v15  ;;  %v9344_v14 = vld [vmem:[%s11576_s5 + $0x6a4] ss:$16 sps:$4 sm:$0xff]   ;;  %v9342_v15 = vld [vmem:[%s11576_s5 + $0x6a0] ss:$16 sps:$4 sm:$0xff]  }
 0x673   :  { %4537 = vmatprep.subr.bf16.mxu0 %v9275_v17  ;;  %6024 = vmatprep.subr.bf16.mxu1 %v9278_v21  ;;  %v9347_v17 = vld [vmem:[%s11576_s5 + $0x244] ss:$16 sps:$4 sm:$0xff]  }
 0x674   :  { %v9350_v21 = vld [vmem:[%s11576_s5 + $0x6c4] ss:$16 sps:$4 sm:$0xff]  }
 0x676   :  { %4538 = vmatpush1.bf16.msra.mxu0 %v9273_v36  ;;  %6025 = vmatpush1.bf16.msra.mxu1 %v9276_v22  ;;  %v9345_v36 = vld [vmem:[%s11576_s5 + $0x240] ss:$16 sps:$4 sm:$0xff]  }
 0x677   :  { %4539 = vmatprep.subr.bf16.mxu0 %v9281_v18  ;;  %6026 = vmatprep.subr.bf16.mxu1 %v9284_v37  ;;  %v9348_v22 = vld [vmem:[%s11576_s5 + $0x6c0] ss:$16 sps:$4 sm:$0xff]   ;;  %v9353_v18 = vld [vmem:[%s11576_s5 + $0x264] ss:$16 sps:$4 sm:$0xff]  }
 0x678   :  { %v9356_v37 = vld [vmem:[%s11576_s5 + $0x6e4] ss:$16 sps:$4 sm:$0xff]  }
 0x67a   :  { %4540 = vmatpush1.bf16.msra.mxu0 %v9279_v40  ;;  %6027 = vmatpush1.bf16.msra.mxu1 %v9282_v54  ;;  %v9351_v40 = vld [vmem:[%s11576_s5 + $0x260] ss:$16 sps:$4 sm:$0xff]  }
 0x67b   :  { %4682 = vmatprep.subr.bf16.mxu0 %v9287_v25  ;;  %6210 = vmatprep.subr.bf16.mxu1 %v9290_v27  ;;  %v9354_v54 = vld [vmem:[%s11576_s5 + $0x6e0] ss:$16 sps:$4 sm:$0xff]   ;;  %v9359_v25 = vld [vmem:[%s11576_s5 + $0x20c] ss:$16 sps:$4 sm:$0xff]   ;;  %v9362_v27 = vld [vmem:[%s11576_s5 + $0x704] ss:$16 sps:$4 sm:$0xff]  }
 0x67d   :  { %7847 = vmatmul.mubr.msk.bf16.vlgmr.msra.gmra.mrb[48].mxu0 %vm800_vm2, %v4408_v12  ;;  %8118 = vmatmul.mubr.msk.bf16.vlgmr.msra.gmra.mrb[24].mxu1 %vm800_vm2, %v10750_v51  ;;  %v9336_v12 = vld [vmem:[%s11576_s5 + $0x680] ss:$16 sps:$4 sm:$0xff]  }
 0x67e   :  { %4683 = vmatpush1.bf16.msra.mxu0 %v9285_v28  ;;  %6211 = vmatpush1.bf16.msra.mxu1 %v9288_v29  ;;  %v9357_v28 = vld [vmem:[%s11576_s5 + $0x208] ss:$16 sps:$4 sm:$0xff]   ;;  %v9360_v29 = vld [vmem:[%s11576_s5 + $0x700] ss:$16 sps:$4 sm:$0xff]  }
 0x67f   :  { %4684 = vmatprep.subr.bf16.mxu0 %v9293_v31  ;;  %6212 = vmatprep.subr.bf16.mxu1 %v9296_v33  ;;  %v10923_v31 = vpack.c.b16 %v10550_v45, %v10550_v45  ;;  %v4793_v33 = vpack.c.b16 %v10557_v20, %v10557_v20  ;;  %v9363_v45 = vld [vmem:[%s11576_s5 + $0x228] ss:$16 sps:$4 sm:$0xff]   ;;  %v9366_v20 = vld [vmem:[%s11576_s5 + $0x720] ss:$16 sps:$4 sm:$0xff]  }
 0x680   :  { %4714 = vmatprep.mubr.bf16.mxu0 %v9606_v2  ;;  %6242 = vmatprep.mubr.bf16.mxu1 %v9606_v2 }
 0x682   :  { %4685 = vmatpush1.bf16.msra.mxu0 %v9291_v19  ;;  %6213 = vmatpush1.bf16.msra.mxu1 %v9294_v3  ;;  %v9365_v19 = vld [vmem:[%s11576_s5 + $0x22c] ss:$16 sps:$4 sm:$0xff]   ;;  %v9368_v3 = vld [vmem:[%s11576_s5 + $0x724] ss:$16 sps:$4 sm:$0xff]  }
 0x683   :  { %4686 = vmatprep.subr.bf16.mxu0 %v9299_v60  ;;  %6214 = vmatprep.subr.bf16.mxu1 %v9302_v46  ;;  %v9371_v60 = vld [vmem:[%s11576_s5 + $0x24c] ss:$16 sps:$4 sm:$0xff]   ;;  %v9374_v46 = vld [vmem:[%s11576_s5 + $0x744] ss:$16 sps:$4 sm:$0xff]  }
 0x686   :  { %4687 = vmatpush1.bf16.msra.mxu0 %v9297_v58  ;;  %6215 = vmatpush1.bf16.msra.mxu1 %v9300_v52  ;;  %v9369_v58 = vld [vmem:[%s11576_s5 + $0x248] ss:$16 sps:$4 sm:$0xff]   ;;  %v9372_v52 = vld [vmem:[%s11576_s5 + $0x740] ss:$16 sps:$4 sm:$0xff]  }
 0x687   :  { %4688 = vmatprep.subr.bf16.mxu0 %v9305_v53  ;;  %6216 = vmatprep.subr.bf16.mxu1 %v9308_v44  ;;  %v9377_v53 = vld [vmem:[%s11576_s5 + $0x26c] ss:$16 sps:$4 sm:$0xff]   ;;  %v9380_v44 = vld [vmem:[%s11576_s5 + $0x764] ss:$16 sps:$4 sm:$0xff]  }
 0x68a   :  { %4689 = vmatpush1.bf16.msra.mxu0 %v9303_v13  ;;  %6217 = vmatpush1.bf16.msra.mxu1 %v9306_v55  ;;  %v9375_v13 = vld [vmem:[%s11576_s5 + $0x268] ss:$16 sps:$4 sm:$0xff]   ;;  %v9378_v55 = vld [vmem:[%s11576_s5 + $0x760] ss:$16 sps:$4 sm:$0xff]  }
 0x68b   :  { %4723 = vmatprep.subr.bf16.mxu0 %v9311_v62  ;;  %6405 = vmatprep.subr.bf16.mxu1 %v9314_v16  ;;  %v9383_v62 = vld [vmem:[%s11576_s5 + $0x284] ss:$16 sps:$4 sm:$0xff]  }
 0x68c   :  { %v9386_v16 = vld [vmem:[%s11576_s5 + $0x784] ss:$16 sps:$4 sm:$0xff]  }
 0x68d   :  { %7880 = vmatmul.mubr.msk.bf16.vlgmr.msra.gmra.mrb[52].mxu0 %vm800_vm2, %v4598_v47  ;;  %8152 = vmatmul.mubr.msk.bf16.vlgmr.msra.gmra.mrb[28].mxu1 %vm800_vm2, %v10809_v32 }
 0x68e   :  { %4724 = vmatpush1.bf16.msra.mxu0 %v9309_v42  ;;  %6406 = vmatpush1.bf16.msra.mxu1 %v9312_v56  ;;  %v9381_v42 = vld [vmem:[%s11576_s5 + $0x280] ss:$16 sps:$4 sm:$0xff]  }
 0x68f   :  { %4725 = vmatprep.subr.bf16.mxu0 %v9317_v63  ;;  %6407 = vmatprep.subr.bf16.mxu1 %v9320_v0  ;;  %v9384_v56 = vld [vmem:[%s11576_s5 + $0x780] ss:$16 sps:$4 sm:$0xff]   ;;  %v9389_v63 = vld [vmem:[%s11576_s5 + $0x2a4] ss:$16 sps:$4 sm:$0xff]  }
 0x690   :  { %4755 = vmatprep.mubr.bf16.mxu0 %v9606_v2  ;;  %6437 = vmatprep.mubr.bf16.mxu1 %v9606_v2  ;;  %v9392_v0 = vld [vmem:[%s11576_s5 + $0x7a4] ss:$16 sps:$4 sm:$0xff]  }
 0x692   :  { %4726 = vmatpush1.bf16.msra.mxu0 %v9315_v39  ;;  %6408 = vmatpush1.bf16.msra.mxu1 %v9318_v34  ;;  %v9390_v39 = vld [vmem:[%s11576_s5 + $0x7a0] ss:$16 sps:$4 sm:$0xff]   ;;  %v9395_v34 = vld [vmem:[%s11576_s5 + $0x2c4] ss:$16 sps:$4 sm:$0xff]  }
 0x693   :  { %4727 = vmatprep.subr.bf16.mxu0 %v9323_v4  ;;  %6409 = vmatprep.subr.bf16.mxu1 %v9326_v5  ;;  %v9398_v4 = vld [vmem:[%s11576_s5 + $0x7c4] ss:$16 sps:$4 sm:$0xff]   ;;  %v9393_v5 = vld [vmem:[%s11576_s5 + $0x2c0] ss:$16 sps:$4 sm:$0xff]  }
 0x696   :  { %4728 = vmatpush1.bf16.msra.mxu0 %v9321_v7  ;;  %6410 = vmatpush1.bf16.msra.mxu1 %v9324_v35  ;;  %v9396_v7 = vld [vmem:[%s11576_s5 + $0x7c0] ss:$16 sps:$4 sm:$0xff]   ;;  %v9401_v35 = vld [vmem:[%s11576_s5 + $0x2e4] ss:$16 sps:$4 sm:$0xff]  }
 0x697   :  { %4729 = vmatprep.subr.bf16.mxu0 %v9329_v61  ;;  %6411 = vmatprep.subr.bf16.mxu1 %v9332_v8  ;;  %v9404_v61 = vld [vmem:[%s11576_s5 + $0x7e4] ss:$16 sps:$4 sm:$0xff]   ;;  %v9399_v8 = vld [vmem:[%s11576_s5 + $0x2e0] ss:$16 sps:$4 sm:$0xff]  }
 0x69a   :  { %4730 = vmatpush1.bf16.msra.mxu0 %v9327_v26  ;;  %6412 = vmatpush1.bf16.msra.mxu1 %v9330_v50  ;;  %v9402_v26 = vld [vmem:[%s11576_s5 + $0x7e0] ss:$16 sps:$4 sm:$0xff]   ;;  %v9407_v50 = vld [vmem:[%s11576_s5 + $0x28c] ss:$16 sps:$4 sm:$0xff]  }
 0x69b   :  { %4877 = vmatprep.subr.bf16.mxu0 %v9335_v9  ;;  %6594 = vmatprep.subr.bf16.mxu1 %v9338_v10  ;;  %v9405_v9 = vld [vmem:[%s11576_s5 + $0x288] ss:$16 sps:$4 sm:$0xff]   ;;  %v4982_v10 = vpack.c.b16 %v10487_v49, %v10487_v49  ;;  %v9413_v49 = vld [vmem:[%s11576_s5 + $0x2cc] ss:$16 sps:$4 sm:$0xff]  }
 0x69d   :  { %7881 = vmatmul.mubr.msk.bf16.vlgmr.msra.gmra.mrb[56].mxu0 %vm800_vm2, %v4598_v47  ;;  %8186 = vmatmul.mubr.msk.bf16.vlgmr.msra.gmra.mrb[32].mxu1 %vm800_vm2, %v10866_v59  ;;  %v10982_v47 = vpack.c.b16 %v10577_v43, %v10577_v43  ;;  %v9387_v43 = vld [vmem:[%s11576_s5 + $0x2a0] ss:$16 sps:$4 sm:$0xff]  }
 0x69e   :  { %4878 = vmatpush1.bf16.msra.mxu0 %v9333_v1  ;;  %6595 = vmatpush1.bf16.msra.mxu1 %v9336_v12  ;;  %v11035_v1 = vpack.c.b16 %v10583_v24, %v10583_v24  ;;  %v9410_v12 = vld [vmem:[%s11576_s5 + $0x2ac] ss:$16 sps:$4 sm:$0xff]   ;;  %v9411_v24 = vld [vmem:[%s11576_s5 + $0x2c8] ss:$16 sps:$4 sm:$0xff]  }
 0x69f   :  { %4879 = vmatprep.subr.bf16.mxu0 %v9341_v38  ;;  %6596 = vmatprep.subr.bf16.mxu1 %v9344_v14  ;;  %v9408_v38 = vld [vmem:[%s11576_s5 + $0x2a8] ss:$16 sps:$4 sm:$0xff]   ;;  %v9416_v14 = vld [vmem:[%s11576_s5 + $0x2ec] ss:$16 sps:$4 sm:$0xff]  }
 0x6a0   :  { %4909 = vmatprep.mubr.bf16.mxu0 %v9606_v2  ;;  %6626 = vmatprep.mubr.bf16.mxu1 %v9606_v2 }
 0x6a2   :  { %4880 = vmatpush1.bf16.msra.mxu0 %v9339_v6  ;;  %6597 = vmatpush1.bf16.msra.mxu1 %v9342_v15  ;;  %v9414_v6 = vld [vmem:[%s11576_s5 + $0x2e8] ss:$16 sps:$4 sm:$0xff]   ;;  %v9419_v15 = vld [vmem:[%s11576_s5 + $0x304] ss:$16 sps:$4 sm:$0xff]  }
 0x6a3   :  { %4881 = vmatprep.subr.bf16.mxu0 %v9347_v17  ;;  %6598 = vmatprep.subr.bf16.mxu1 %v9350_v21  ;;  %v9417_v17 = vld [vmem:[%s11576_s5 + $0x300] ss:$16 sps:$4 sm:$0xff]   ;;  %v9422_v21 = vld [vmem:[%s11576_s5 + $0x324] ss:$16 sps:$4 sm:$0xff]  }
 0x6a6   :  { %4882 = vmatpush1.bf16.msra.mxu0 %v9345_v36  ;;  %6599 = vmatpush1.bf16.msra.mxu1 %v9348_v22  ;;  %v9420_v36 = vld [vmem:[%s11576_s5 + $0x320] ss:$16 sps:$4 sm:$0xff]   ;;  %v9425_v22 = vld [vmem:[%s11576_s5 + $0x344] ss:$16 sps:$4 sm:$0xff]  }
 0x6a7   :  { %4883 = vmatprep.subr.bf16.mxu0 %v9353_v18  ;;  %6600 = vmatprep.subr.bf16.mxu1 %v9356_v37  ;;  %v9423_v18 = vld [vmem:[%s11576_s5 + $0x340] ss:$16 sps:$4 sm:$0xff]   ;;  %v9428_v37 = vld [vmem:[%s11576_s5 + $0x364] ss:$16 sps:$4 sm:$0xff]  }
 0x6aa   :  { %4884 = vmatpush1.bf16.msra.mxu0 %v9351_v40  ;;  %6601 = vmatpush1.bf16.msra.mxu1 %v9354_v54  ;;  %v9426_v40 = vld [vmem:[%s11576_s5 + $0x360] ss:$16 sps:$4 sm:$0xff]   ;;  %v9431_v54 = vld [vmem:[%s11576_s5 + $0x30c] ss:$16 sps:$4 sm:$0xff]  }
 0x6ab   :  { %4918 = vmatprep.subr.bf16.mxu0 %v9359_v25  ;;  %6784 = vmatprep.subr.bf16.mxu1 %v9362_v27  ;;  %v9429_v25 = vld [vmem:[%s11576_s5 + $0x308] ss:$16 sps:$4 sm:$0xff]   ;;  %v5172_v27 = vpack.c.b16 %v10560_v41, %v10560_v41 }
 0x6ac   :  { %v9435_v41 = vld [vmem:[%s11576_s5 + $0x348] ss:$16 sps:$4 sm:$0xff]  }
 0x6ad   :  { %7914 = vmatmul.mubr.msk.bf16.vlgmr.msra.gmra.mrb[60].mxu0 %vm800_vm2, %v4793_v33  ;;  %8220 = vmatmul.mubr.msk.bf16.vlgmr.msra.gmra.mrb[36].mxu1 %vm800_vm2, %v10923_v31 }
 0x6ae   :  { %4919 = vmatpush1.bf16.msra.mxu0 %v9357_v28  ;;  %6785 = vmatpush1.bf16.msra.mxu1 %v9360_v29  ;;  %v9434_v28 = vld [vmem:[%s11576_s5 + $0x32c] ss:$16 sps:$4 sm:$0xff]   ;;  %v9432_v29 = vld [vmem:[%s11576_s5 + $0x328] ss:$16 sps:$4 sm:$0xff]  }
 0x6af   :  { %4920 = vmatprep.subr.bf16.mxu0 %v9365_v19  ;;  %6786 = vmatprep.subr.bf16.mxu1 %v9368_v3  ;;  %v9440_v19 = vld [vmem:[%s11576_s5 + $0x36c] ss:$16 sps:$4 sm:$0xff]   ;;  %v9438_v3 = vld [vmem:[%s11576_s5 + $0x368] ss:$16 sps:$4 sm:$0xff]  }
 0x6b0   :  { %4950 = vmatprep.mubr.bf16.mxu0 %v9606_v2  ;;  %6816 = vmatprep.mubr.bf16.mxu1 %v9606_v2 }
 0x6b2   :  { %4921 = vmatpush1.bf16.msra.mxu0 %v9363_v45  ;;  %6787 = vmatpush1.bf16.msra.mxu1 %v9366_v20  ;;  %v9443_v45 = vld [vmem:[%s11576_s5 + $0x38c] ss:$16 sps:$4 sm:$0xff]   ;;  %v9441_v20 = vld [vmem:[%s11576_s5 + $0x388] ss:$16 sps:$4 sm:$0xff]  }
 0x6b3   :  { %4922 = vmatprep.subr.bf16.mxu0 %v9371_v60  ;;  %6788 = vmatprep.subr.bf16.mxu1 %v9374_v46  ;;  %v9446_v60 = vld [vmem:[%s11576_s5 + $0x3ac] ss:$16 sps:$4 sm:$0xff]   ;;  %v9444_v46 = vld [vmem:[%s11576_s5 + $0x3a8] ss:$16 sps:$4 sm:$0xff]  }
 0x6b6   :  { %4923 = vmatpush1.bf16.msra.mxu0 %v9369_v58  ;;  %6789 = vmatpush1.bf16.msra.mxu1 %v9372_v52  ;;  %v9449_v58 = vld [vmem:[%s11576_s5 + $0x3cc] ss:$16 sps:$4 sm:$0xff]   ;;  %v9447_v52 = vld [vmem:[%s11576_s5 + $0x3c8] ss:$16 sps:$4 sm:$0xff]  }
 0x6b7   :  { %4924 = vmatprep.subr.bf16.mxu0 %v9377_v53  ;;  %6790 = vmatprep.subr.bf16.mxu1 %v9380_v44  ;;  %v9452_v53 = vld [vmem:[%s11576_s5 + $0x3ec] ss:$16 sps:$4 sm:$0xff]   ;;  %v9450_v44 = vld [vmem:[%s11576_s5 + $0x3e8] ss:$16 sps:$4 sm:$0xff]  }
 0x6ba   :  { %4925 = vmatpush1.bf16.msra.mxu0 %v9375_v13  ;;  %6791 = vmatpush1.bf16.msra.mxu1 %v9378_v55  ;;  %v9455_v13 = vld [vmem:[%s11576_s5 + $0x40c] ss:$16 sps:$4 sm:$0xff]   ;;  %v9453_v55 = vld [vmem:[%s11576_s5 + $0x408] ss:$16 sps:$4 sm:$0xff]  }
 0x6bb   :  { %5066 = vmatprep.subr.bf16.mxu0 %v9383_v62  ;;  %6974 = vmatprep.subr.bf16.mxu1 %v9386_v16  ;;  %v9458_v62 = vld [vmem:[%s11576_s5 + $0x42c] ss:$16 sps:$4 sm:$0xff]   ;;  %v9456_v16 = vld [vmem:[%s11576_s5 + $0x428] ss:$16 sps:$4 sm:$0xff]  }
 0x6bd   :  { %7915 = vmatmul.mubr.msk.bf16.vlgmr.msra.gmra.mrb[64].mxu0 %vm800_vm2, %v4793_v33  ;;  %8254 = vmatmul.mubr.msk.bf16.vlgmr.msra.gmra.mrb[40].mxu1 %vm800_vm2, %v10982_v47  ;;  %v9437_v33 = vld [vmem:[%s11576_s5 + $0x34c] ss:$16 sps:$4 sm:$0xff]  }
 0x6be   :  { %5067 = vmatpush1.bf16.msra.mxu0 %v9381_v42  ;;  %6975 = vmatpush1.bf16.msra.mxu1 %v9384_v56  ;;  %v9461_v42 = vld [vmem:[%s11576_s5 + $0x44c] ss:$16 sps:$4 sm:$0xff]  }
 0x6bf   :  { %5068 = vmatprep.subr.bf16.mxu0 %v9389_v63  ;;  %6976 = vmatprep.subr.bf16.mxu1 %v9392_v0 }
 0x6c0   :  { %5098 = vmatprep.mubr.bf16.mxu0 %v9606_v2  ;;  %7006 = vmatprep.mubr.bf16.mxu1 %v9606_v2 }
 0x6c2   :  { %5069 = vmatpush1.bf16.msra.mxu0 %v9387_v43  ;;  %6977 = vmatpush1.bf16.msra.mxu1 %v9390_v39 }
 0x6c3   :  { %5070 = vmatprep.subr.bf16.mxu0 %v9395_v34  ;;  %6978 = vmatprep.subr.bf16.mxu1 %v9398_v4 }
 0x6c6   :  { %5071 = vmatpush1.bf16.msra.mxu0 %v9393_v5  ;;  %6979 = vmatpush1.bf16.msra.mxu1 %v9396_v7  ;;  %v9464_v7 = vld [vmem:[%s11576_s5 + $0x46c] ss:$16 sps:$4 sm:$0xff]  }
 0x6c7   :  { %5072 = vmatprep.subr.bf16.mxu0 %v9401_v35  ;;  %6980 = vmatprep.subr.bf16.mxu1 %v9404_v61  ;;  %v9462_v35 = vld [vmem:[%s11576_s5 + $0x468] ss:$16 sps:$4 sm:$0xff]   ;;  %v9467_v61 = vld [vmem:[%s11576_s5 + $0x48c] ss:$16 sps:$4 sm:$0xff]  }
 0x6ca   :  { %5073 = vmatpush1.bf16.msra.mxu0 %v9399_v8  ;;  %6981 = vmatpush1.bf16.msra.mxu1 %v9402_v26  ;;  %v9465_v8 = vld [vmem:[%s11576_s5 + $0x488] ss:$16 sps:$4 sm:$0xff]   ;;  %v9470_v26 = vld [vmem:[%s11576_s5 + $0x4ac] ss:$16 sps:$4 sm:$0xff]  }
 0x6cb   :  { %5107 = vmatprep.subr.bf16.mxu0 %v9407_v50  ;;  %v9468_v50 = vld [vmem:[%s11576_s5 + $0x4a8] ss:$16 sps:$4 sm:$0xff]  }
 0x6cd   :  { %7948 = vmatmul.mubr.msk.bf16.vlgmr.msra.gmra.mrb[68].mxu0 %vm800_vm2, %v4982_v10  ;;  %8288 = vmatmul.mubr.msk.bf16.vlgmr.msra.gmra.mrb[44].mxu1 %vm800_vm2, %v11035_v1 }
 0x6ce   :  { %5108 = vmatpush1.bf16.msra.mxu0 %v9405_v9  ;;  %5139 = vmatprep.mubr.bf16.mxu0 %v9606_v2  ;;  %v9473_v9 = vld [vmem:[%s11576_s5 + $0x4cc] ss:$16 sps:$4 sm:$0xff]  }
 0x6cf   :  { %5109 = vmatprep.subr.bf16.mxu0 %v9410_v12 }
 0x6d2   :  { %5110 = vmatpush1.bf16.msra.mxu0 %v9408_v38 }
 0x6d3   :  { %5111 = vmatprep.subr.bf16.mxu0 %v9413_v49 }
 0x6d6   :  { %5112 = vmatpush1.bf16.msra.mxu0 %v9411_v24 }
 0x6d7   :  { %5113 = vmatprep.subr.bf16.mxu0 %v9416_v14 }
 0x6da   :  { %5114 = vmatpush1.bf16.msra.mxu0 %v9414_v6 }
 0x6db   :  { %5256 = vmatprep.subr.bf16.mxu0 %v9419_v15  ;;  %v9471_v15 = vld [vmem:[%s11576_s5 + $0x4c8] ss:$16 sps:$4 sm:$0xff]  }
 0x6dd   :  { %7949 = vmatmul.mubr.msk.bf16.vlgmr.msra.gmra.mrb[72].mxu0 %vm800_vm2, %v4982_v10 }
 0x6de   :  { %5257 = vmatpush1.bf16.msra.mxu0 %v9417_v17  ;;  %5288 = vmatprep.mubr.bf16.mxu0 %v9606_v2 }
 0x6df   :  { %5258 = vmatprep.subr.bf16.mxu0 %v9422_v21 }
 0x6e2   :  { %5259 = vmatpush1.bf16.msra.mxu0 %v9420_v36  ;;  %v9476_v36 = vld [vmem:[%s11576_s5 + $0x4ec] ss:$16 sps:$4 sm:$0xff]  }
 0x6e3   :  { %5260 = vmatprep.subr.bf16.mxu0 %v9425_v22  ;;  %v9474_v22 = vld [vmem:[%s11576_s5 + $0x4e8] ss:$16 sps:$4 sm:$0xff]  }
 0x6e6   :  { %5261 = vmatpush1.bf16.msra.mxu0 %v9423_v18  ;;  %v9479_v18 = vld [vmem:[%s11576_s5 + $0x50c] ss:$16 sps:$4 sm:$0xff]  }
 0x6e7   :  { %5262 = vmatprep.subr.bf16.mxu0 %v9428_v37  ;;  %v9477_v37 = vld [vmem:[%s11576_s5 + $0x508] ss:$16 sps:$4 sm:$0xff]  }
 0x6ea   :  { %5263 = vmatpush1.bf16.msra.mxu0 %v9426_v40  ;;  %v9482_v40 = vld [vmem:[%s11576_s5 + $0x52c] ss:$16 sps:$4 sm:$0xff]  }
 0x6eb   :  { %5297 = vmatprep.subr.bf16.mxu0 %v9431_v54  ;;  %v9480_v54 = vld [vmem:[%s11576_s5 + $0x528] ss:$16 sps:$4 sm:$0xff]  }
 0x6ed   :  { %7982 = vmatmul.mubr.msk.bf16.vlgmr.msra.gmra.mrb[76].mxu0 %vm800_vm2, %v5172_v27 }
 0x6ee   :  { %5298 = vmatpush1.bf16.msra.mxu0 %v9429_v25  ;;  %5329 = vmatprep.mubr.bf16.mxu0 %v9606_v2  ;;  %v9485_v25 = vld [vmem:[%s11576_s5 + $0x54c] ss:$16 sps:$4 sm:$0xff]  }
 0x6ef   :  { %5299 = vmatprep.subr.bf16.mxu0 %v9434_v28 }
 0x6f2   :  { %5300 = vmatpush1.bf16.msra.mxu0 %v9432_v29 }
 0x6f3   :  { %5301 = vmatprep.subr.bf16.mxu0 %v9437_v33 }
 0x6f6   :  { %5302 = vmatpush1.bf16.msra.mxu0 %v9435_v41 }
 0x6f7   :  { %5303 = vmatprep.subr.bf16.mxu0 %v9440_v19 }
 0x6fa   :  { %5304 = vmatpush1.bf16.msra.mxu0 %v9438_v3 }
 0x6fb   :  { %5487 = vmatprep.subr.bf16.mxu0 %v9443_v45  ;;  %v9483_v45 = vld [vmem:[%s11576_s5 + $0x548] ss:$16 sps:$4 sm:$0xff]  }
 0x6fd   :  { %7983 = vmatmul.mubr.msk.bf16.vlgmr.msra.gmra.mrb[80].mxu0 %vm800_vm2, %v5172_v27 }
 0x6fe   :  { %5488 = vmatpush1.bf16.msra.mxu0 %v9441_v20  ;;  %5519 = vmatprep.mubr.bf16.mxu0 %v9606_v2 }
 0x6ff   :  { %5489 = vmatprep.subr.bf16.mxu0 %v9446_v60 }
 0x702   :  { %5490 = vmatpush1.bf16.msra.mxu0 %v9444_v46  ;;  %v9488_v46 = vld [vmem:[%s11576_s5 + $0x56c] ss:$16 sps:$4 sm:$0xff]  }
 0x703   :  { %5491 = vmatprep.subr.bf16.mxu0 %v9449_v58  ;;  %v9549_v58 = vld [vmem:[%s11578_s7 + $0x40] sm:$0xff]  }
 0x704   :  { %8467 = vmatprep.subr.bf16.mxu1 %v9549_v58  ;;  %v9560_v58 = vld [vmem:[%s11578_s7 + $0x28] sm:$0xff]  }
 0x706   :  { %5492 = vmatpush1.bf16.msra.mxu0 %v9447_v52  ;;  %v9550_v52 = vld [vmem:[%s11578_s7] sm:$0xff]  }
 0x707   :  { %5493 = vmatprep.subr.bf16.mxu0 %v9452_v53  ;;  %v9486_v53 = vld [vmem:[%s11576_s5 + $0x568] ss:$16 sps:$4 sm:$0xff]   ;;  %8468 = vmatpush3.bf16.msra.mxu1 %v9550_v52 }
 0x70a   :  { %5494 = vmatpush1.bf16.msra.mxu0 %v9450_v44  ;;  %v9491_v44 = vld [vmem:[%s11576_s5 + $0x58c] ss:$16 sps:$4 sm:$0xff]  }
 0x70b   :  { %5682 = vmatprep.subr.bf16.mxu0 %v9455_v13  ;;  %v9489_v13 = vld [vmem:[%s11576_s5 + $0x588] ss:$16 sps:$4 sm:$0xff]  }
 0x70d   :  { %8017 = vmatmul.mubr.msk.bf16.vlgmr.msra.gmra.mrb[84].mxu0 %vm800_vm2, %v10568_v48  ;;  %v9459_v48 = vld [vmem:[%s11576_s5 + $0x448] ss:$16 sps:$4 sm:$0xff]  }
 0x70e   :  { %5683 = vmatpush1.bf16.msra.mxu0 %v9453_v55  ;;  %5714 = vmatprep.mubr.bf16.mxu0 %v9606_v2  ;;  %v9494_v55 = vld [vmem:[%s11576_s5 + $0x5ac] ss:$16 sps:$4 sm:$0xff]  }
 0x70f   :  { %5684 = vmatprep.subr.bf16.mxu0 %v9458_v62  ;;  %v9492_v62 = vld [vmem:[%s11576_s5 + $0x5a8] ss:$16 sps:$4 sm:$0xff]  }
 0x710   :  { %v4172_v56 = vpop.f32.mrb[8].mxu1  ;;  %v4213_v63 = vpop.f32.mrb[32].mxu0 }
 0x711   :  { %v4174_v0 = vpop.f32.mrb[9].mxu1  ;;  %v4215_v43 = vpop.f32.mrb[33].mxu0 }
 0x712   :  { %5685 = vmatpush1.bf16.msra.mxu0 %v9456_v16  ;;  %v4176_v39 = vpop.f32.mrb[10].mxu1  ;;  %v4217_v34 = vpop.f32.mrb[34].mxu0  ;;  %v9497_v16 = vld [vmem:[%s11576_s5 + $0x5cc] ss:$16 sps:$4 sm:$0xff]  }
 0x713   :  { %v4177_v4 = vpop.f32.mrb[11].mxu1  ;;  %v4218_v5 = vpop.f32.mrb[35].mxu0  ;;  %5686 = vmatprep.subr.bf16.mxu0 %v9461_v42 }
 0x716   :  { %5687 = vmatpush1.bf16.msra.mxu0 %v9459_v48  ;;  %v9495_v48 = vld [vmem:[%s11576_s5 + $0x5c8] ss:$16 sps:$4 sm:$0xff]  }
 0x717   :  { %5688 = vmatprep.subr.bf16.mxu0 %v9464_v7  ;;  %v9500_v7 = vld [vmem:[%s11576_s5 + $0x5ec] ss:$16 sps:$4 sm:$0xff]  }
 0x71a   :  { %5689 = vmatpush1.bf16.msra.mxu0 %v9462_v35  ;;  %v9498_v35 = vld [vmem:[%s11576_s5 + $0x5e8] ss:$16 sps:$4 sm:$0xff]  }
 0x71b   :  { %5871 = vmatprep.subr.bf16.mxu0 %v9467_v61  ;;  %v9503_v61 = vld [vmem:[%s11576_s5 + $0x60c] ss:$16 sps:$4 sm:$0xff]  }
 0x71d   :  { %8051 = vmatmul.mubr.msk.bf16.vlgmr.msra.gmra.mrb[88].mxu0 %vm800_vm2, %v10632_v23 }
 0x71e   :  { %5872 = vmatpush1.bf16.msra.mxu0 %v9465_v8  ;;  %5903 = vmatprep.mubr.bf16.mxu0 %v9606_v2  ;;  %v9501_v8 = vld [vmem:[%s11576_s5 + $0x608] ss:$16 sps:$4 sm:$0xff]  }
 0x71f   :  { %5873 = vmatprep.subr.bf16.mxu0 %v9470_v26  ;;  %v9506_v26 = vld [vmem:[%s11576_s5 + $0x62c] ss:$16 sps:$4 sm:$0xff]  }
 0x720   :  { %v4340_v10 = vpop.f32.mrb[36].mxu0  ;;  %v11184_v12 = vpop.f32.mrb[12].mxu1 }
 0x721   :  { %v4341_v38 = vadd.f32 %v4340_v10, %v4172_v56  ;;  %v4342_v49 = vpop.f32.mrb[37].mxu0  ;;  %v11186_v24 = vpop.f32.mrb[13].mxu1 }
 0x722   :  { %v4343_v23 = vadd.f32 %v4342_v49, %v4174_v0  ;;  %v4344_v14 = vpop.f32.mrb[38].mxu0  ;;  %v5484_v6 = vpop.f32.mrb[14].mxu1  ;;  %5874 = vmatpush1.bf16.msra.mxu0 %v9468_v50  ;;  %v9504_v50 = vld [vmem:[%s11576_s5 + $0x628] ss:$16 sps:$4 sm:$0xff]  }
 0x723   :  { %v4345_v17 = vpop.f32.mrb[39].mxu0  ;;  %v5485_v21 = vpop.f32.mrb[15].mxu1  ;;  %5875 = vmatprep.subr.bf16.mxu0 %v9473_v9  ;;  %v9509_v9 = vld [vmem:[%s11576_s5 + $0x64c] ss:$16 sps:$4 sm:$0xff]  }
 0x724   :  { %v9551_v49 = vld [vmem:[%s11578_s7 + $0x48] sm:$0xff]  }
 0x725   :  { %8469 = vmatprep.subr.bf16.mxu1 %v9551_v49 }
 0x726   :  { %5876 = vmatpush1.bf16.msra.mxu0 %v9471_v15 }
 0x727   :  { %5877 = vmatprep.subr.bf16.mxu0 %v9476_v36 }
 0x72a   :  { %5878 = vmatpush1.bf16.msra.mxu0 %v9474_v22  ;;  %v9507_v22 = vld [vmem:[%s11576_s5 + $0x648] ss:$16 sps:$4 sm:$0xff]  }
 0x72b   :  { %6061 = vmatprep.subr.bf16.mxu0 %v9479_v18 }
 0x72d   :  { %8085 = vmatmul.mubr.msk.bf16.vlgmr.msra.gmra.mrb[92].mxu0 %vm800_vm2, %v10693_v11 }
 0x72e   :  { %6062 = vmatpush1.bf16.msra.mxu0 %v9477_v37  ;;  %6093 = vmatprep.mubr.bf16.mxu0 %v9606_v2 }
 0x72f   :  { %6063 = vmatprep.subr.bf16.mxu0 %v9482_v40  ;;  %v9512_v40 = vld [vmem:[%s11576_s5 + $0x66c] ss:$16 sps:$4 sm:$0xff]  }
 0x730   :  { %v4381_v27 = vpop.f32.mrb[40].mxu0  ;;  %v11215_v28 = vpop.f32.mrb[16].mxu1 }
 0x731   :  { %v11217_v29 = vadd.f32 %v4381_v27, %v4213_v63  ;;  %v4383_v33 = vpop.f32.mrb[41].mxu0  ;;  %v11219_v41 = vpop.f32.mrb[17].mxu1  ;;  %v9510_v27 = vld [vmem:[%s11576_s5 + $0x668] ss:$16 sps:$4 sm:$0xff]  }
 0x732   :  { %v11221_v11 = vadd.f32 %v4383_v33, %v4215_v43  ;;  %v4385_v19 = vpop.f32.mrb[42].mxu0  ;;  %v5679_v3 = vpop.f32.mrb[18].mxu1  ;;  %6064 = vmatpush1.bf16.msra.mxu0 %v9480_v54  ;;  %v9554_v54 = vld [vmem:[%s11578_s7 + $0x10] sm:$0xff]   ;;  %v9556_v33 = vld [vmem:[%s11578_s7 + $0x18] sm:$0xff]  }
 0x733   :  { %v4386_v20 = vpop.f32.mrb[43].mxu0  ;;  %v5680_v60 = vpop.f32.mrb[19].mxu1  ;;  %6065 = vmatprep.subr.bf16.mxu0 %v9485_v25  ;;  %v9555_v25 = vld [vmem:[%s11578_s7 + $0x58] sm:$0xff]  }
 0x734   :  { %v9513_v19 = vld [vmem:[%s11576_s5 + $0x688] ss:$16 sps:$4 sm:$0xff]   ;;  %v9518_v3 = vld [vmem:[%s11576_s5 + $0x6ac] ss:$16 sps:$4 sm:$0xff]  }
 0x735   :  { %v9559_v20 = vld [vmem:[%s11578_s7 + $0x68] sm:$0xff]  }
 0x736   :  { %6066 = vmatpush1.bf16.msra.mxu0 %v9483_v45  ;;  %v9558_v45 = vld [vmem:[%s11578_s7 + $0x20] sm:$0xff]   ;;  %v9516_v60 = vld [vmem:[%s11576_s5 + $0x6a8] ss:$16 sps:$4 sm:$0xff]  }
 0x737   :  { %6067 = vmatprep.subr.bf16.mxu0 %v9488_v46  ;;  %v9521_v46 = vld [vmem:[%s11576_s5 + $0x6cc] ss:$16 sps:$4 sm:$0xff]  }
 0x73a   :  { %6068 = vmatpush1.bf16.msra.mxu0 %v9486_v53 }
 0x73b   :  { %6251 = vmatprep.subr.bf16.mxu0 %v9491_v44 }
 0x73d   :  { %8119 = vmatmul.mubr.msk.bf16.vlgmr.msra.gmra.mrb[96].mxu0 %vm800_vm2, %v10750_v51 }
 0x73e   :  { %6252 = vmatpush1.bf16.msra.mxu0 %v9489_v13  ;;  %6283 = vmatprep.mubr.bf16.mxu0 %v9606_v2 }
 0x73f   :  { %6253 = vmatprep.subr.bf16.mxu0 %v9494_v55 }
 0x740   :  { %v4526_v42 = vpop.f32.mrb[44].mxu0  ;;  %v11256_v56 = vpop.f32.mrb[20].mxu1 }
 0x741   :  { %v11258_v63 = vadd.f32 %v4526_v42, %v4341_v38  ;;  %v4528_v0 = vpop.f32.mrb[45].mxu0  ;;  %v11260_v43 = vpop.f32.mrb[21].mxu1 }
 0x742   :  { %v11262_v51 = vadd.f32 %v4528_v0, %v4343_v23  ;;  %v4530_v39 = vpop.f32.mrb[46].mxu0  ;;  %v5868_v34 = vpop.f32.mrb[22].mxu1  ;;  %6254 = vmatpush1.bf16.msra.mxu0 %v9492_v62  ;;  %v9553_v23 = vld [vmem:[%s11578_s7 + $0x50] sm:$0xff]   ;;  %v9519_v0 = vld [vmem:[%s11576_s5 + $0x6c8] ss:$16 sps:$4 sm:$0xff]  }
 0x743   :  { %v4531_v4 = vpop.f32.mrb[47].mxu0  ;;  %v5869_v5 = vpop.f32.mrb[23].mxu1  ;;  %6255 = vmatprep.subr.bf16.mxu0 %v9497_v16 }
 0x744   :  { %v9522_v4 = vld [vmem:[%s11576_s5 + $0x6e8] ss:$16 sps:$4 sm:$0xff]   ;;  %v9527_v5 = vld [vmem:[%s11576_s5 + $0x70c] ss:$16 sps:$4 sm:$0xff]  }
 0x746   :  { %6256 = vmatpush1.bf16.msra.mxu0 %v9495_v48  ;;  %v9563_v48 = vld [vmem:[%s11578_s7 + $0x78] sm:$0xff]  }
 0x747   :  { %6257 = vmatprep.subr.bf16.mxu0 %v9500_v7  ;;  %v9564_v7 = vld [vmem:[%s11578_s7 + $0x38] sm:$0xff]  }
 0x74a   :  { %6258 = vmatpush1.bf16.msra.mxu0 %v9498_v35  ;;  %v9525_v35 = vld [vmem:[%s11576_s5 + $0x708] ss:$16 sps:$4 sm:$0xff]  }
 0x74b   :  { %6446 = vmatprep.subr.bf16.mxu0 %v9503_v61  ;;  %v9530_v61 = vld [vmem:[%s11576_s5 + $0x72c] ss:$16 sps:$4 sm:$0xff]  }
 0x74d   :  { %8153 = vmatmul.mubr.msk.bf16.vlgmr.msra.gmra.mrb[100].mxu0 %vm800_vm2, %v10809_v32  ;;  %v9552_v32 = vld [vmem:[%s11578_s7 + $0x8] sm:$0xff]  }
 0x74e   :  { %6447 = vmatpush1.bf16.msra.mxu0 %v9501_v8  ;;  %6478 = vmatprep.mubr.bf16.mxu0 %v9606_v2  ;;  %v9528_v8 = vld [vmem:[%s11576_s5 + $0x728] ss:$16 sps:$4 sm:$0xff]  }
 0x74f   :  { %6448 = vmatprep.subr.bf16.mxu0 %v9506_v26  ;;  %8470 = vmatpush3.bf16.msra.mxu1 %v9552_v32  ;;  %v9533_v26 = vld [vmem:[%s11576_s5 + $0x74c] ss:$16 sps:$4 sm:$0xff]  }
 0x750   :  { %v4567_v10 = vpop.f32.mrb[48].mxu0  ;;  %v11291_v38 = vpop.f32.mrb[24].mxu1  ;;  %8471 = vmatprep.subr.bf16.mxu1 %v9553_v23 }
 0x751   :  { %v11303_v14 = vadd.f32 %v4567_v10, %v11217_v29  ;;  %v4569_v6 = vpop.f32.mrb[49].mxu0  ;;  %v11305_v15 = vpop.f32.mrb[25].mxu1  ;;  %v9515_v29 = vld [vmem:[%s11576_s5 + $0x68c] ss:$16 sps:$4 sm:$0xff]  }
 0x752   :  { %v11308_v17 = vadd.f32 %v4569_v6, %v11221_v11  ;;  %v4571_v21 = vpop.f32.mrb[50].mxu0  ;;  %v6058_v36 = vpop.f32.mrb[26].mxu1  ;;  %6449 = vmatpush1.bf16.msra.mxu0 %v9504_v50  ;;  %v9557_v11 = vld [vmem:[%s11578_s7 + $0x60] sm:$0xff]  }
 0x753   :  { %v4572_v18 = vpop.f32.mrb[51].mxu0  ;;  %v6059_v37 = vpop.f32.mrb[27].mxu1  ;;  %6450 = vmatprep.subr.bf16.mxu0 %v9509_v9  ;;  %8472 = vmatpush3.bf16.msra.mxu1 %v9554_v54  ;;  %v9531_v21 = vld [vmem:[%s11576_s5 + $0x748] ss:$16 sps:$4 sm:$0xff]  }
 0x754   :  { %8473 = vmatprep.subr.bf16.mxu1 %v9555_v25  ;;  %v9536_v18 = vld [vmem:[%s11576_s5 + $0x76c] ss:$16 sps:$4 sm:$0xff]   ;;  %v9537_v37 = vld [vmem:[%s11576_s5 + $0x788] ss:$16 sps:$4 sm:$0xff]  }
 0x755   :  { %v9540_v54 = vld [vmem:[%s11576_s5 + $0x7a8] ss:$16 sps:$4 sm:$0xff]   ;;  %v9545_v25 = vld [vmem:[%s11576_s5 + $0x7cc] ss:$16 sps:$4 sm:$0xff]  }
 0x756   :  { %6451 = vmatpush1.bf16.msra.mxu0 %v9507_v22 }
 0x757   :  { %6452 = vmatprep.subr.bf16.mxu0 %v9512_v40  ;;  %8474 = vmatpush3.bf16.msra.mxu1 %v9556_v33  ;;  %v9542_v40 = vld [vmem:[%s11576_s5 + $0x7ac] ss:$16 sps:$4 sm:$0xff]  }
 0x758   :  { %8475 = vmatprep.subr.bf16.mxu1 %v9557_v11 }
 0x75a   :  { %6453 = vmatpush1.bf16.msra.mxu0 %v9510_v27 }
 0x75b   :  { %6635 = vmatprep.subr.bf16.mxu0 %v9515_v29  ;;  %8476 = vmatpush3.bf16.msra.mxu1 %v9558_v45 }
 0x75c   :  { %8477 = vmatprep.subr.bf16.mxu1 %v9559_v20  ;;  %v9543_v20 = vld [vmem:[%s11576_s5 + $0x7c8] ss:$16 sps:$4 sm:$0xff]  }
 0x75d   :  { %8187 = vmatmul.mubr.msk.bf16.vlgmr.msra.gmra.mrb[104].mxu0 %vm800_vm2, %v10866_v59  ;;  %v9561_v59 = vld [vmem:[%s11578_s7 + $0x70] sm:$0xff]  }
 0x75e   :  { %6636 = vmatpush1.bf16.msra.mxu0 %v9513_v19  ;;  %6667 = vmatprep.mubr.bf16.mxu0 %v9606_v2 }
 0x75f   :  { %6637 = vmatprep.subr.bf16.mxu0 %v9518_v3  ;;  %8478 = vmatpush3.bf16.msra.mxu1 %v9560_v58  ;;  %v9548_v58 = vld [vmem:[%s11576_s5 + $0x7ec] ss:$16 sps:$4 sm:$0xff]  }
 0x760   :  { %v4716_v52 = vpop.f32.mrb[52].mxu0  ;;  %v11358_v53 = vpop.f32.mrb[28].mxu1  ;;  %8479 = vmatprep.subr.bf16.mxu1 %v9561_v59 }
 0x761   :  { %v11364_v44 = vadd.f32 %v4716_v52, %v11258_v63  ;;  %v4718_v13 = vpop.f32.mrb[53].mxu0  ;;  %v11366_v55 = vpop.f32.mrb[29].mxu1  ;;  %v9524_v63 = vld [vmem:[%s11576_s5 + $0x6ec] ss:$16 sps:$4 sm:$0xff]   ;;  %v9546_v52 = vld [vmem:[%s11576_s5 + $0x7e8] ss:$16 sps:$4 sm:$0xff]  }
 0x762   :  { %v11369_v62 = vadd.f32 %v4718_v13, %v11262_v51  ;;  %v4720_v16 = vpop.f32.mrb[54].mxu0  ;;  %v6248_v42 = vpop.f32.mrb[30].mxu1  ;;  %6638 = vmatpush1.bf16.msra.mxu0 %v9516_v60  ;;  %v9562_v51 = vld [vmem:[%s11578_s7 + $0x30] sm:$0xff]  }
 0x763   :  { %v4721_v39 = vpop.f32.mrb[55].mxu0  ;;  %v6249_v34 = vpop.f32.mrb[31].mxu1  ;;  %6639 = vmatprep.subr.bf16.mxu0 %v9521_v46  ;;  %8480 = vmatpush3.bf16.msra.mxu1 %v9562_v51 }
 0x764   :  { %8481 = vmatprep.subr.bf16.mxu1 %v9563_v48 }
 0x766   :  { %6640 = vmatpush1.bf16.msra.mxu0 %v9519_v0 }
 0x767   :  { %6641 = vmatprep.subr.bf16.mxu0 %v9524_v63  ;;  %8482 = vmatpush3.bf16.msra.mxu1 %v9564_v7 }
 0x76a   :  { %6642 = vmatpush1.bf16.msra.mxu0 %v9522_v4 }
 0x76b   :  { %6825 = vmatprep.subr.bf16.mxu0 %v9527_v5 }
 0x76d   :  { %8221 = vmatmul.mubr.msk.bf16.vlgmr.msra.gmra.mrb[108].mxu0 %vm800_vm2, %v10923_v31 }
 0x76e   :  { %6826 = vmatpush1.bf16.msra.mxu0 %v9525_v35  ;;  %6857 = vmatprep.mubr.bf16.mxu0 %v9606_v2 }
 0x76f   :  { %6827 = vmatprep.subr.bf16.mxu0 %v9530_v61 }
 0x770   :  { %v4757_v50 = vpop.f32.mrb[56].mxu0  ;;  %v11407_v9 = vpop.f32.mrb[32].mxu1 }
 0x771   :  { %v4766_v10 = vadd.f32 %v4757_v50, %v11303_v14  ;;  %v4759_v49 = vpop.f32.mrb[57].mxu0  ;;  %v11410_v32 = vpop.f32.mrb[33].mxu1  ;;  %v9534_v14 = vld [vmem:[%s11576_s5 + $0x768] ss:$16 sps:$4 sm:$0xff]  }
 0x772   :  { %v4767_v31 = vadd.f32 %v4759_v49, %v11308_v17  ;;  %v4761_v23 = vpop.f32.mrb[58].mxu0  ;;  %v6443_v6 = vpop.f32.mrb[34].mxu1  ;;  %6828 = vmatpush1.bf16.msra.mxu0 %v9528_v8  ;;  %v9539_v17 = vld [vmem:[%s11576_s5 + $0x78c] ss:$16 sps:$4 sm:$0xff]  }
 0x773   :  { %v4762_v36 = vpop.f32.mrb[59].mxu0  ;;  %v6444_v22 = vpop.f32.mrb[35].mxu1  ;;  %6829 = vmatprep.subr.bf16.mxu0 %v9533_v26  ;;  %v9565_v6 = vld [vmem:[%s11578_s7 + $0x80] sm:$0xff]  }
 0x774   :  { %v9566_v36 = vld [vmem:[%s11578_s7 + $0x88] sm:$0xff]   ;;  %v9567_v22 = vld [vmem:[%s11578_s7 + $0x90] sm:$0xff]  }
 0x776   :  { %6830 = vmatpush1.bf16.msra.mxu0 %v9531_v21 }
 0x777   :  { %6831 = vmatprep.subr.bf16.mxu0 %v9536_v18  ;;  %v9568_v18 = vld [vmem:[%s11578_s7 + $0x98] sm:$0xff]  }
 0x77a   :  { %6832 = vmatpush1.bf16.msra.mxu0 %v9534_v14 }
 0x77b   :  { %7015 = vmatprep.subr.bf16.mxu0 %v9539_v17 }
 0x77d   :  { %8255 = vmatmul.mubr.msk.bf16.vlgmr.msra.gmra.mrb[112].mxu0 %vm800_vm2, %v10982_v47 }
 0x77e   :  { %7016 = vmatpush1.bf16.msra.mxu0 %v9537_v37  ;;  %7047 = vmatprep.mubr.bf16.mxu0 %v9606_v2 }
 0x77f   :  { %7017 = vmatprep.subr.bf16.mxu0 %v9542_v40 }
 0x780   :  { %v4911_v27 = vpop.f32.mrb[60].mxu0  ;;  %v11440_v29 = vpop.f32.mrb[36].mxu1 }
 0x781   :  { %v4959_v33 = vadd.f32 %v4911_v27, %v11364_v44  ;;  %v4913_v11 = vpop.f32.mrb[61].mxu0  ;;  %v11443_v19 = vpop.f32.mrb[37].mxu1 }
 0x782   :  { %v4960_v47 = vadd.f32 %v4913_v11, %v11369_v62  ;;  %v4915_v3 = vpop.f32.mrb[62].mxu0  ;;  %v6632_v45 = vpop.f32.mrb[38].mxu1  ;;  %7018 = vmatpush1.bf16.msra.mxu0 %v9540_v54 }
 0x783   :  { %v4916_v60 = vpop.f32.mrb[63].mxu0  ;;  %v6633_v46 = vpop.f32.mrb[39].mxu1  ;;  %7019 = vmatprep.subr.bf16.mxu0 %v9545_v25  ;;  %v9569_v25 = vld [vmem:[%s11578_s7 + $0xa0] sm:$0xff]  }
 0x786   :  { %7020 = vmatpush1.bf16.msra.mxu0 %v9543_v20 }
 0x787   :  { %7021 = vmatprep.subr.bf16.mxu0 %v9548_v58 }
 0x78a   :  { %7022 = vmatpush1.bf16.msra.mxu0 %v9546_v52 }
 0x78b   :  { %7401 = vmatprep.subr.bf16.mxu0 %v9606_v2 }
 0x78d   :  { %8289 = vmatmul.mubr.msk.bf16.vlgmr.msra.gmra.mrb[116].mxu0 %vm800_vm2, %v11035_v1 }
 0x78e   :  { %7402 = vmatpush1.bf16.msra.mxu0 %v9565_v6  ;;  %v9578_v6 = vld [vmem:[%s11578_s7 + $0xe8] sm:$0xff]  }
 0x78f   :  { %7403 = vmatprep.subr.bf16.mxu0 %v9606_v2 }
 0x790   :  { %v4952_v59 = vpop.f32.mrb[64].mxu0  ;;  %v11458_v44 = vpop.f32.mrb[40].mxu1 }
 0x791   :  { %v4961_v13 = vadd.f32 %v4952_v59, %v4766_v10  ;;  %v4954_v62 = vpop.f32.mrb[65].mxu0  ;;  %v11460_v16 = vpop.f32.mrb[41].mxu1 }
 0x792   :  { %v4962_v42 = vadd.f32 %v4954_v62, %v4767_v31  ;;  %v4956_v0 = vpop.f32.mrb[66].mxu0  ;;  %v6822_v39 = vpop.f32.mrb[42].mxu1  ;;  %7404 = vmatpush1.bf16.msra.mxu0 %v9566_v36 }
 0x793   :  { %v4957_v34 = vpop.f32.mrb[67].mxu0  ;;  %v6823_v63 = vpop.f32.mrb[43].mxu1  ;;  %7405 = vmatprep.subr.bf16.mxu0 %v9606_v2 }
 0x796   :  { %7406 = vmatpush1.bf16.msra.mxu0 %v9567_v22 }
 0x797   :  { %7407 = vmatprep.subr.bf16.mxu0 %v9606_v2 }
 0x79a   :  { %7408 = vmatpush1.bf16.msra.mxu0 %v9568_v18 }
 0x79b   :  { %7409 = vmatprep.subr.bf16.mxu0 %v9606_v2 }
 0x79e   :  { %7410 = vmatpush1.bf16.msra.mxu0 %v9569_v25 }
 0x79f   :  { %7411 = vmatprep.subr.bf16.mxu0 %v9606_v2 }
 0x7a0   :  { %v5100_v51 = vpop.f32.mrb[68].mxu0  ;;  %v11462_v48 = vpop.f32.mrb[44].mxu1 }
 0x7a1   :  { %v5148_v4 = vadd.f32 %v5100_v51, %v4959_v33  ;;  %v5102_v5 = vpop.f32.mrb[69].mxu0  ;;  %v11464_v7 = vpop.f32.mrb[45].mxu1 }
 0x7a2   :  { %v5149_v1 = vadd.f32 %v5102_v5, %v4960_v47  ;;  %v5104_v35 = vpop.f32.mrb[70].mxu0  ;;  %v7012_v61 = vpop.f32.mrb[46].mxu1  ;;  %v9570_v47 = vld [vmem:[%s11578_s7 + $0xa8] sm:$0xff]  }
 0x7a3   :  { %v5105_v8 = vpop.f32.mrb[71].mxu0  ;;  %v7013_v26 = vpop.f32.mrb[47].mxu1  ;;  %7412 = vmatpush1.bf16.msra.mxu0 %v9570_v47  ;;  %v9576_v61 = vld [vmem:[%s11578_s7 + $0xd8] sm:$0xff]  }
 0x7a4   :  { %7413 = vmatprep.subr.bf16.mxu0 %v9606_v2 }
 0x7b0   :  { %v5141_v50 = vpop.f32.mrb[72].mxu0 }
 0x7b1   :  { %v5150_v10 = vadd.f32 %v5141_v50, %v4961_v13  ;;  %v5143_v49 = vpop.f32.mrb[73].mxu0 }
 0x7b2   :  { %v5151_v31 = vadd.f32 %v5143_v49, %v4962_v42  ;;  %v5145_v23 = vpop.f32.mrb[74].mxu0 }
 0x7b3   :  { %v5146_v21 = vpop.f32.mrb[75].mxu0  ;;  %v9577_v23 = vld [vmem:[%s11578_s7 + $0xe0] sm:$0xff]  }
 0x7b4   :  { %v9579_v21 = vld [vmem:[%s11578_s7 + $0xf0] sm:$0xff]  }
 0x7c0   :  { %v5290_v14 = vpop.f32.mrb[76].mxu0 }
 0x7c1   :  { %v5338_v17 = vadd.f32 %v5290_v14, %v5148_v4  ;;  %v5292_v37 = vpop.f32.mrb[77].mxu0 }
 0x7c2   :  { %v5339_v40 = vadd.f32 %v5292_v37, %v5149_v1  ;;  %v5294_v54 = vpop.f32.mrb[78].mxu0 }
 0x7c3   :  { %v5528_v27 = vadd.f32 %v11184_v12, %v5338_v17  ;;  %v5295_v33 = vpop.f32.mrb[79].mxu0  ;;  %v9571_v12 = vld [vmem:[%s11578_s7 + $0xb0] sm:$0xff]  }
 0x7c4   :  { %v5529_v11 = vadd.f32 %v11186_v24, %v5339_v40  ;;  %7414 = vmatpush1.bf16.msra.mxu0 %v9571_v12 }
 0x7c5   :  { %v5723_v3 = vadd.f32 %v11215_v28, %v5528_v27  ;;  %7415 = vmatprep.subr.bf16.mxu0 %v9606_v2 }
 0x7c6   :  { %v5724_v45 = vadd.f32 %v11219_v41, %v5529_v11  ;;  %v9572_v41 = vld [vmem:[%s11578_s7 + $0xb8] sm:$0xff]  }
 0x7c7   :  { %v5912_v20 = vadd.f32 %v11256_v56, %v5723_v3 }
 0x7c8   :  { %v5913_v60 = vadd.f32 %v11260_v43, %v5724_v45  ;;  %v11511_v43 = vld [vmem:[%s11577_s6] sm:$0xf]  ;;  %7416 = vmatpush1.bf16.msra.mxu0 %v9572_v41 }
 0x7c9   :  { %v6102_v24 = vadd.f32 %v11291_v38, %v5912_v20  ;;  %7417 = vmatprep.subr.bf16.mxu0 %v9606_v2 }
 0x7ca   :  { %v6103_v46 = vadd.f32 %v11305_v15, %v5913_v60  ;;  %v7068_v15 = vsub.s32 1, %v10243_v57 }
 0x7cb   :  { %v6292_v28 = vadd.f32 %v11358_v53, %v6102_v24 }
 0x7cc   :  { %v6293_v58 = vadd.f32 %v11366_v55, %v6103_v46  ;;  %v7069_v39 = vrot.slane %v11511_v43, %v7068_v15 }
 0x7cd   :  { %v6487_v56 = vadd.f32 %v11407_v9, %v6292_v28  ;;  %v7065_v9 = vrot.slane %v11511_v43, %v10246_v30 }
 0x7ce   :  { %v6488_v38 = vadd.f32 %v11410_v32, %v6293_v58 }
 0x7cf   :  { %v6676_v53 = vadd.f32 %v11440_v29, %v6487_v56  ;;  %v9573_v29 = vld [vmem:[%s11578_s7 + $0xc0] sm:$0xff]  }
 0x7d0   :  { %v6677_v55 = vadd.f32 %v11443_v19, %v6488_v38  ;;  %v5331_v52 = vpop.f32.mrb[80].mxu0  ;;  %7418 = vmatpush1.bf16.msra.mxu0 %v9573_v29 }
 0x7d1   :  { %v5340_v59 = vadd.f32 %v5331_v52, %v5150_v10  ;;  %v5333_v13 = vpop.f32.mrb[81].mxu0  ;;  %v6866_v62 = vadd.f32 %v11458_v44, %v6676_v53  ;;  %v9574_v44 = vld [vmem:[%s11578_s7 + $0xc8] sm:$0xff]   ;;  %7419 = vmatprep.subr.bf16.mxu0 %v9606_v2 }
 0x7d2   :  { %v5341_v42 = vadd.f32 %v5333_v13, %v5151_v31  ;;  %v5335_v0 = vpop.f32.mrb[82].mxu0  ;;  %v6867_v32 = vadd.f32 %v11460_v16, %v6677_v55 }
 0x7d3   :  { %v5336_v19 = vpop.f32.mrb[83].mxu0  ;;  %v7056_v34 = vadd.f32 %v11462_v48, %v6866_v62  ;;  %v9575_v48 = vld [vmem:[%s11578_s7 + $0xd0] sm:$0xff]  }
 0x7d4   :  { %v7057_v30 = vadd.f32 %v11464_v7, %v6867_v32  ;;  %7420 = vmatpush1.bf16.msra.mxu0 %v9574_v44  ;;  %v7072_v44 = vsub.s32 2, %v10243_v57 }
 0x7d5   :  { %v7082_v63 = vadd.f32 %v7065_v9, %v7056_v34  ;;  %7421 = vmatprep.subr.bf16.mxu0 %v9606_v2 }
 0x7d6   :  { %v7083_v16 = vadd.f32 %v7069_v39, %v7057_v30 }
 0x7d7   :  { %vm7086_vm2 = vcmp.ge.f32.partialorder %v7082_v63, 0.0  ;;  %v7090_v51 = vmul.f32 0.1, %v7082_v63 }
 0x7d8   :  { %vm7087_vm6 = vcmp.ge.f32.partialorder %v7083_v16, 0.0  ;;  %v7091_v4 = vmul.f32 0.1, %v7083_v16  ;;  %7422 = vmatpush1.bf16.msra.mxu0 %v9575_v48 }
 0x7d9   :  { %v7094_v5 = vsel %vm7086_vm2, %v7082_v63, %v7090_v51  ;;  %7423 = vmatprep.subr.bf16.mxu0 %v9606_v2  ;;  %v7076_v63 = vsub.s32 3, %v10243_v57 }
 0x7da   :  { %v7095_v7 = vsel %vm7087_vm6, %v7083_v16, %v7091_v4  ;;  %v7098_v35 = vpack.c.bf16 %v7094_v5, %v7094_v5  ;;  %v7073_v16 = vrot.slane %v11511_v43, %v7072_v44 }
 0x7db   :  { %v7099_v1 = vpack.c.bf16 %v7095_v7, %v7095_v7  ;;  %v7077_v4 = vrot.slane %v11511_v43, %v7076_v63 }
 0x7dc   :  { %7424 = vmatpush1.bf16.msra.mxu0 %v9576_v61 }
 0x7dd   :  { %7393 = vmatprep.mubr.bf16.mxu1 %v7099_v1  ;;  %7425 = vmatprep.subr.bf16.mxu0 %v9606_v2 }
 0x7de   :  { %7394 = vmatmul.mubr.bf16.vlgmr.msra.gmra.mrb[48].mxu1 %v7098_v35 }
 0x7e0   :  { %v5521_v8 = vpop.f32.mrb[84].mxu0  ;;  %7426 = vmatpush1.bf16.msra.mxu0 %v9577_v23 }
 0x7e1   :  { %v5530_v26 = vadd.f32 %v5521_v8, %v5340_v59  ;;  %v5523_v50 = vpop.f32.mrb[85].mxu0  ;;  %7427 = vmatprep.subr.bf16.mxu0 %v9606_v2 }
 0x7e2   :  { %v5531_v10 = vadd.f32 %v5523_v50, %v5341_v42  ;;  %v5525_v49 = vpop.f32.mrb[86].mxu0 }
 0x7e3   :  { %v5526_v31 = vpop.f32.mrb[87].mxu0 }
 0x7e4   :  { %7428 = vmatpush1.bf16.msra.mxu0 %v9578_v6 }
 0x7e5   :  { %7429 = vmatprep.subr.bf16.mxu0 %v9606_v2 }
 0x7e8   :  { %7430 = vmatpush1.bf16.msra.mxu0 %v9579_v21 }
 0x7f0   :  { %v5716_v36 = vpop.f32.mrb[88].mxu0 }
 0x7f1   :  { %v5725_v22 = vadd.f32 %v5716_v36, %v5530_v26  ;;  %v5718_v18 = vpop.f32.mrb[89].mxu0 }
 0x7f2   :  { %v5726_v14 = vadd.f32 %v5718_v18, %v5531_v10  ;;  %v5720_v17 = vpop.f32.mrb[90].mxu0 }
 0x7f3   :  { %v5721_v37 = vpop.f32.mrb[91].mxu0 }
 0x800   :  { %v5905_v40 = vpop.f32.mrb[92].mxu0 }
 0x801   :  { %v5914_v54 = vadd.f32 %v5905_v40, %v5725_v22  ;;  %v5907_v25 = vpop.f32.mrb[93].mxu0  ;;  %v8290_v22 = vld [vmem:[%s11579_s8] ss:$0 sm:$0xff] }
 0x802   :  { %v5915_v27 = vadd.f32 %v5907_v25, %v5726_v14  ;;  %v5909_v33 = vpop.f32.mrb[94].mxu0 }
 0x803   :  { %v5910_v11 = vpop.f32.mrb[95].mxu0 }
 0x810   :  { %v6095_v47 = vpop.f32.mrb[96].mxu0 }
 0x811   :  { %v6104_v3 = vadd.f32 %v6095_v47, %v5914_v54  ;;  %v6097_v45 = vpop.f32.mrb[97].mxu0 }
 0x812   :  { %v6105_v20 = vadd.f32 %v6097_v45, %v5915_v27  ;;  %v6099_v60 = vpop.f32.mrb[98].mxu0 }
 0x813   :  { %v6100_v12 = vpop.f32.mrb[99].mxu0 }
 0x820   :  { %v6285_v24 = vpop.f32.mrb[100].mxu0 }
 0x821   :  { %v6294_v2 = vadd.f32 %v6285_v24, %v6104_v3  ;;  %v6287_v46 = vpop.f32.mrb[101].mxu0 }
 0x822   :  { %v6295_v28 = vadd.f32 %v6287_v46, %v6105_v20  ;;  %v6289_v58 = vpop.f32.mrb[102].mxu0 }
 0x823   :  { %v6290_v41 = vpop.f32.mrb[103].mxu0 }
 0x830   :  { %v6480_v56 = vpop.f32.mrb[104].mxu0 }
 0x831   :  { %v6489_v38 = vadd.f32 %v6480_v56, %v6294_v2  ;;  %v6482_v15 = vpop.f32.mrb[105].mxu0 }
 0x832   :  { %v6490_v53 = vadd.f32 %v6482_v15, %v6295_v28  ;;  %v6484_v55 = vpop.f32.mrb[106].mxu0 }
 0x833   :  { %v6485_v52 = vpop.f32.mrb[107].mxu0 }
 0x840   :  { %v6669_v9 = vpop.f32.mrb[108].mxu0 }
 0x841   :  { %v6678_v59 = vadd.f32 %v6669_v9, %v6489_v38  ;;  %v6671_v13 = vpop.f32.mrb[109].mxu0 }
 0x842   :  { %v6679_v62 = vadd.f32 %v6671_v13, %v6490_v53  ;;  %v6673_v42 = vpop.f32.mrb[110].mxu0 }
 0x843   :  { %v6674_v0 = vpop.f32.mrb[111].mxu0 }
 0x850   :  { %v6859_v32 = vpop.f32.mrb[112].mxu0 }
 0x851   :  { %v6868_v39 = vadd.f32 %v6859_v32, %v6678_v59  ;;  %v6861_v29 = vpop.f32.mrb[113].mxu0 }
 0x852   :  { %v6869_v19 = vadd.f32 %v6861_v29, %v6679_v62  ;;  %v6863_v34 = vpop.f32.mrb[114].mxu0 }
 0x853   :  { %v6864_v30 = vpop.f32.mrb[115].mxu0 }
 0x860   :  { %v7049_v51 = vpop.f32.mrb[116].mxu0 }
 0x861   :  { %v7058_v48 = vadd.f32 %v7049_v51, %v6868_v39  ;;  %v7051_v5 = vpop.f32.mrb[117].mxu0 }
 0x862   :  { %v7059_v7 = vadd.f32 %v7051_v5, %v6869_v19  ;;  %v7053_v1 = vpop.f32.mrb[118].mxu0 }
 0x863   :  { %v7084_v35 = vadd.f32 %v7073_v16, %v7058_v48  ;;  %v7054_v61 = vpop.f32.mrb[119].mxu0 }
 0x864   :  { %v7085_v8 = vadd.f32 %v7077_v4, %v7059_v7 }
 0x865   :  { %vm7088_vm7 = vcmp.ge.f32.partialorder %v7084_v35, 0.0  ;;  %v7092_v26 = vmul.f32 0.1, %v7084_v35 }
 0x866   :  { %vm7089_vm8 = vcmp.ge.f32.partialorder %v7085_v8, 0.0  ;;  %v7093_v50 = vmul.f32 0.1, %v7085_v8 }
 0x867   :  { %v7096_v10 = vsel %vm7088_vm7, %v7084_v35, %v7092_v26 }
 0x868   :  { %v7097_v49 = vsel %vm7089_vm8, %v7085_v8, %v7093_v50  ;;  %v7100_v31 = vpack.c.bf16 %v7096_v10, %v7096_v10 }
 0x869   :  { %v7101_v57 = vpack.c.bf16 %v7097_v49, %v7097_v49 }
 0x86b   :  { %8322 = vmatprep.mubr.msk.bf16.mxu0 %vm7357_vm9, %v7101_v57 }
 0x86c   :  { %7434 = vmatmul.mubr.bf16.vlgmr.msra.gmra.mrb[120].mxu0 %v7100_v31 }
 0x8b1   :  { %v8483_v23 = vpop.f32.mrb[48].mxu1 }
 0x8b2   :  { %v8484_v43 = vpop.f32.mrb[49].mxu1 }
 0x8b3   :  { %v8485_v6 = vadd.f32 %v8484_v43, %v8483_v23  ;;  %v8486_v21 = vpop.f32.mrb[50].mxu1 }
 0x8b4   :  { %v8487_v36 = vpop.f32.mrb[51].mxu1 }
 0x8b5   :  { %v7396_v18 = vadd.f32 %v8485_v6, %v8290_v22 }
 0x93f   :  { %v7435_v14 = vpop.f32.mrb[120].mxu0 }
 0x940   :  { %v7436_v17 = vadd.f32 %v7435_v14, %v7396_v18  ;;  %v7437_v37 = vpop.f32.mrb[121].mxu0 }
 0x941   :  { %v7438_v40 = vpop.f32.mrb[122].mxu0 }
 0x942   :  { %v7439_v54 = vpop.f32.mrb[123].mxu0  ;;  %7442 = vst.msk [vmem:[#allocation4] sm:$0x3] %vm7441_vm10, %v7436_v17 }
 0x943   :  { %9593 = shalt.err (!%p9590_p4)
}
 0x944   :  { %s9594_s12 = scalar_lea.hbm %s11580_s9, 32 }
 0x945   :  { %p9595_p5 = scmp.ne.s32.totalorder %s11580_s9, %s9594_s12  ;;  %p9598_p6 = scmp.lt.u32.totalorder %s9594_s12, %s11580_s9 }
 0x947   :  { %p9600_p7 = pnand %p9598_p6, %p9595_p5 }
 0x949   :  { %9603 = shalt.err (!%p9600_p7)
}
 0x94a   :  { %7452 = dma.vmem_to_hbm [thread:$0]  %s7450_s10, 32, %s11580_s9, [#allocation5]  }
 0x94b   :  { %9604 = dma.done.wait [#allocation5], 32  }
 0x94c   :  { %9605 = vsyncadd [#allocation5], 4294967264 }
 0x94d   :  { %7456 = vsyncpa [#allocation5], 1 }

</bundles_post_ra>
